<compile_context>
chip_gen: v5e
topology: v5e:2x2
jax: 0.10.0
libtpu: 0.0.40
codegen_flags: <defaults>
</compile_context>

<pallas_src>
import functools

import jax
import jax.numpy as jnp
from jax import lax
from jax.experimental import pallas as pl
from jax.experimental.pallas import tpu as pltpu

# ----------------------------- configuration --------------------------------
B = 2        # batch (number of prompts / classes)
S = 8        # sequence length (context length)
D = 32       # transformer width
H = 4        # attention heads
HD = D // H  # head dim
FF = 4 * D   # MLP hidden
DP = 16      # text_projection output dim
LAYERS = 3   # transformer depth
N_CTX = 2    # MaPLe compound-prompt length
EPS = 1e-5
NEG_INF = -1e9


def _layer_norm(z, g, b):
    mu = jnp.mean(z, axis=-1, keepdims=True)
    var = jnp.mean((z - mu) ** 2, axis=-1, keepdims=True)
    return (z - mu) * lax.rsqrt(var + EPS) * g + b


# ----------------------- fused Pallas kernel (whole forward) ----------------
def _text_encoder_kernel(n_inject,
                         eot_ref,                       # SMEM (B,) scalar prefetch
                         x_in_ref, pos_ref, ctx_ref,
                         ln1g_ref, ln1b_ref, wqkv_ref, bqkv_ref, wo_ref, bo_ref,
                         ln2g_ref, ln2b_ref, wfc_ref, bfc_ref, wpr_ref, bpr_ref,
                         lnfg_ref, lnfb_ref, proj_ref,
                         out_ref, clone_ref,
                         buf_ref):
    b = pl.program_id(0)

    # positional-embedding add fused in-kernel.
    x = x_in_ref[...].astype(jnp.float32) + pos_ref[...].astype(jnp.float32)  # (S, D)

    # Per-batch-item S x S causal mask, built in-kernel (no DMA).
    row = lax.broadcasted_iota(jnp.int32, (S, S), 0)
    col = lax.broadcasted_iota(jnp.int32, (S, S), 1)
    causal = jnp.where(col <= row, 0.0, NEG_INF).astype(jnp.float32)

    # MaPLe injection machinery: rows [1 : 1+N_CTX] get replaced.
    pos_i = lax.broadcasted_iota(jnp.int32, (S, D), 0)
    inject = (pos_i >= 1) & (pos_i < 1 + N_CTX)
    r_sc = lax.broadcasted_iota(jnp.int32, (S, N_CTX), 0)
    c_sc = lax.broadcasted_iota(jnp.int32, (S, N_CTX), 1)
    expand = (r_sc == c_sc + 1).astype(jnp.float32)      # (S, N_CTX) one-hot expander

    scale = 1.0 / (HD ** 0.5)

    for l in range(LAYERS):                               # static unroll over depth
        if l > 0 and (l - 1) < n_inject:
            # Deep compound-prompt injection: tiny (S,N_CTX)@(N_CTX,D) expansion
            # + vreg select; ctx input is only (n_inject, N_CTX, D).
            ctx_slab = jnp.dot(expand, ctx_ref[l - 1].astype(jnp.float32),
                               preferred_element_type=jnp.float32)
            x = jnp.where(inject, ctx_slab, x)

        # --- LayerNorm 1 + fused QKV projection (single MXU matmul) ---
        xn = _layer_norm(x, ln1g_ref[l], ln1b_ref[l])
        qkv = jnp.dot(xn, wqkv_ref[l],
                      preferred_element_type=jnp.float32) + bqkv_ref[l]
        q = qkv[:, :D] * scale                            # fold 1/sqrt(HD) into q
        k = qkv[:, D:2 * D]
        v = qkv[:, 2 * D:]

        # --- causal multi-head attention (per batch item, S x S scores).
        # Head outputs land in their lane slice of buf_ref; one K=D output-proj
        # matmul per layer afterwards (no per-head wo matmuls / adds). ---
        for h in range(H):                                # static unroll over heads
            sl = slice(h * HD, (h + 1) * HD)
            sc = lax.dot_general(q[:, sl], k[:, sl], (((1,), (1,)), ((), ())),
                                 preferred_element_type=jnp.float32) + causal
            sc = sc - jnp.max(sc, axis=-1, keepdims=True)
            p = jnp.exp(sc)
            # approx reciprocal -> EUP slot (otherwise idle); tolerance absorbs it.
            p = p * pl.reciprocal(jnp.sum(p, axis=-1, keepdims=True), approx=True)
            buf_ref[:, sl] = jnp.dot(p, v[:, sl], preferred_element_type=jnp.float32)
        attn = buf_ref[...]
        x = x + jnp.dot(attn, wo_ref[l],
                        preferred_element_type=jnp.float32) + bo_ref[l]

        # --- LayerNorm 2 + MLP (QuickGELU, as in CLIP) ---
        xn2 = _layer_norm(x, ln2g_ref[l], ln2b_ref[l])
        hid = jnp.dot(xn2, wfc_ref[l],
                      preferred_element_type=jnp.float32) + bfc_ref[l]
        hid = hid * jax.nn.sigmoid(1.702 * hid)
        x = x + jnp.dot(hid, wpr_ref[l],
                        preferred_element_type=jnp.float32) + bpr_ref[l]

    # --- EOT gather via SMEM-prefetched index + pl.ds; ln_final + projection ---
    buf_ref[...] = x                                       # reuse scratch as row store
    clone = buf_ref[pl.ds(eot_ref[b], 1), :]               # (1, D)
    clone_ref[...] = clone.astype(clone_ref.dtype)
    zf = _layer_norm(clone, lnfg_ref[...], lnfb_ref[...])
    out_ref[...] = jnp.dot(zf, proj_ref[...],
                           preferred_element_type=jnp.float32).astype(out_ref.dtype)


def _run_fused_kernel(prompts, eot, ctx, p, n_inject):
    weights = (p["ln1_g"], p["ln1_b"], p["w_qkv"], p["b_qkv"], p["w_o"], p["b_o"],
               p["ln2_g"], p["ln2_b"], p["w_fc"], p["b_fc"], p["w_pr"], p["b_pr"],
               p["ln_final_g"], p["ln_final_b"], p["text_projection"])
    vmem = pl.BlockSpec(memory_space=pltpu.MemorySpace.VMEM)   # whole array, resident

    grid_spec = pltpu.PrefetchScalarGridSpec(
        num_scalar_prefetch=1,            # eot indices -> SMEM
        grid=(B,),                        # batch axis; parallel for v7x's 2 TCs
        in_specs=[pl.BlockSpec((None, S, D), lambda b, eot_ref: (b, 0, 0))]  # prompts
                 + [vmem] * (2 + len(weights)),            # pos_emb, ctx, weights
        out_specs=(pl.BlockSpec((None, 1, DP), lambda b, eot_ref: (b, 0, 0)),
                   pl.BlockSpec((None, 1, D), lambda b, eot_ref: (b, 0, 0))),
        scratch_shapes=[pltpu.VMEM((S, D), jnp.float32)],
    )
    return pl.pallas_call(
        functools.partial(_text_encoder_kernel, n_inject),
        out_shape=(jax.ShapeDtypeStruct((B, 1, DP), jnp.float32),
                   jax.ShapeDtypeStruct((B, 1, D), jnp.float32)),
        grid_spec=grid_spec,
        compiler_params=pltpu.CompilerParams(
            dimension_semantics=("parallel",)),
    )(eot, prompts, p["positional_embedding"], ctx, *weights)


# ------------------------------ parameters -----------------------------------
def init_params(key):
    def nrm(k, shape, scale=0.02):
        return scale * jax.random.normal(k, shape, dtype=jnp.float32)

    ks = jax.random.split(key, 16)
    return {
        "positional_embedding": nrm(ks[0], (S, D)),
        "ln1_g": 1.0 + nrm(ks[1], (LAYERS, 1, D), 0.05),
        "ln1_b": nrm(ks[2], (LAYERS, 1, D), 0.05),
        "w_qkv": nrm(ks[3], (LAYERS, D, 3 * D)),          # [wq | wk | wv] fused
        "b_qkv": nrm(ks[4], (LAYERS, 1, 3 * D)),
        "w_o": nrm(ks[5], (LAYERS, D, D)),
        "b_o": nrm(ks[6], (LAYERS, 1, D)),
        "ln2_g": 1.0 + nrm(ks[7], (LAYERS, 1, D), 0.05),
        "ln2_b": nrm(ks[8], (LAYERS, 1, D), 0.05),
        "w_fc": nrm(ks[9], (LAYERS, D, FF)),
        "b_fc": nrm(ks[10], (LAYERS, 1, FF)),
        "w_pr": nrm(ks[11], (LAYERS, FF, D)),
        "b_pr": nrm(ks[12], (LAYERS, 1, D)),
        "ln_final_g": 1.0 + nrm(ks[13], (1, D), 0.05),
        "ln_final_b": nrm(ks[14], (1, D), 0.05),
        "text_projection": nrm(ks[15], (D, DP), scale=D ** -0.5),
    }


# --------------------------- TextEncoder.forward -----------------------------
def text_encoder_forward(prompts, tokenized_prompts, compound_prompts_deeper_text,
                         embeddingx, params):
    # TODO(synk): `embeddingx` is consumed inside SCP's modified transformer whose
    # source is not provided; standard MaPLe text-branch deep-prompt semantics are
    # reproduced and embeddingx is threaded through unused.
    del embeddingx
    Bn = prompts.shape[0]

    n_inject = min(len(compound_prompts_deeper_text), LAYERS - 1)
    if n_inject > 0:
        ctx = jnp.stack([c.astype(jnp.float32)
                         for c in compound_prompts_deeper_text[:n_inject]], axis=0)
    else:
        ctx = jnp.zeros((1, N_CTX, D), jnp.float32)

    # EOT indices go through scalar prefetch (SMEM), not a one-hot matmul.
    eot = jnp.argmax(tokenized_prompts, axis=-1).astype(jnp.int32)        # (B,)

    out3, clone3 = _run_fused_kernel(prompts, eot, ctx, params, n_inject)
    return out3.reshape(Bn, DP), clone3.reshape(Bn, D)


# ------------------------------ pure-JAX reference ---------------------------
def _ref_forward(prompts, tokenized_prompts, compound, embeddingx, params):
    del embeddingx
    x = prompts + params["positional_embedding"][None]
    i_idx = jnp.arange(S)[:, None]
    j_idx = jnp.arange(S)[None, :]
    mask = jnp.where(j_idx > i_idx, NEG_INF, 0.0).astype(jnp.float32)
    for i in range(LAYERS):
        if i > 0 and (i - 1) < len(compound):
            x = x.at[:, 1:1 + N_CTX, :].set(
                jnp.broadcast_to(compound[i - 1][None], (x.shape[0], N_CTX, D)))
        xn = _layer_norm(x, params["ln1_g"][i], params["ln1_b"][i])
        qkv = xn @ params["w_qkv"][i] + params["b_qkv"][i]
        q = qkv[..., :D].reshape(B, S, H, HD)
        k = qkv[..., D:2 * D].reshape(B, S, H, HD)
        v = qkv[..., 2 * D:].reshape(B, S, H, HD)
        sc = jnp.einsum("bqhd,bkhd->bhqk", q, k) / (HD ** 0.5) + mask
        p = jax.nn.softmax(sc, axis=-1)
        a = jnp.einsum("bhqk,bkhd->bqhd", p, v).reshape(B, S, D)
        x = x + a @ params["w_o"][i] + params["b_o"][i]
        h = _layer_norm(x, params["ln2_g"][i], params["ln2_b"][i]) @ params["w_fc"][i] \
            + params["b_fc"][i]
        h = h * jax.nn.sigmoid(1.702 * h)
        x = x + h @ params["w_pr"][i] + params["b_pr"][i]
    eot = jnp.argmax(tokenized_prompts, axis=-1)
    clone = x[jnp.arange(B), eot]
    out = _layer_norm(clone, params["ln_final_g"], params["ln_final_b"]) \
        @ params["text_projection"]
    return out, clone


# ------------------------------------ main ------------------------------------
if __name__ == "__main__":
    key = jax.random.PRNGKey(0)
    k_par, k_prm, k_tok, k_cp, k_emb = jax.random.split(key, 5)

    params = init_params(k_par)
    prompts = jax.random.normal(k_prm, (B, S, D), dtype=jnp.float32)
    tokenized_prompts = jax.random.randint(k_tok, (B, S), 0, 1000).astype(jnp.int32)
    compound_prompts_deeper_text = [
        0.02 * jax.random.normal(k, (N_CTX, D), dtype=jnp.float32)
        for k in jax.random.split(k_cp, LAYERS - 1)
    ]
    embeddingx = jax.random.normal(k_emb, (B, D), dtype=jnp.float32)

    fwd = jax.jit(text_encoder_forward)
    out, clone_feature = fwd(prompts, tokenized_prompts,
                             compound_prompts_deeper_text, embeddingx, params)
    jax.block_until_ready((out, clone_feature))

    ref_out, ref_clone = _ref_forward(prompts, tokenized_prompts,
                                      compound_prompts_deeper_text, embeddingx, params)
    assert out.shape == (B, DP) and clone_feature.shape == (B, D)
    # tolerance slightly loosened vs f32 bit-match to absorb approx reciprocal
    assert jnp.allclose(out, ref_out, rtol=2e-3, atol=2e-3)
    assert jnp.allclose(clone_feature, ref_clone, rtol=2e-3, atol=2e-3)

    print("KERNEL_OK")
</pallas_src>

<mosaic_0001>
module attributes {stable_mosaic.version = 11 : i64} {
  func.func @_text_encoder_kernel(%arg0: i32, %arg1: memref<2xi32, #tpu.memory_space<smem>>, %arg2: memref<1x8x32xf32, #tpu.memory_space<vmem>>, %arg3: memref<8x32xf32, #tpu.memory_space<vmem>>, %arg4: memref<2x2x32xf32, #tpu.memory_space<vmem>>, %arg5: memref<3x1x32xf32, #tpu.memory_space<vmem>>, %arg6: memref<3x1x32xf32, #tpu.memory_space<vmem>>, %arg7: memref<3x32x96xf32, #tpu.memory_space<vmem>>, %arg8: memref<3x1x96xf32, #tpu.memory_space<vmem>>, %arg9: memref<3x32x32xf32, #tpu.memory_space<vmem>>, %arg10: memref<3x1x32xf32, #tpu.memory_space<vmem>>, %arg11: memref<3x1x32xf32, #tpu.memory_space<vmem>>, %arg12: memref<3x1x32xf32, #tpu.memory_space<vmem>>, %arg13: memref<3x32x128xf32, #tpu.memory_space<vmem>>, %arg14: memref<3x1x128xf32, #tpu.memory_space<vmem>>, %arg15: memref<3x128x32xf32, #tpu.memory_space<vmem>>, %arg16: memref<3x1x32xf32, #tpu.memory_space<vmem>>, %arg17: memref<1x32xf32, #tpu.memory_space<vmem>>, %arg18: memref<1x32xf32, #tpu.memory_space<vmem>>, %arg19: memref<32x16xf32, #tpu.memory_space<vmem>>, %arg20: memref<1x1x16xf32, #tpu.memory_space<vmem>>, %arg21: memref<1x1x32xf32, #tpu.memory_space<vmem>>, %arg22: memref<8x32xf32, #tpu.memory_space<vmem>>) attributes {dimension_semantics = [#tpu.dimension_semantics<parallel>], iteration_bounds = array<i64: 2>, scalar_prefetch = 1 : i64, scratch_operands = 1 : i64, tpu.core_type = #tpu.core_type<tc>, window_params = [{transform_indices = @transform_0, window_bounds = array<i64: 1, 8, 32>}, {pipeline_mode = #tpu.pipeline_mode<synchronous>, transform_indices = @transform_1, window_bounds = array<i64: 8, 32>}, {pipeline_mode = #tpu.pipeline_mode<synchronous>, transform_indices = @transform_2, window_bounds = array<i64: 2, 2, 32>}, {pipeline_mode = #tpu.pipeline_mode<synchronous>, transform_indices = @transform_3, window_bounds = array<i64: 3, 1, 32>}, {pipeline_mode = #tpu.pipeline_mode<synchronous>, transform_indices = @transform_4, window_bounds = array<i64: 3, 1, 32>}, {pipeline_mode = #tpu.pipeline_mode<synchronous>, transform_indices = @transform_5, window_bounds = array<i64: 3, 32, 96>}, {pipeline_mode = #tpu.pipeline_mode<synchronous>, transform_indices = @transform_6, window_bounds = array<i64: 3, 1, 96>}, {pipeline_mode = #tpu.pipeline_mode<synchronous>, transform_indices = @transform_7, window_bounds = array<i64: 3, 32, 32>}, {pipeline_mode = #tpu.pipeline_mode<synchronous>, transform_indices = @transform_8, window_bounds = array<i64: 3, 1, 32>}, {pipeline_mode = #tpu.pipeline_mode<synchronous>, transform_indices = @transform_9, window_bounds = array<i64: 3, 1, 32>}, {pipeline_mode = #tpu.pipeline_mode<synchronous>, transform_indices = @transform_10, window_bounds = array<i64: 3, 1, 32>}, {pipeline_mode = #tpu.pipeline_mode<synchronous>, transform_indices = @transform_11, window_bounds = array<i64: 3, 32, 128>}, {pipeline_mode = #tpu.pipeline_mode<synchronous>, transform_indices = @transform_12, window_bounds = array<i64: 3, 1, 128>}, {pipeline_mode = #tpu.pipeline_mode<synchronous>, transform_indices = @transform_13, window_bounds = array<i64: 3, 128, 32>}, {pipeline_mode = #tpu.pipeline_mode<synchronous>, transform_indices = @transform_14, window_bounds = array<i64: 3, 1, 32>}, {pipeline_mode = #tpu.pipeline_mode<synchronous>, transform_indices = @transform_15, window_bounds = array<i64: 1, 32>}, {pipeline_mode = #tpu.pipeline_mode<synchronous>, transform_indices = @transform_16, window_bounds = array<i64: 1, 32>}, {pipeline_mode = #tpu.pipeline_mode<synchronous>, transform_indices = @transform_17, window_bounds = array<i64: 32, 16>}, {transform_indices = @transform_18, window_bounds = array<i64: 1, 1, 16>}, {transform_indices = @transform_19, window_bounds = array<i64: 1, 1, 32>}]} {
    %c0 = arith.constant 0 : index
    %c0_0 = arith.constant 0 : index
    %c0_1 = arith.constant 0 : index
    %0 = vector.load %arg2[%c0, %c0_0, %c0_1] : memref<1x8x32xf32, #tpu.memory_space<vmem>>, vector<1x8x32xf32>
    %1 = vector.shape_cast %0 : vector<1x8x32xf32> to vector<8x32xf32>
    %c0_2 = arith.constant 0 : index
    %c0_3 = arith.constant 0 : index
    %2 = vector.load %arg3[%c0_2, %c0_3] : memref<8x32xf32, #tpu.memory_space<vmem>>, vector<8x32xf32>
    %3 = arith.addf %1, %2 : vector<8x32xf32>
    %4 = tpu.iota {dimensions = array<i32: 0>} : vector<8x8xi32>
    %5 = tpu.iota {dimensions = array<i32: 1>} : vector<8x8xi32>
    %6 = arith.cmpi sle, %5, %4 : vector<8x8xi32>
    %cst = arith.constant 0.000000e+00 : f32
    %cst_4 = arith.constant -1.000000e+09 : f32
    %7 = vector.broadcast %cst : f32 to vector<8x8xf32>
    %8 = vector.broadcast %cst_4 : f32 to vector<8x8xf32>
    %9 = arith.select %6, %7, %8 : vector<8x8xi1>, vector<8x8xf32>
    %10 = tpu.iota {dimensions = array<i32: 0>} : vector<8x32xi32>
    %c1_i32 = arith.constant 1 : i32
    %11 = vector.broadcast %c1_i32 : i32 to vector<8x32xi32>
    %12 = arith.cmpi sge, %10, %11 : vector<8x32xi32>
    %c3_i32 = arith.constant 3 : i32
    %13 = vector.broadcast %c3_i32 : i32 to vector<8x32xi32>
    %14 = arith.cmpi slt, %10, %13 : vector<8x32xi32>
    %15 = arith.andi %12, %14 : vector<8x32xi1>
    %16 = tpu.iota {dimensions = array<i32: 0>} : vector<8x2xi32>
    %17 = tpu.iota {dimensions = array<i32: 1>} : vector<8x2xi32>
    %c1_i32_5 = arith.constant 1 : i32
    %18 = vector.broadcast %c1_i32_5 : i32 to vector<8x2xi32>
    %19 = arith.addi %17, %18 : vector<8x2xi32>
    %20 = arith.cmpi eq, %16, %19 : vector<8x2xi32>
    %21 = arith.extui %20 : vector<8x2xi1> to vector<8x2xi32>
    %22 = arith.sitofp %21 : vector<8x2xi32> to vector<8x2xf32>
    %c0_6 = arith.constant 0 : index
    %c0_7 = arith.constant 0 : index
    %c0_8 = arith.constant 0 : index
    %23 = vector.load %arg5[%c0_6, %c0_7, %c0_8] : memref<3x1x32xf32, #tpu.memory_space<vmem>>, vector<1x1x32xf32>
    %24 = vector.shape_cast %23 : vector<1x1x32xf32> to vector<1x32xf32>
    %c0_9 = arith.constant 0 : index
    %c0_10 = arith.constant 0 : index
    %c0_11 = arith.constant 0 : index
    %25 = vector.load %arg6[%c0_9, %c0_10, %c0_11] : memref<3x1x32xf32, #tpu.memory_space<vmem>>, vector<1x1x32xf32>
    %26 = vector.shape_cast %25 : vector<1x1x32xf32> to vector<1x32xf32>
    %cst_12 = arith.constant dense<0.000000e+00> : vector<8xf32>
    %27 = vector.multi_reduction <add>, %3, %cst_12 [1] : vector<8x32xf32> to vector<8xf32>
    %28 = vector.shape_cast %27 : vector<8xf32> to vector<8x1xf32>
    %cst_13 = arith.constant 3.200000e+01 : f32
    %29 = vector.broadcast %cst_13 : f32 to vector<8x1xf32>
    %30 = arith.divf %28, %29 : vector<8x1xf32>
    %31 = vector.broadcast %30 : vector<8x1xf32> to vector<8x32xf32>
    %32 = arith.subf %3, %31 : vector<8x32xf32>
    %33 = arith.mulf %32, %32 : vector<8x32xf32>
    %cst_14 = arith.constant dense<0.000000e+00> : vector<8xf32>
    %34 = vector.multi_reduction <add>, %33, %cst_14 [1] : vector<8x32xf32> to vector<8xf32>
    %35 = vector.shape_cast %34 : vector<8xf32> to vector<8x1xf32>
    %cst_15 = arith.constant 3.200000e+01 : f32
    %36 = vector.broadcast %cst_15 : f32 to vector<8x1xf32>
    %37 = arith.divf %35, %36 : vector<8x1xf32>
    %38 = vector.broadcast %30 : vector<8x1xf32> to vector<8x32xf32>
    %39 = arith.subf %3, %38 : vector<8x32xf32>
    %cst_16 = arith.constant 9.99999974E-6 : f32
    %40 = vector.broadcast %cst_16 : f32 to vector<8x1xf32>
    %41 = arith.addf %37, %40 : vector<8x1xf32>
    %42 = math.rsqrt %41 : vector<8x1xf32>
    %43 = vector.broadcast %42 : vector<8x1xf32> to vector<8x32xf32>
    %44 = arith.mulf %39, %43 : vector<8x32xf32>
    %45 = vector.broadcast %24 : vector<1x32xf32> to vector<8x32xf32>
    %46 = arith.mulf %44, %45 : vector<8x32xf32>
    %47 = vector.broadcast %26 : vector<1x32xf32> to vector<8x32xf32>
    %48 = arith.addf %46, %47 : vector<8x32xf32>
    %c0_17 = arith.constant 0 : index
    %c0_18 = arith.constant 0 : index
    %c0_19 = arith.constant 0 : index
    %49 = vector.load %arg7[%c0_17, %c0_18, %c0_19] : memref<3x32x96xf32, #tpu.memory_space<vmem>>, vector<1x32x96xf32>
    %50 = vector.shape_cast %49 : vector<1x32x96xf32> to vector<32x96xf32>
    %cst_20 = arith.constant dense<0.000000e+00> : vector<8x96xf32>
    %51 = tpu.matmul %48, %50, %cst_20 {dimension_numbers = #tpu.dot_dimension_numbers<[1], [0], [0], [1], [0, 0, 1, 1], [], []>} : vector<8x32xf32>, vector<32x96xf32>, vector<8x96xf32> -> vector<8x96xf32>
    %c0_21 = arith.constant 0 : index
    %c0_22 = arith.constant 0 : index
    %c0_23 = arith.constant 0 : index
    %52 = vector.load %arg8[%c0_21, %c0_22, %c0_23] : memref<3x1x96xf32, #tpu.memory_space<vmem>>, vector<1x1x96xf32>
    %53 = vector.shape_cast %52 : vector<1x1x96xf32> to vector<1x96xf32>
    %54 = vector.broadcast %53 : vector<1x96xf32> to vector<8x96xf32>
    %55 = arith.addf %51, %54 : vector<8x96xf32>
    %56 = vector.extract_strided_slice %55 {offsets = [0, 0], sizes = [8, 32], strides = [1, 1]} : vector<8x96xf32> to vector<8x32xf32>
    %cst_24 = arith.constant 0.353553385 : f32
    %57 = vector.broadcast %cst_24 : f32 to vector<8x32xf32>
    %58 = arith.mulf %56, %57 : vector<8x32xf32>
    %59 = vector.extract_strided_slice %55 {offsets = [0, 32], sizes = [8, 32], strides = [1, 1]} : vector<8x96xf32> to vector<8x32xf32>
    %60 = vector.extract_strided_slice %55 {offsets = [0, 64], sizes = [8, 32], strides = [1, 1]} : vector<8x96xf32> to vector<8x32xf32>
    %61 = vector.extract_strided_slice %58 {offsets = [0, 0], sizes = [8, 8], strides = [1, 1]} : vector<8x32xf32> to vector<8x8xf32>
    %62 = vector.extract_strided_slice %59 {offsets = [0, 0], sizes = [8, 8], strides = [1, 1]} : vector<8x32xf32> to vector<8x8xf32>
    %cst_25 = arith.constant dense<0.000000e+00> : vector<8x8xf32>
    %63 = tpu.matmul %61, %62, %cst_25 {dimension_numbers = #tpu.dot_dimension_numbers<[1], [1], [0], [0], [0, 0, 1, 0], [], []>} : vector<8x8xf32>, vector<8x8xf32>, vector<8x8xf32> -> vector<8x8xf32>
    %64 = arith.addf %63, %9 : vector<8x8xf32>
    %cst_26 = arith.constant dense<0xFF800000> : vector<8xf32>
    %65 = vector.multi_reduction <maximumf>, %64, %cst_26 [1] : vector<8x8xf32> to vector<8xf32>
    %66 = vector.shape_cast %65 : vector<8xf32> to vector<8x1xf32>
    %67 = vector.broadcast %66 : vector<8x1xf32> to vector<8x8xf32>
    %68 = arith.subf %64, %67 : vector<8x8xf32>
    %69 = math.exp %68 : vector<8x8xf32>
    %cst_27 = arith.constant dense<0.000000e+00> : vector<8xf32>
    %70 = vector.multi_reduction <add>, %69, %cst_27 [1] : vector<8x8xf32> to vector<8xf32>
    %71 = vector.shape_cast %70 : vector<8xf32> to vector<8x1xf32>
    %72 = tpu.reciprocal %71 {approx = true} : vector<8x1xf32> -> vector<8x1xf32>
    %73 = vector.broadcast %72 : vector<8x1xf32> to vector<8x8xf32>
    %74 = arith.mulf %69, %73 : vector<8x8xf32>
    %75 = vector.extract_strided_slice %60 {offsets = [0, 0], sizes = [8, 8], strides = [1, 1]} : vector<8x32xf32> to vector<8x8xf32>
    %cst_28 = arith.constant dense<0.000000e+00> : vector<8x8xf32>
    %76 = tpu.matmul %74, %75, %cst_28 {dimension_numbers = #tpu.dot_dimension_numbers<[1], [0], [0], [1], [0, 0, 1, 1], [], []>} : vector<8x8xf32>, vector<8x8xf32>, vector<8x8xf32> -> vector<8x8xf32>
    %c0_29 = arith.constant 0 : index
    %c0_30 = arith.constant 0 : index
    %77 = vector.load %arg22[%c0_29, %c0_30] : memref<8x32xf32, #tpu.memory_space<vmem>>, vector<8x8xf32>
    tpu.vector_store %arg22[%c0_29, %c0_30], %76 {strides = array<i32>} : memref<8x32xf32, #tpu.memory_space<vmem>>, vector<8x8xf32>,
    %78 = vector.extract_strided_slice %58 {offsets = [0, 8], sizes = [8, 8], strides = [1, 1]} : vector<8x32xf32> to vector<8x8xf32>
    %79 = vector.extract_strided_slice %59 {offsets = [0, 8], sizes = [8, 8], strides = [1, 1]} : vector<8x32xf32> to vector<8x8xf32>
    %cst_31 = arith.constant dense<0.000000e+00> : vector<8x8xf32>
    %80 = tpu.matmul %78, %79, %cst_31 {dimension_numbers = #tpu.dot_dimension_numbers<[1], [1], [0], [0], [0, 0, 1, 0], [], []>} : vector<8x8xf32>, vector<8x8xf32>, vector<8x8xf32> -> vector<8x8xf32>
    %81 = arith.addf %80, %9 : vector<8x8xf32>
    %cst_32 = arith.constant dense<0xFF800000> : vector<8xf32>
    %82 = vector.multi_reduction <maximumf>, %81, %cst_32 [1] : vector<8x8xf32> to vector<8xf32>
    %83 = vector.shape_cast %82 : vector<8xf32> to vector<8x1xf32>
    %84 = vector.broadcast %83 : vector<8x1xf32> to vector<8x8xf32>
    %85 = arith.subf %81, %84 : vector<8x8xf32>
    %86 = math.exp %85 : vector<8x8xf32>
    %cst_33 = arith.constant dense<0.000000e+00> : vector<8xf32>
    %87 = vector.multi_reduction <add>, %86, %cst_33 [1] : vector<8x8xf32> to vector<8xf32>
    %88 = vector.shape_cast %87 : vector<8xf32> to vector<8x1xf32>
    %89 = tpu.reciprocal %88 {approx = true} : vector<8x1xf32> -> vector<8x1xf32>
    %90 = vector.broadcast %89 : vector<8x1xf32> to vector<8x8xf32>
    %91 = arith.mulf %86, %90 : vector<8x8xf32>
    %92 = vector.extract_strided_slice %60 {offsets = [0, 8], sizes = [8, 8], strides = [1, 1]} : vector<8x32xf32> to vector<8x8xf32>
    %cst_34 = arith.constant dense<0.000000e+00> : vector<8x8xf32>
    %93 = tpu.matmul %91, %92, %cst_34 {dimension_numbers = #tpu.dot_dimension_numbers<[1], [0], [0], [1], [0, 0, 1, 1], [], []>} : vector<8x8xf32>, vector<8x8xf32>, vector<8x8xf32> -> vector<8x8xf32>
    %c0_35 = arith.constant 0 : index
    %c8 = arith.constant 8 : index
    %94 = vector.load %arg22[%c0_35, %c8] : memref<8x32xf32, #tpu.memory_space<vmem>>, vector<8x8xf32>
    tpu.vector_store %arg22[%c0_35, %c8], %93 {strides = array<i32>} : memref<8x32xf32, #tpu.memory_space<vmem>>, vector<8x8xf32>,
    %95 = vector.extract_strided_slice %58 {offsets = [0, 16], sizes = [8, 8], strides = [1, 1]} : vector<8x32xf32> to vector<8x8xf32>
    %96 = vector.extract_strided_slice %59 {offsets = [0, 16], sizes = [8, 8], strides = [1, 1]} : vector<8x32xf32> to vector<8x8xf32>
    %cst_36 = arith.constant dense<0.000000e+00> : vector<8x8xf32>
    %97 = tpu.matmul %95, %96, %cst_36 {dimension_numbers = #tpu.dot_dimension_numbers<[1], [1], [0], [0], [0, 0, 1, 0], [], []>} : vector<8x8xf32>, vector<8x8xf32>, vector<8x8xf32> -> vector<8x8xf32>
    %98 = arith.addf %97, %9 : vector<8x8xf32>
    %cst_37 = arith.constant dense<0xFF800000> : vector<8xf32>
    %99 = vector.multi_reduction <maximumf>, %98, %cst_37 [1] : vector<8x8xf32> to vector<8xf32>
    %100 = vector.shape_cast %99 : vector<8xf32> to vector<8x1xf32>
    %101 = vector.broadcast %100 : vector<8x1xf32> to vector<8x8xf32>
    %102 = arith.subf %98, %101 : vector<8x8xf32>
    %103 = math.exp %102 : vector<8x8xf32>
    %cst_38 = arith.constant dense<0.000000e+00> : vector<8xf32>
    %104 = vector.multi_reduction <add>, %103, %cst_38 [1] : vector<8x8xf32> to vector<8xf32>
    %105 = vector.shape_cast %104 : vector<8xf32> to vector<8x1xf32>
    %106 = tpu.reciprocal %105 {approx = true} : vector<8x1xf32> -> vector<8x1xf32>
    %107 = vector.broadcast %106 : vector<8x1xf32> to vector<8x8xf32>
    %108 = arith.mulf %103, %107 : vector<8x8xf32>
    %109 = vector.extract_strided_slice %60 {offsets = [0, 16], sizes = [8, 8], strides = [1, 1]} : vector<8x32xf32> to vector<8x8xf32>
    %cst_39 = arith.constant dense<0.000000e+00> : vector<8x8xf32>
    %110 = tpu.matmul %108, %109, %cst_39 {dimension_numbers = #tpu.dot_dimension_numbers<[1], [0], [0], [1], [0, 0, 1, 1], [], []>} : vector<8x8xf32>, vector<8x8xf32>, vector<8x8xf32> -> vector<8x8xf32>
    %c0_40 = arith.constant 0 : index
    %c16 = arith.constant 16 : index
    %111 = vector.load %arg22[%c0_40, %c16] : memref<8x32xf32, #tpu.memory_space<vmem>>, vector<8x8xf32>
    tpu.vector_store %arg22[%c0_40, %c16], %110 {strides = array<i32>} : memref<8x32xf32, #tpu.memory_space<vmem>>, vector<8x8xf32>,
    %112 = vector.extract_strided_slice %58 {offsets = [0, 24], sizes = [8, 8], strides = [1, 1]} : vector<8x32xf32> to vector<8x8xf32>
    %113 = vector.extract_strided_slice %59 {offsets = [0, 24], sizes = [8, 8], strides = [1, 1]} : vector<8x32xf32> to vector<8x8xf32>
    %cst_41 = arith.constant dense<0.000000e+00> : vector<8x8xf32>
    %114 = tpu.matmul %112, %113, %cst_41 {dimension_numbers = #tpu.dot_dimension_numbers<[1], [1], [0], [0], [0, 0, 1, 0], [], []>} : vector<8x8xf32>, vector<8x8xf32>, vector<8x8xf32> -> vector<8x8xf32>
    %115 = arith.addf %114, %9 : vector<8x8xf32>
    %cst_42 = arith.constant dense<0xFF800000> : vector<8xf32>
    %116 = vector.multi_reduction <maximumf>, %115, %cst_42 [1] : vector<8x8xf32> to vector<8xf32>
    %117 = vector.shape_cast %116 : vector<8xf32> to vector<8x1xf32>
    %118 = vector.broadcast %117 : vector<8x1xf32> to vector<8x8xf32>
    %119 = arith.subf %115, %118 : vector<8x8xf32>
    %120 = math.exp %119 : vector<8x8xf32>
    %cst_43 = arith.constant dense<0.000000e+00> : vector<8xf32>
    %121 = vector.multi_reduction <add>, %120, %cst_43 [1] : vector<8x8xf32> to vector<8xf32>
    %122 = vector.shape_cast %121 : vector<8xf32> to vector<8x1xf32>
    %123 = tpu.reciprocal %122 {approx = true} : vector<8x1xf32> -> vector<8x1xf32>
    %124 = vector.broadcast %123 : vector<8x1xf32> to vector<8x8xf32>
    %125 = arith.mulf %120, %124 : vector<8x8xf32>
    %126 = vector.extract_strided_slice %60 {offsets = [0, 24], sizes = [8, 8], strides = [1, 1]} : vector<8x32xf32> to vector<8x8xf32>
    %cst_44 = arith.constant dense<0.000000e+00> : vector<8x8xf32>
    %127 = tpu.matmul %125, %126, %cst_44 {dimension_numbers = #tpu.dot_dimension_numbers<[1], [0], [0], [1], [0, 0, 1, 1], [], []>} : vector<8x8xf32>, vector<8x8xf32>, vector<8x8xf32> -> vector<8x8xf32>
    %c0_45 = arith.constant 0 : index
    %c24 = arith.constant 24 : index
    %128 = vector.load %arg22[%c0_45, %c24] : memref<8x32xf32, #tpu.memory_space<vmem>>, vector<8x8xf32>
    tpu.vector_store %arg22[%c0_45, %c24], %127 {strides = array<i32>} : memref<8x32xf32, #tpu.memory_space<vmem>>, vector<8x8xf32>,
    %c0_46 = arith.constant 0 : index
    %c0_47 = arith.constant 0 : index
    %129 = vector.load %arg22[%c0_46, %c0_47] : memref<8x32xf32, #tpu.memory_space<vmem>>, vector<8x32xf32>
    %c0_48 = arith.constant 0 : index
    %c0_49 = arith.constant 0 : index
    %c0_50 = arith.constant 0 : index
    %130 = vector.load %arg9[%c0_48, %c0_49, %c0_50] : memref<3x32x32xf32, #tpu.memory_space<vmem>>, vector<1x32x32xf32>
    %131 = vector.shape_cast %130 : vector<1x32x32xf32> to vector<32x32xf32>
    %cst_51 = arith.constant dense<0.000000e+00> : vector<8x32xf32>
    %132 = tpu.matmul %129, %131, %cst_51 {dimension_numbers = #tpu.dot_dimension_numbers<[1], [0], [0], [1], [0, 0, 1, 1], [], []>} : vector<8x32xf32>, vector<32x32xf32>, vector<8x32xf32> -> vector<8x32xf32>
    %133 = arith.addf %3, %132 : vector<8x32xf32>
    %c0_52 = arith.constant 0 : index
    %c0_53 = arith.constant 0 : index
    %c0_54 = arith.constant 0 : index
    %134 = vector.load %arg10[%c0_52, %c0_53, %c0_54] : memref<3x1x32xf32, #tpu.memory_space<vmem>>, vector<1x1x32xf32>
    %135 = vector.shape_cast %134 : vector<1x1x32xf32> to vector<1x32xf32>
    %136 = vector.broadcast %135 : vector<1x32xf32> to vector<8x32xf32>
    %137 = arith.addf %133, %136 : vector<8x32xf32>
    %c0_55 = arith.constant 0 : index
    %c0_56 = arith.constant 0 : index
    %c0_57 = arith.constant 0 : index
    %138 = vector.load %arg11[%c0_55, %c0_56, %c0_57] : memref<3x1x32xf32, #tpu.memory_space<vmem>>, vector<1x1x32xf32>
    %139 = vector.shape_cast %138 : vector<1x1x32xf32> to vector<1x32xf32>
    %c0_58 = arith.constant 0 : index
    %c0_59 = arith.constant 0 : index
    %c0_60 = arith.constant 0 : index
    %140 = vector.load %arg12[%c0_58, %c0_59, %c0_60] : memref<3x1x32xf32, #tpu.memory_space<vmem>>, vector<1x1x32xf32>
    %141 = vector.shape_cast %140 : vector<1x1x32xf32> to vector<1x32xf32>
    %cst_61 = arith.constant dense<0.000000e+00> : vector<8xf32>
    %142 = vector.multi_reduction <add>, %137, %cst_61 [1] : vector<8x32xf32> to vector<8xf32>
    %143 = vector.shape_cast %142 : vector<8xf32> to vector<8x1xf32>
    %cst_62 = arith.constant 3.200000e+01 : f32
    %144 = vector.broadcast %cst_62 : f32 to vector<8x1xf32>
    %145 = arith.divf %143, %144 : vector<8x1xf32>
    %146 = vector.broadcast %145 : vector<8x1xf32> to vector<8x32xf32>
    %147 = arith.subf %137, %146 : vector<8x32xf32>
    %148 = arith.mulf %147, %147 : vector<8x32xf32>
    %cst_63 = arith.constant dense<0.000000e+00> : vector<8xf32>
    %149 = vector.multi_reduction <add>, %148, %cst_63 [1] : vector<8x32xf32> to vector<8xf32>
    %150 = vector.shape_cast %149 : vector<8xf32> to vector<8x1xf32>
    %cst_64 = arith.constant 3.200000e+01 : f32
    %151 = vector.broadcast %cst_64 : f32 to vector<8x1xf32>
    %152 = arith.divf %150, %151 : vector<8x1xf32>
    %153 = vector.broadcast %145 : vector<8x1xf32> to vector<8x32xf32>
    %154 = arith.subf %137, %153 : vector<8x32xf32>
    %cst_65 = arith.constant 9.99999974E-6 : f32
    %155 = vector.broadcast %cst_65 : f32 to vector<8x1xf32>
    %156 = arith.addf %152, %155 : vector<8x1xf32>
    %157 = math.rsqrt %156 : vector<8x1xf32>
    %158 = vector.broadcast %157 : vector<8x1xf32> to vector<8x32xf32>
    %159 = arith.mulf %154, %158 : vector<8x32xf32>
    %160 = vector.broadcast %139 : vector<1x32xf32> to vector<8x32xf32>
    %161 = arith.mulf %159, %160 : vector<8x32xf32>
    %162 = vector.broadcast %141 : vector<1x32xf32> to vector<8x32xf32>
    %163 = arith.addf %161, %162 : vector<8x32xf32>
    %c0_66 = arith.constant 0 : index
    %c0_67 = arith.constant 0 : index
    %c0_68 = arith.constant 0 : index
    %164 = vector.load %arg13[%c0_66, %c0_67, %c0_68] : memref<3x32x128xf32, #tpu.memory_space<vmem>>, vector<1x32x128xf32>
    %165 = vector.shape_cast %164 : vector<1x32x128xf32> to vector<32x128xf32>
    %cst_69 = arith.constant dense<0.000000e+00> : vector<8x128xf32>
    %166 = tpu.matmul %163, %165, %cst_69 {dimension_numbers = #tpu.dot_dimension_numbers<[1], [0], [0], [1], [0, 0, 1, 1], [], []>} : vector<8x32xf32>, vector<32x128xf32>, vector<8x128xf32> -> vector<8x128xf32>
    %c0_70 = arith.constant 0 : index
    %c0_71 = arith.constant 0 : index
    %c0_72 = arith.constant 0 : index
    %167 = vector.load %arg14[%c0_70, %c0_71, %c0_72] : memref<3x1x128xf32, #tpu.memory_space<vmem>>, vector<1x1x128xf32>
    %168 = vector.shape_cast %167 : vector<1x1x128xf32> to vector<1x128xf32>
    %169 = vector.broadcast %168 : vector<1x128xf32> to vector<8x128xf32>
    %170 = arith.addf %166, %169 : vector<8x128xf32>
    %cst_73 = arith.constant 1.702000e+00 : f32
    %171 = vector.broadcast %cst_73 : f32 to vector<8x128xf32>
    %172 = arith.mulf %171, %170 : vector<8x128xf32>
    %173 = arith.negf %172 : vector<8x128xf32>
    %174 = math.exp %173 : vector<8x128xf32>
    %cst_74 = arith.constant 1.000000e+00 : f32
    %175 = vector.broadcast %cst_74 : f32 to vector<8x128xf32>
    %176 = arith.addf %175, %174 : vector<8x128xf32>
    %177 = arith.divf %175, %176 : vector<8x128xf32>
    %178 = arith.mulf %170, %177 : vector<8x128xf32>
    %c0_75 = arith.constant 0 : index
    %c0_76 = arith.constant 0 : index
    %c0_77 = arith.constant 0 : index
    %179 = vector.load %arg15[%c0_75, %c0_76, %c0_77] : memref<3x128x32xf32, #tpu.memory_space<vmem>>, vector<1x128x32xf32>
    %180 = vector.shape_cast %179 : vector<1x128x32xf32> to vector<128x32xf32>
    %cst_78 = arith.constant dense<0.000000e+00> : vector<8x32xf32>
    %181 = tpu.matmul %178, %180, %cst_78 {dimension_numbers = #tpu.dot_dimension_numbers<[1], [0], [0], [1], [0, 0, 1, 1], [], []>} : vector<8x128xf32>, vector<128x32xf32>, vector<8x32xf32> -> vector<8x32xf32>
    %182 = arith.addf %137, %181 : vector<8x32xf32>
    %c0_79 = arith.constant 0 : index
    %c0_80 = arith.constant 0 : index
    %c0_81 = arith.constant 0 : index
    %183 = vector.load %arg16[%c0_79, %c0_80, %c0_81] : memref<3x1x32xf32, #tpu.memory_space<vmem>>, vector<1x1x32xf32>
    %184 = vector.shape_cast %183 : vector<1x1x32xf32> to vector<1x32xf32>
    %185 = vector.broadcast %184 : vector<1x32xf32> to vector<8x32xf32>
    %186 = arith.addf %182, %185 : vector<8x32xf32>
    %c0_82 = arith.constant 0 : index
    %c0_83 = arith.constant 0 : index
    %c0_84 = arith.constant 0 : index
    %187 = vector.load %arg4[%c0_82, %c0_83, %c0_84] : memref<2x2x32xf32, #tpu.memory_space<vmem>>, vector<1x2x32xf32>
    %188 = vector.shape_cast %187 : vector<1x2x32xf32> to vector<2x32xf32>
    %cst_85 = arith.constant dense<0.000000e+00> : vector<8x32xf32>
    %189 = tpu.matmul %22, %188, %cst_85 {dimension_numbers = #tpu.dot_dimension_numbers<[1], [0], [0], [1], [0, 0, 1, 1], [], []>} : vector<8x2xf32>, vector<2x32xf32>, vector<8x32xf32> -> vector<8x32xf32>
    %190 = arith.select %15, %189, %186 : vector<8x32xi1>, vector<8x32xf32>
    %c1 = arith.constant 1 : index
    %c0_86 = arith.constant 0 : index
    %c0_87 = arith.constant 0 : index
    %191 = vector.load %arg5[%c1, %c0_86, %c0_87] : memref<3x1x32xf32, #tpu.memory_space<vmem>>, vector<1x1x32xf32>
    %192 = vector.shape_cast %191 : vector<1x1x32xf32> to vector<1x32xf32>
    %c1_88 = arith.constant 1 : index
    %c0_89 = arith.constant 0 : index
    %c0_90 = arith.constant 0 : index
    %193 = vector.load %arg6[%c1_88, %c0_89, %c0_90] : memref<3x1x32xf32, #tpu.memory_space<vmem>>, vector<1x1x32xf32>
    %194 = vector.shape_cast %193 : vector<1x1x32xf32> to vector<1x32xf32>
    %cst_91 = arith.constant dense<0.000000e+00> : vector<8xf32>
    %195 = vector.multi_reduction <add>, %190, %cst_91 [1] : vector<8x32xf32> to vector<8xf32>
    %196 = vector.shape_cast %195 : vector<8xf32> to vector<8x1xf32>
    %cst_92 = arith.constant 3.200000e+01 : f32
    %197 = vector.broadcast %cst_92 : f32 to vector<8x1xf32>
    %198 = arith.divf %196, %197 : vector<8x1xf32>
    %199 = vector.broadcast %198 : vector<8x1xf32> to vector<8x32xf32>
    %200 = arith.subf %190, %199 : vector<8x32xf32>
    %201 = arith.mulf %200, %200 : vector<8x32xf32>
    %cst_93 = arith.constant dense<0.000000e+00> : vector<8xf32>
    %202 = vector.multi_reduction <add>, %201, %cst_93 [1] : vector<8x32xf32> to vector<8xf32>
    %203 = vector.shape_cast %202 : vector<8xf32> to vector<8x1xf32>
    %cst_94 = arith.constant 3.200000e+01 : f32
    %204 = vector.broadcast %cst_94 : f32 to vector<8x1xf32>
    %205 = arith.divf %203, %204 : vector<8x1xf32>
    %206 = vector.broadcast %198 : vector<8x1xf32> to vector<8x32xf32>
    %207 = arith.subf %190, %206 : vector<8x32xf32>
    %cst_95 = arith.constant 9.99999974E-6 : f32
    %208 = vector.broadcast %cst_95 : f32 to vector<8x1xf32>
    %209 = arith.addf %205, %208 : vector<8x1xf32>
    %210 = math.rsqrt %209 : vector<8x1xf32>
    %211 = vector.broadcast %210 : vector<8x1xf32> to vector<8x32xf32>
    %212 = arith.mulf %207, %211 : vector<8x32xf32>
    %213 = vector.broadcast %192 : vector<1x32xf32> to vector<8x32xf32>
    %214 = arith.mulf %212, %213 : vector<8x32xf32>
    %215 = vector.broadcast %194 : vector<1x32xf32> to vector<8x32xf32>
    %216 = arith.addf %214, %215 : vector<8x32xf32>
    %c1_96 = arith.constant 1 : index
    %c0_97 = arith.constant 0 : index
    %c0_98 = arith.constant 0 : index
    %217 = vector.load %arg7[%c1_96, %c0_97, %c0_98] : memref<3x32x96xf32, #tpu.memory_space<vmem>>, vector<1x32x96xf32>
    %218 = vector.shape_cast %217 : vector<1x32x96xf32> to vector<32x96xf32>
    %cst_99 = arith.constant dense<0.000000e+00> : vector<8x96xf32>
    %219 = tpu.matmul %216, %218, %cst_99 {dimension_numbers = #tpu.dot_dimension_numbers<[1], [0], [0], [1], [0, 0, 1, 1], [], []>} : vector<8x32xf32>, vector<32x96xf32>, vector<8x96xf32> -> vector<8x96xf32>
    %c1_100 = arith.constant 1 : index
    %c0_101 = arith.constant 0 : index
    %c0_102 = arith.constant 0 : index
    %220 = vector.load %arg8[%c1_100, %c0_101, %c0_102] : memref<3x1x96xf32, #tpu.memory_space<vmem>>, vector<1x1x96xf32>
    %221 = vector.shape_cast %220 : vector<1x1x96xf32> to vector<1x96xf32>
    %222 = vector.broadcast %221 : vector<1x96xf32> to vector<8x96xf32>
    %223 = arith.addf %219, %222 : vector<8x96xf32>
    %224 = vector.extract_strided_slice %223 {offsets = [0, 0], sizes = [8, 32], strides = [1, 1]} : vector<8x96xf32> to vector<8x32xf32>
    %cst_103 = arith.constant 0.353553385 : f32
    %225 = vector.broadcast %cst_103 : f32 to vector<8x32xf32>
    %226 = arith.mulf %224, %225 : vector<8x32xf32>
    %227 = vector.extract_strided_slice %223 {offsets = [0, 32], sizes = [8, 32], strides = [1, 1]} : vector<8x96xf32> to vector<8x32xf32>
    %228 = vector.extract_strided_slice %223 {offsets = [0, 64], sizes = [8, 32], strides = [1, 1]} : vector<8x96xf32> to vector<8x32xf32>
    %229 = vector.extract_strided_slice %226 {offsets = [0, 0], sizes = [8, 8], strides = [1, 1]} : vector<8x32xf32> to vector<8x8xf32>
    %230 = vector.extract_strided_slice %227 {offsets = [0, 0], sizes = [8, 8], strides = [1, 1]} : vector<8x32xf32> to vector<8x8xf32>
    %cst_104 = arith.constant dense<0.000000e+00> : vector<8x8xf32>
    %231 = tpu.matmul %229, %230, %cst_104 {dimension_numbers = #tpu.dot_dimension_numbers<[1], [1], [0], [0], [0, 0, 1, 0], [], []>} : vector<8x8xf32>, vector<8x8xf32>, vector<8x8xf32> -> vector<8x8xf32>
    %232 = arith.addf %231, %9 : vector<8x8xf32>
    %cst_105 = arith.constant dense<0xFF800000> : vector<8xf32>
    %233 = vector.multi_reduction <maximumf>, %232, %cst_105 [1] : vector<8x8xf32> to vector<8xf32>
    %234 = vector.shape_cast %233 : vector<8xf32> to vector<8x1xf32>
    %235 = vector.broadcast %234 : vector<8x1xf32> to vector<8x8xf32>
    %236 = arith.subf %232, %235 : vector<8x8xf32>
    %237 = math.exp %236 : vector<8x8xf32>
    %cst_106 = arith.constant dense<0.000000e+00> : vector<8xf32>
    %238 = vector.multi_reduction <add>, %237, %cst_106 [1] : vector<8x8xf32> to vector<8xf32>
    %239 = vector.shape_cast %238 : vector<8xf32> to vector<8x1xf32>
    %240 = tpu.reciprocal %239 {approx = true} : vector<8x1xf32> -> vector<8x1xf32>
    %241 = vector.broadcast %240 : vector<8x1xf32> to vector<8x8xf32>
    %242 = arith.mulf %237, %241 : vector<8x8xf32>
    %243 = vector.extract_strided_slice %228 {offsets = [0, 0], sizes = [8, 8], strides = [1, 1]} : vector<8x32xf32> to vector<8x8xf32>
    %cst_107 = arith.constant dense<0.000000e+00> : vector<8x8xf32>
    %244 = tpu.matmul %242, %243, %cst_107 {dimension_numbers = #tpu.dot_dimension_numbers<[1], [0], [0], [1], [0, 0, 1, 1], [], []>} : vector<8x8xf32>, vector<8x8xf32>, vector<8x8xf32> -> vector<8x8xf32>
    %c0_108 = arith.constant 0 : index
    %c0_109 = arith.constant 0 : index
    %245 = vector.load %arg22[%c0_108, %c0_109] : memref<8x32xf32, #tpu.memory_space<vmem>>, vector<8x8xf32>
    tpu.vector_store %arg22[%c0_108, %c0_109], %244 {strides = array<i32>} : memref<8x32xf32, #tpu.memory_space<vmem>>, vector<8x8xf32>,
    %246 = vector.extract_strided_slice %226 {offsets = [0, 8], sizes = [8, 8], strides = [1, 1]} : vector<8x32xf32> to vector<8x8xf32>
    %247 = vector.extract_strided_slice %227 {offsets = [0, 8], sizes = [8, 8], strides = [1, 1]} : vector<8x32xf32> to vector<8x8xf32>
    %cst_110 = arith.constant dense<0.000000e+00> : vector<8x8xf32>
    %248 = tpu.matmul %246, %247, %cst_110 {dimension_numbers = #tpu.dot_dimension_numbers<[1], [1], [0], [0], [0, 0, 1, 0], [], []>} : vector<8x8xf32>, vector<8x8xf32>, vector<8x8xf32> -> vector<8x8xf32>
    %249 = arith.addf %248, %9 : vector<8x8xf32>
    %cst_111 = arith.constant dense<0xFF800000> : vector<8xf32>
    %250 = vector.multi_reduction <maximumf>, %249, %cst_111 [1] : vector<8x8xf32> to vector<8xf32>
    %251 = vector.shape_cast %250 : vector<8xf32> to vector<8x1xf32>
    %252 = vector.broadcast %251 : vector<8x1xf32> to vector<8x8xf32>
    %253 = arith.subf %249, %252 : vector<8x8xf32>
    %254 = math.exp %253 : vector<8x8xf32>
    %cst_112 = arith.constant dense<0.000000e+00> : vector<8xf32>
    %255 = vector.multi_reduction <add>, %254, %cst_112 [1] : vector<8x8xf32> to vector<8xf32>
    %256 = vector.shape_cast %255 : vector<8xf32> to vector<8x1xf32>
    %257 = tpu.reciprocal %256 {approx = true} : vector<8x1xf32> -> vector<8x1xf32>
    %258 = vector.broadcast %257 : vector<8x1xf32> to vector<8x8xf32>
    %259 = arith.mulf %254, %258 : vector<8x8xf32>
    %260 = vector.extract_strided_slice %228 {offsets = [0, 8], sizes = [8, 8], strides = [1, 1]} : vector<8x32xf32> to vector<8x8xf32>
    %cst_113 = arith.constant dense<0.000000e+00> : vector<8x8xf32>
    %261 = tpu.matmul %259, %260, %cst_113 {dimension_numbers = #tpu.dot_dimension_numbers<[1], [0], [0], [1], [0, 0, 1, 1], [], []>} : vector<8x8xf32>, vector<8x8xf32>, vector<8x8xf32> -> vector<8x8xf32>
    %c0_114 = arith.constant 0 : index
    %c8_115 = arith.constant 8 : index
    %262 = vector.load %arg22[%c0_114, %c8_115] : memref<8x32xf32, #tpu.memory_space<vmem>>, vector<8x8xf32>
    tpu.vector_store %arg22[%c0_114, %c8_115], %261 {strides = array<i32>} : memref<8x32xf32, #tpu.memory_space<vmem>>, vector<8x8xf32>,
    %263 = vector.extract_strided_slice %226 {offsets = [0, 16], sizes = [8, 8], strides = [1, 1]} : vector<8x32xf32> to vector<8x8xf32>
    %264 = vector.extract_strided_slice %227 {offsets = [0, 16], sizes = [8, 8], strides = [1, 1]} : vector<8x32xf32> to vector<8x8xf32>
    %cst_116 = arith.constant dense<0.000000e+00> : vector<8x8xf32>
    %265 = tpu.matmul %263, %264, %cst_116 {dimension_numbers = #tpu.dot_dimension_numbers<[1], [1], [0], [0], [0, 0, 1, 0], [], []>} : vector<8x8xf32>, vector<8x8xf32>, vector<8x8xf32> -> vector<8x8xf32>
    %266 = arith.addf %265, %9 : vector<8x8xf32>
    %cst_117 = arith.constant dense<0xFF800000> : vector<8xf32>
    %267 = vector.multi_reduction <maximumf>, %266, %cst_117 [1] : vector<8x8xf32> to vector<8xf32>
    %268 = vector.shape_cast %267 : vector<8xf32> to vector<8x1xf32>
    %269 = vector.broadcast %268 : vector<8x1xf32> to vector<8x8xf32>
    %270 = arith.subf %266, %269 : vector<8x8xf32>
    %271 = math.exp %270 : vector<8x8xf32>
    %cst_118 = arith.constant dense<0.000000e+00> : vector<8xf32>
    %272 = vector.multi_reduction <add>, %271, %cst_118 [1] : vector<8x8xf32> to vector<8xf32>
    %273 = vector.shape_cast %272 : vector<8xf32> to vector<8x1xf32>
    %274 = tpu.reciprocal %273 {approx = true} : vector<8x1xf32> -> vector<8x1xf32>
    %275 = vector.broadcast %274 : vector<8x1xf32> to vector<8x8xf32>
    %276 = arith.mulf %271, %275 : vector<8x8xf32>
    %277 = vector.extract_strided_slice %228 {offsets = [0, 16], sizes = [8, 8], strides = [1, 1]} : vector<8x32xf32> to vector<8x8xf32>
    %cst_119 = arith.constant dense<0.000000e+00> : vector<8x8xf32>
    %278 = tpu.matmul %276, %277, %cst_119 {dimension_numbers = #tpu.dot_dimension_numbers<[1], [0], [0], [1], [0, 0, 1, 1], [], []>} : vector<8x8xf32>, vector<8x8xf32>, vector<8x8xf32> -> vector<8x8xf32>
    %c0_120 = arith.constant 0 : index
    %c16_121 = arith.constant 16 : index
    %279 = vector.load %arg22[%c0_120, %c16_121] : memref<8x32xf32, #tpu.memory_space<vmem>>, vector<8x8xf32>
    tpu.vector_store %arg22[%c0_120, %c16_121], %278 {strides = array<i32>} : memref<8x32xf32, #tpu.memory_space<vmem>>, vector<8x8xf32>,
    %280 = vector.extract_strided_slice %226 {offsets = [0, 24], sizes = [8, 8], strides = [1, 1]} : vector<8x32xf32> to vector<8x8xf32>
    %281 = vector.extract_strided_slice %227 {offsets = [0, 24], sizes = [8, 8], strides = [1, 1]} : vector<8x32xf32> to vector<8x8xf32>
    %cst_122 = arith.constant dense<0.000000e+00> : vector<8x8xf32>
    %282 = tpu.matmul %280, %281, %cst_122 {dimension_numbers = #tpu.dot_dimension_numbers<[1], [1], [0], [0], [0, 0, 1, 0], [], []>} : vector<8x8xf32>, vector<8x8xf32>, vector<8x8xf32> -> vector<8x8xf32>
    %283 = arith.addf %282, %9 : vector<8x8xf32>
    %cst_123 = arith.constant dense<0xFF800000> : vector<8xf32>
    %284 = vector.multi_reduction <maximumf>, %283, %cst_123 [1] : vector<8x8xf32> to vector<8xf32>
    %285 = vector.shape_cast %284 : vector<8xf32> to vector<8x1xf32>
    %286 = vector.broadcast %285 : vector<8x1xf32> to vector<8x8xf32>
    %287 = arith.subf %283, %286 : vector<8x8xf32>
    %288 = math.exp %287 : vector<8x8xf32>
    %cst_124 = arith.constant dense<0.000000e+00> : vector<8xf32>
    %289 = vector.multi_reduction <add>, %288, %cst_124 [1] : vector<8x8xf32> to vector<8xf32>
    %290 = vector.shape_cast %289 : vector<8xf32> to vector<8x1xf32>
    %291 = tpu.reciprocal %290 {approx = true} : vector<8x1xf32> -> vector<8x1xf32>
    %292 = vector.broadcast %291 : vector<8x1xf32> to vector<8x8xf32>
    %293 = arith.mulf %288, %292 : vector<8x8xf32>
    %294 = vector.extract_strided_slice %228 {offsets = [0, 24], sizes = [8, 8], strides = [1, 1]} : vector<8x32xf32> to vector<8x8xf32>
    %cst_125 = arith.constant dense<0.000000e+00> : vector<8x8xf32>
    %295 = tpu.matmul %293, %294, %cst_125 {dimension_numbers = #tpu.dot_dimension_numbers<[1], [0], [0], [1], [0, 0, 1, 1], [], []>} : vector<8x8xf32>, vector<8x8xf32>, vector<8x8xf32> -> vector<8x8xf32>
    %c0_126 = arith.constant 0 : index
    %c24_127 = arith.constant 24 : index
    %296 = vector.load %arg22[%c0_126, %c24_127] : memref<8x32xf32, #tpu.memory_space<vmem>>, vector<8x8xf32>
    tpu.vector_store %arg22[%c0_126, %c24_127], %295 {strides = array<i32>} : memref<8x32xf32, #tpu.memory_space<vmem>>, vector<8x8xf32>,
    %c0_128 = arith.constant 0 : index
    %c0_129 = arith.constant 0 : index
    %297 = vector.load %arg22[%c0_128, %c0_129] : memref<8x32xf32, #tpu.memory_space<vmem>>, vector<8x32xf32>
    %c1_130 = arith.constant 1 : index
    %c0_131 = arith.constant 0 : index
    %c0_132 = arith.constant 0 : index
    %298 = vector.load %arg9[%c1_130, %c0_131, %c0_132] : memref<3x32x32xf32, #tpu.memory_space<vmem>>, vector<1x32x32xf32>
    %299 = vector.shape_cast %298 : vector<1x32x32xf32> to vector<32x32xf32>
    %cst_133 = arith.constant dense<0.000000e+00> : vector<8x32xf32>
    %300 = tpu.matmul %297, %299, %cst_133 {dimension_numbers = #tpu.dot_dimension_numbers<[1], [0], [0], [1], [0, 0, 1, 1], [], []>} : vector<8x32xf32>, vector<32x32xf32>, vector<8x32xf32> -> vector<8x32xf32>
    %301 = arith.addf %190, %300 : vector<8x32xf32>
    %c1_134 = arith.constant 1 : index
    %c0_135 = arith.constant 0 : index
    %c0_136 = arith.constant 0 : index
    %302 = vector.load %arg10[%c1_134, %c0_135, %c0_136] : memref<3x1x32xf32, #tpu.memory_space<vmem>>, vector<1x1x32xf32>
    %303 = vector.shape_cast %302 : vector<1x1x32xf32> to vector<1x32xf32>
    %304 = vector.broadcast %303 : vector<1x32xf32> to vector<8x32xf32>
    %305 = arith.addf %301, %304 : vector<8x32xf32>
    %c1_137 = arith.constant 1 : index
    %c0_138 = arith.constant 0 : index
    %c0_139 = arith.constant 0 : index
    %306 = vector.load %arg11[%c1_137, %c0_138, %c0_139] : memref<3x1x32xf32, #tpu.memory_space<vmem>>, vector<1x1x32xf32>
    %307 = vector.shape_cast %306 : vector<1x1x32xf32> to vector<1x32xf32>
    %c1_140 = arith.constant 1 : index
    %c0_141 = arith.constant 0 : index
    %c0_142 = arith.constant 0 : index
    %308 = vector.load %arg12[%c1_140, %c0_141, %c0_142] : memref<3x1x32xf32, #tpu.memory_space<vmem>>, vector<1x1x32xf32>
    %309 = vector.shape_cast %308 : vector<1x1x32xf32> to vector<1x32xf32>
    %cst_143 = arith.constant dense<0.000000e+00> : vector<8xf32>
    %310 = vector.multi_reduction <add>, %305, %cst_143 [1] : vector<8x32xf32> to vector<8xf32>
    %311 = vector.shape_cast %310 : vector<8xf32> to vector<8x1xf32>
    %cst_144 = arith.constant 3.200000e+01 : f32
    %312 = vector.broadcast %cst_144 : f32 to vector<8x1xf32>
    %313 = arith.divf %311, %312 : vector<8x1xf32>
    %314 = vector.broadcast %313 : vector<8x1xf32> to vector<8x32xf32>
    %315 = arith.subf %305, %314 : vector<8x32xf32>
    %316 = arith.mulf %315, %315 : vector<8x32xf32>
    %cst_145 = arith.constant dense<0.000000e+00> : vector<8xf32>
    %317 = vector.multi_reduction <add>, %316, %cst_145 [1] : vector<8x32xf32> to vector<8xf32>
    %318 = vector.shape_cast %317 : vector<8xf32> to vector<8x1xf32>
    %cst_146 = arith.constant 3.200000e+01 : f32
    %319 = vector.broadcast %cst_146 : f32 to vector<8x1xf32>
    %320 = arith.divf %318, %319 : vector<8x1xf32>
    %321 = vector.broadcast %313 : vector<8x1xf32> to vector<8x32xf32>
    %322 = arith.subf %305, %321 : vector<8x32xf32>
    %cst_147 = arith.constant 9.99999974E-6 : f32
    %323 = vector.broadcast %cst_147 : f32 to vector<8x1xf32>
    %324 = arith.addf %320, %323 : vector<8x1xf32>
    %325 = math.rsqrt %324 : vector<8x1xf32>
    %326 = vector.broadcast %325 : vector<8x1xf32> to vector<8x32xf32>
    %327 = arith.mulf %322, %326 : vector<8x32xf32>
    %328 = vector.broadcast %307 : vector<1x32xf32> to vector<8x32xf32>
    %329 = arith.mulf %327, %328 : vector<8x32xf32>
    %330 = vector.broadcast %309 : vector<1x32xf32> to vector<8x32xf32>
    %331 = arith.addf %329, %330 : vector<8x32xf32>
    %c1_148 = arith.constant 1 : index
    %c0_149 = arith.constant 0 : index
    %c0_150 = arith.constant 0 : index
    %332 = vector.load %arg13[%c1_148, %c0_149, %c0_150] : memref<3x32x128xf32, #tpu.memory_space<vmem>>, vector<1x32x128xf32>
    %333 = vector.shape_cast %332 : vector<1x32x128xf32> to vector<32x128xf32>
    %cst_151 = arith.constant dense<0.000000e+00> : vector<8x128xf32>
    %334 = tpu.matmul %331, %333, %cst_151 {dimension_numbers = #tpu.dot_dimension_numbers<[1], [0], [0], [1], [0, 0, 1, 1], [], []>} : vector<8x32xf32>, vector<32x128xf32>, vector<8x128xf32> -> vector<8x128xf32>
    %c1_152 = arith.constant 1 : index
    %c0_153 = arith.constant 0 : index
    %c0_154 = arith.constant 0 : index
    %335 = vector.load %arg14[%c1_152, %c0_153, %c0_154] : memref<3x1x128xf32, #tpu.memory_space<vmem>>, vector<1x1x128xf32>
    %336 = vector.shape_cast %335 : vector<1x1x128xf32> to vector<1x128xf32>
    %337 = vector.broadcast %336 : vector<1x128xf32> to vector<8x128xf32>
    %338 = arith.addf %334, %337 : vector<8x128xf32>
    %cst_155 = arith.constant 1.702000e+00 : f32
    %339 = vector.broadcast %cst_155 : f32 to vector<8x128xf32>
    %340 = arith.mulf %339, %338 : vector<8x128xf32>
    %341 = arith.negf %340 : vector<8x128xf32>
    %342 = math.exp %341 : vector<8x128xf32>
    %cst_156 = arith.constant 1.000000e+00 : f32
    %343 = vector.broadcast %cst_156 : f32 to vector<8x128xf32>
    %344 = arith.addf %343, %342 : vector<8x128xf32>
    %345 = arith.divf %343, %344 : vector<8x128xf32>
    %346 = arith.mulf %338, %345 : vector<8x128xf32>
    %c1_157 = arith.constant 1 : index
    %c0_158 = arith.constant 0 : index
    %c0_159 = arith.constant 0 : index
    %347 = vector.load %arg15[%c1_157, %c0_158, %c0_159] : memref<3x128x32xf32, #tpu.memory_space<vmem>>, vector<1x128x32xf32>
    %348 = vector.shape_cast %347 : vector<1x128x32xf32> to vector<128x32xf32>
    %cst_160 = arith.constant dense<0.000000e+00> : vector<8x32xf32>
    %349 = tpu.matmul %346, %348, %cst_160 {dimension_numbers = #tpu.dot_dimension_numbers<[1], [0], [0], [1], [0, 0, 1, 1], [], []>} : vector<8x128xf32>, vector<128x32xf32>, vector<8x32xf32> -> vector<8x32xf32>
    %350 = arith.addf %305, %349 : vector<8x32xf32>
    %c1_161 = arith.constant 1 : index
    %c0_162 = arith.constant 0 : index
    %c0_163 = arith.constant 0 : index
    %351 = vector.load %arg16[%c1_161, %c0_162, %c0_163] : memref<3x1x32xf32, #tpu.memory_space<vmem>>, vector<1x1x32xf32>
    %352 = vector.shape_cast %351 : vector<1x1x32xf32> to vector<1x32xf32>
    %353 = vector.broadcast %352 : vector<1x32xf32> to vector<8x32xf32>
    %354 = arith.addf %350, %353 : vector<8x32xf32>
    %c1_164 = arith.constant 1 : index
    %c0_165 = arith.constant 0 : index
    %c0_166 = arith.constant 0 : index
    %355 = vector.load %arg4[%c1_164, %c0_165, %c0_166] : memref<2x2x32xf32, #tpu.memory_space<vmem>>, vector<1x2x32xf32>
    %356 = vector.shape_cast %355 : vector<1x2x32xf32> to vector<2x32xf32>
    %cst_167 = arith.constant dense<0.000000e+00> : vector<8x32xf32>
    %357 = tpu.matmul %22, %356, %cst_167 {dimension_numbers = #tpu.dot_dimension_numbers<[1], [0], [0], [1], [0, 0, 1, 1], [], []>} : vector<8x2xf32>, vector<2x32xf32>, vector<8x32xf32> -> vector<8x32xf32>
    %358 = arith.select %15, %357, %354 : vector<8x32xi1>, vector<8x32xf32>
    %c2 = arith.constant 2 : index
    %c0_168 = arith.constant 0 : index
    %c0_169 = arith.constant 0 : index
    %359 = vector.load %arg5[%c2, %c0_168, %c0_169] : memref<3x1x32xf32, #tpu.memory_space<vmem>>, vector<1x1x32xf32>
    %360 = vector.shape_cast %359 : vector<1x1x32xf32> to vector<1x32xf32>
    %c2_170 = arith.constant 2 : index
    %c0_171 = arith.constant 0 : index
    %c0_172 = arith.constant 0 : index
    %361 = vector.load %arg6[%c2_170, %c0_171, %c0_172] : memref<3x1x32xf32, #tpu.memory_space<vmem>>, vector<1x1x32xf32>
    %362 = vector.shape_cast %361 : vector<1x1x32xf32> to vector<1x32xf32>
    %cst_173 = arith.constant dense<0.000000e+00> : vector<8xf32>
    %363 = vector.multi_reduction <add>, %358, %cst_173 [1] : vector<8x32xf32> to vector<8xf32>
    %364 = vector.shape_cast %363 : vector<8xf32> to vector<8x1xf32>
    %cst_174 = arith.constant 3.200000e+01 : f32
    %365 = vector.broadcast %cst_174 : f32 to vector<8x1xf32>
    %366 = arith.divf %364, %365 : vector<8x1xf32>
    %367 = vector.broadcast %366 : vector<8x1xf32> to vector<8x32xf32>
    %368 = arith.subf %358, %367 : vector<8x32xf32>
    %369 = arith.mulf %368, %368 : vector<8x32xf32>
    %cst_175 = arith.constant dense<0.000000e+00> : vector<8xf32>
    %370 = vector.multi_reduction <add>, %369, %cst_175 [1] : vector<8x32xf32> to vector<8xf32>
    %371 = vector.shape_cast %370 : vector<8xf32> to vector<8x1xf32>
    %cst_176 = arith.constant 3.200000e+01 : f32
    %372 = vector.broadcast %cst_176 : f32 to vector<8x1xf32>
    %373 = arith.divf %371, %372 : vector<8x1xf32>
    %374 = vector.broadcast %366 : vector<8x1xf32> to vector<8x32xf32>
    %375 = arith.subf %358, %374 : vector<8x32xf32>
    %cst_177 = arith.constant 9.99999974E-6 : f32
    %376 = vector.broadcast %cst_177 : f32 to vector<8x1xf32>
    %377 = arith.addf %373, %376 : vector<8x1xf32>
    %378 = math.rsqrt %377 : vector<8x1xf32>
    %379 = vector.broadcast %378 : vector<8x1xf32> to vector<8x32xf32>
    %380 = arith.mulf %375, %379 : vector<8x32xf32>
    %381 = vector.broadcast %360 : vector<1x32xf32> to vector<8x32xf32>
    %382 = arith.mulf %380, %381 : vector<8x32xf32>
    %383 = vector.broadcast %362 : vector<1x32xf32> to vector<8x32xf32>
    %384 = arith.addf %382, %383 : vector<8x32xf32>
    %c2_178 = arith.constant 2 : index
    %c0_179 = arith.constant 0 : index
    %c0_180 = arith.constant 0 : index
    %385 = vector.load %arg7[%c2_178, %c0_179, %c0_180] : memref<3x32x96xf32, #tpu.memory_space<vmem>>, vector<1x32x96xf32>
    %386 = vector.shape_cast %385 : vector<1x32x96xf32> to vector<32x96xf32>
    %cst_181 = arith.constant dense<0.000000e+00> : vector<8x96xf32>
    %387 = tpu.matmul %384, %386, %cst_181 {dimension_numbers = #tpu.dot_dimension_numbers<[1], [0], [0], [1], [0, 0, 1, 1], [], []>} : vector<8x32xf32>, vector<32x96xf32>, vector<8x96xf32> -> vector<8x96xf32>
    %c2_182 = arith.constant 2 : index
    %c0_183 = arith.constant 0 : index
    %c0_184 = arith.constant 0 : index
    %388 = vector.load %arg8[%c2_182, %c0_183, %c0_184] : memref<3x1x96xf32, #tpu.memory_space<vmem>>, vector<1x1x96xf32>
    %389 = vector.shape_cast %388 : vector<1x1x96xf32> to vector<1x96xf32>
    %390 = vector.broadcast %389 : vector<1x96xf32> to vector<8x96xf32>
    %391 = arith.addf %387, %390 : vector<8x96xf32>
    %392 = vector.extract_strided_slice %391 {offsets = [0, 0], sizes = [8, 32], strides = [1, 1]} : vector<8x96xf32> to vector<8x32xf32>
    %cst_185 = arith.constant 0.353553385 : f32
    %393 = vector.broadcast %cst_185 : f32 to vector<8x32xf32>
    %394 = arith.mulf %392, %393 : vector<8x32xf32>
    %395 = vector.extract_strided_slice %391 {offsets = [0, 32], sizes = [8, 32], strides = [1, 1]} : vector<8x96xf32> to vector<8x32xf32>
    %396 = vector.extract_strided_slice %391 {offsets = [0, 64], sizes = [8, 32], strides = [1, 1]} : vector<8x96xf32> to vector<8x32xf32>
    %397 = vector.extract_strided_slice %394 {offsets = [0, 0], sizes = [8, 8], strides = [1, 1]} : vector<8x32xf32> to vector<8x8xf32>
    %398 = vector.extract_strided_slice %395 {offsets = [0, 0], sizes = [8, 8], strides = [1, 1]} : vector<8x32xf32> to vector<8x8xf32>
    %cst_186 = arith.constant dense<0.000000e+00> : vector<8x8xf32>
    %399 = tpu.matmul %397, %398, %cst_186 {dimension_numbers = #tpu.dot_dimension_numbers<[1], [1], [0], [0], [0, 0, 1, 0], [], []>} : vector<8x8xf32>, vector<8x8xf32>, vector<8x8xf32> -> vector<8x8xf32>
    %400 = arith.addf %399, %9 : vector<8x8xf32>
    %cst_187 = arith.constant dense<0xFF800000> : vector<8xf32>
    %401 = vector.multi_reduction <maximumf>, %400, %cst_187 [1] : vector<8x8xf32> to vector<8xf32>
    %402 = vector.shape_cast %401 : vector<8xf32> to vector<8x1xf32>
    %403 = vector.broadcast %402 : vector<8x1xf32> to vector<8x8xf32>
    %404 = arith.subf %400, %403 : vector<8x8xf32>
    %405 = math.exp %404 : vector<8x8xf32>
    %cst_188 = arith.constant dense<0.000000e+00> : vector<8xf32>
    %406 = vector.multi_reduction <add>, %405, %cst_188 [1] : vector<8x8xf32> to vector<8xf32>
    %407 = vector.shape_cast %406 : vector<8xf32> to vector<8x1xf32>
    %408 = tpu.reciprocal %407 {approx = true} : vector<8x1xf32> -> vector<8x1xf32>
    %409 = vector.broadcast %408 : vector<8x1xf32> to vector<8x8xf32>
    %410 = arith.mulf %405, %409 : vector<8x8xf32>
    %411 = vector.extract_strided_slice %396 {offsets = [0, 0], sizes = [8, 8], strides = [1, 1]} : vector<8x32xf32> to vector<8x8xf32>
    %cst_189 = arith.constant dense<0.000000e+00> : vector<8x8xf32>
    %412 = tpu.matmul %410, %411, %cst_189 {dimension_numbers = #tpu.dot_dimension_numbers<[1], [0], [0], [1], [0, 0, 1, 1], [], []>} : vector<8x8xf32>, vector<8x8xf32>, vector<8x8xf32> -> vector<8x8xf32>
    %c0_190 = arith.constant 0 : index
    %c0_191 = arith.constant 0 : index
    %413 = vector.load %arg22[%c0_190, %c0_191] : memref<8x32xf32, #tpu.memory_space<vmem>>, vector<8x8xf32>
    tpu.vector_store %arg22[%c0_190, %c0_191], %412 {strides = array<i32>} : memref<8x32xf32, #tpu.memory_space<vmem>>, vector<8x8xf32>,
    %414 = vector.extract_strided_slice %394 {offsets = [0, 8], sizes = [8, 8], strides = [1, 1]} : vector<8x32xf32> to vector<8x8xf32>
    %415 = vector.extract_strided_slice %395 {offsets = [0, 8], sizes = [8, 8], strides = [1, 1]} : vector<8x32xf32> to vector<8x8xf32>
    %cst_192 = arith.constant dense<0.000000e+00> : vector<8x8xf32>
    %416 = tpu.matmul %414, %415, %cst_192 {dimension_numbers = #tpu.dot_dimension_numbers<[1], [1], [0], [0], [0, 0, 1, 0], [], []>} : vector<8x8xf32>, vector<8x8xf32>, vector<8x8xf32> -> vector<8x8xf32>
    %417 = arith.addf %416, %9 : vector<8x8xf32>
    %cst_193 = arith.constant dense<0xFF800000> : vector<8xf32>
    %418 = vector.multi_reduction <maximumf>, %417, %cst_193 [1] : vector<8x8xf32> to vector<8xf32>
    %419 = vector.shape_cast %418 : vector<8xf32> to vector<8x1xf32>
    %420 = vector.broadcast %419 : vector<8x1xf32> to vector<8x8xf32>
    %421 = arith.subf %417, %420 : vector<8x8xf32>
    %422 = math.exp %421 : vector<8x8xf32>
    %cst_194 = arith.constant dense<0.000000e+00> : vector<8xf32>
    %423 = vector.multi_reduction <add>, %422, %cst_194 [1] : vector<8x8xf32> to vector<8xf32>
    %424 = vector.shape_cast %423 : vector<8xf32> to vector<8x1xf32>
    %425 = tpu.reciprocal %424 {approx = true} : vector<8x1xf32> -> vector<8x1xf32>
    %426 = vector.broadcast %425 : vector<8x1xf32> to vector<8x8xf32>
    %427 = arith.mulf %422, %426 : vector<8x8xf32>
    %428 = vector.extract_strided_slice %396 {offsets = [0, 8], sizes = [8, 8], strides = [1, 1]} : vector<8x32xf32> to vector<8x8xf32>
    %cst_195 = arith.constant dense<0.000000e+00> : vector<8x8xf32>
    %429 = tpu.matmul %427, %428, %cst_195 {dimension_numbers = #tpu.dot_dimension_numbers<[1], [0], [0], [1], [0, 0, 1, 1], [], []>} : vector<8x8xf32>, vector<8x8xf32>, vector<8x8xf32> -> vector<8x8xf32>
    %c0_196 = arith.constant 0 : index
    %c8_197 = arith.constant 8 : index
    %430 = vector.load %arg22[%c0_196, %c8_197] : memref<8x32xf32, #tpu.memory_space<vmem>>, vector<8x8xf32>
    tpu.vector_store %arg22[%c0_196, %c8_197], %429 {strides = array<i32>} : memref<8x32xf32, #tpu.memory_space<vmem>>, vector<8x8xf32>,
    %431 = vector.extract_strided_slice %394 {offsets = [0, 16], sizes = [8, 8], strides = [1, 1]} : vector<8x32xf32> to vector<8x8xf32>
    %432 = vector.extract_strided_slice %395 {offsets = [0, 16], sizes = [8, 8], strides = [1, 1]} : vector<8x32xf32> to vector<8x8xf32>
    %cst_198 = arith.constant dense<0.000000e+00> : vector<8x8xf32>
    %433 = tpu.matmul %431, %432, %cst_198 {dimension_numbers = #tpu.dot_dimension_numbers<[1], [1], [0], [0], [0, 0, 1, 0], [], []>} : vector<8x8xf32>, vector<8x8xf32>, vector<8x8xf32> -> vector<8x8xf32>
    %434 = arith.addf %433, %9 : vector<8x8xf32>
    %cst_199 = arith.constant dense<0xFF800000> : vector<8xf32>
    %435 = vector.multi_reduction <maximumf>, %434, %cst_199 [1] : vector<8x8xf32> to vector<8xf32>
    %436 = vector.shape_cast %435 : vector<8xf32> to vector<8x1xf32>
    %437 = vector.broadcast %436 : vector<8x1xf32> to vector<8x8xf32>
    %438 = arith.subf %434, %437 : vector<8x8xf32>
    %439 = math.exp %438 : vector<8x8xf32>
    %cst_200 = arith.constant dense<0.000000e+00> : vector<8xf32>
    %440 = vector.multi_reduction <add>, %439, %cst_200 [1] : vector<8x8xf32> to vector<8xf32>
    %441 = vector.shape_cast %440 : vector<8xf32> to vector<8x1xf32>
    %442 = tpu.reciprocal %441 {approx = true} : vector<8x1xf32> -> vector<8x1xf32>
    %443 = vector.broadcast %442 : vector<8x1xf32> to vector<8x8xf32>
    %444 = arith.mulf %439, %443 : vector<8x8xf32>
    %445 = vector.extract_strided_slice %396 {offsets = [0, 16], sizes = [8, 8], strides = [1, 1]} : vector<8x32xf32> to vector<8x8xf32>
    %cst_201 = arith.constant dense<0.000000e+00> : vector<8x8xf32>
    %446 = tpu.matmul %444, %445, %cst_201 {dimension_numbers = #tpu.dot_dimension_numbers<[1], [0], [0], [1], [0, 0, 1, 1], [], []>} : vector<8x8xf32>, vector<8x8xf32>, vector<8x8xf32> -> vector<8x8xf32>
    %c0_202 = arith.constant 0 : index
    %c16_203 = arith.constant 16 : index
    %447 = vector.load %arg22[%c0_202, %c16_203] : memref<8x32xf32, #tpu.memory_space<vmem>>, vector<8x8xf32>
    tpu.vector_store %arg22[%c0_202, %c16_203], %446 {strides = array<i32>} : memref<8x32xf32, #tpu.memory_space<vmem>>, vector<8x8xf32>,
    %448 = vector.extract_strided_slice %394 {offsets = [0, 24], sizes = [8, 8], strides = [1, 1]} : vector<8x32xf32> to vector<8x8xf32>
    %449 = vector.extract_strided_slice %395 {offsets = [0, 24], sizes = [8, 8], strides = [1, 1]} : vector<8x32xf32> to vector<8x8xf32>
    %cst_204 = arith.constant dense<0.000000e+00> : vector<8x8xf32>
    %450 = tpu.matmul %448, %449, %cst_204 {dimension_numbers = #tpu.dot_dimension_numbers<[1], [1], [0], [0], [0, 0, 1, 0], [], []>} : vector<8x8xf32>, vector<8x8xf32>, vector<8x8xf32> -> vector<8x8xf32>
    %451 = arith.addf %450, %9 : vector<8x8xf32>
    %cst_205 = arith.constant dense<0xFF800000> : vector<8xf32>
    %452 = vector.multi_reduction <maximumf>, %451, %cst_205 [1] : vector<8x8xf32> to vector<8xf32>
    %453 = vector.shape_cast %452 : vector<8xf32> to vector<8x1xf32>
    %454 = vector.broadcast %453 : vector<8x1xf32> to vector<8x8xf32>
    %455 = arith.subf %451, %454 : vector<8x8xf32>
    %456 = math.exp %455 : vector<8x8xf32>
    %cst_206 = arith.constant dense<0.000000e+00> : vector<8xf32>
    %457 = vector.multi_reduction <add>, %456, %cst_206 [1] : vector<8x8xf32> to vector<8xf32>
    %458 = vector.shape_cast %457 : vector<8xf32> to vector<8x1xf32>
    %459 = tpu.reciprocal %458 {approx = true} : vector<8x1xf32> -> vector<8x1xf32>
    %460 = vector.broadcast %459 : vector<8x1xf32> to vector<8x8xf32>
    %461 = arith.mulf %456, %460 : vector<8x8xf32>
    %462 = vector.extract_strided_slice %396 {offsets = [0, 24], sizes = [8, 8], strides = [1, 1]} : vector<8x32xf32> to vector<8x8xf32>
    %cst_207 = arith.constant dense<0.000000e+00> : vector<8x8xf32>
    %463 = tpu.matmul %461, %462, %cst_207 {dimension_numbers = #tpu.dot_dimension_numbers<[1], [0], [0], [1], [0, 0, 1, 1], [], []>} : vector<8x8xf32>, vector<8x8xf32>, vector<8x8xf32> -> vector<8x8xf32>
    %c0_208 = arith.constant 0 : index
    %c24_209 = arith.constant 24 : index
    %464 = vector.load %arg22[%c0_208, %c24_209] : memref<8x32xf32, #tpu.memory_space<vmem>>, vector<8x8xf32>
    tpu.vector_store %arg22[%c0_208, %c24_209], %463 {strides = array<i32>} : memref<8x32xf32, #tpu.memory_space<vmem>>, vector<8x8xf32>,
    %c0_210 = arith.constant 0 : index
    %c0_211 = arith.constant 0 : index
    %465 = vector.load %arg22[%c0_210, %c0_211] : memref<8x32xf32, #tpu.memory_space<vmem>>, vector<8x32xf32>
    %c2_212 = arith.constant 2 : index
    %c0_213 = arith.constant 0 : index
    %c0_214 = arith.constant 0 : index
    %466 = vector.load %arg9[%c2_212, %c0_213, %c0_214] : memref<3x32x32xf32, #tpu.memory_space<vmem>>, vector<1x32x32xf32>
    %467 = vector.shape_cast %466 : vector<1x32x32xf32> to vector<32x32xf32>
    %cst_215 = arith.constant dense<0.000000e+00> : vector<8x32xf32>
    %468 = tpu.matmul %465, %467, %cst_215 {dimension_numbers = #tpu.dot_dimension_numbers<[1], [0], [0], [1], [0, 0, 1, 1], [], []>} : vector<8x32xf32>, vector<32x32xf32>, vector<8x32xf32> -> vector<8x32xf32>
    %469 = arith.addf %358, %468 : vector<8x32xf32>
    %c2_216 = arith.constant 2 : index
    %c0_217 = arith.constant 0 : index
    %c0_218 = arith.constant 0 : index
    %470 = vector.load %arg10[%c2_216, %c0_217, %c0_218] : memref<3x1x32xf32, #tpu.memory_space<vmem>>, vector<1x1x32xf32>
    %471 = vector.shape_cast %470 : vector<1x1x32xf32> to vector<1x32xf32>
    %472 = vector.broadcast %471 : vector<1x32xf32> to vector<8x32xf32>
    %473 = arith.addf %469, %472 : vector<8x32xf32>
    %c2_219 = arith.constant 2 : index
    %c0_220 = arith.constant 0 : index
    %c0_221 = arith.constant 0 : index
    %474 = vector.load %arg11[%c2_219, %c0_220, %c0_221] : memref<3x1x32xf32, #tpu.memory_space<vmem>>, vector<1x1x32xf32>
    %475 = vector.shape_cast %474 : vector<1x1x32xf32> to vector<1x32xf32>
    %c2_222 = arith.constant 2 : index
    %c0_223 = arith.constant 0 : index
    %c0_224 = arith.constant 0 : index
    %476 = vector.load %arg12[%c2_222, %c0_223, %c0_224] : memref<3x1x32xf32, #tpu.memory_space<vmem>>, vector<1x1x32xf32>
    %477 = vector.shape_cast %476 : vector<1x1x32xf32> to vector<1x32xf32>
    %cst_225 = arith.constant dense<0.000000e+00> : vector<8xf32>
    %478 = vector.multi_reduction <add>, %473, %cst_225 [1] : vector<8x32xf32> to vector<8xf32>
    %479 = vector.shape_cast %478 : vector<8xf32> to vector<8x1xf32>
    %cst_226 = arith.constant 3.200000e+01 : f32
    %480 = vector.broadcast %cst_226 : f32 to vector<8x1xf32>
    %481 = arith.divf %479, %480 : vector<8x1xf32>
    %482 = vector.broadcast %481 : vector<8x1xf32> to vector<8x32xf32>
    %483 = arith.subf %473, %482 : vector<8x32xf32>
    %484 = arith.mulf %483, %483 : vector<8x32xf32>
    %cst_227 = arith.constant dense<0.000000e+00> : vector<8xf32>
    %485 = vector.multi_reduction <add>, %484, %cst_227 [1] : vector<8x32xf32> to vector<8xf32>
    %486 = vector.shape_cast %485 : vector<8xf32> to vector<8x1xf32>
    %cst_228 = arith.constant 3.200000e+01 : f32
    %487 = vector.broadcast %cst_228 : f32 to vector<8x1xf32>
    %488 = arith.divf %486, %487 : vector<8x1xf32>
    %489 = vector.broadcast %481 : vector<8x1xf32> to vector<8x32xf32>
    %490 = arith.subf %473, %489 : vector<8x32xf32>
    %cst_229 = arith.constant 9.99999974E-6 : f32
    %491 = vector.broadcast %cst_229 : f32 to vector<8x1xf32>
    %492 = arith.addf %488, %491 : vector<8x1xf32>
    %493 = math.rsqrt %492 : vector<8x1xf32>
    %494 = vector.broadcast %493 : vector<8x1xf32> to vector<8x32xf32>
    %495 = arith.mulf %490, %494 : vector<8x32xf32>
    %496 = vector.broadcast %475 : vector<1x32xf32> to vector<8x32xf32>
    %497 = arith.mulf %495, %496 : vector<8x32xf32>
    %498 = vector.broadcast %477 : vector<1x32xf32> to vector<8x32xf32>
    %499 = arith.addf %497, %498 : vector<8x32xf32>
    %c2_230 = arith.constant 2 : index
    %c0_231 = arith.constant 0 : index
    %c0_232 = arith.constant 0 : index
    %500 = vector.load %arg13[%c2_230, %c0_231, %c0_232] : memref<3x32x128xf32, #tpu.memory_space<vmem>>, vector<1x32x128xf32>
    %501 = vector.shape_cast %500 : vector<1x32x128xf32> to vector<32x128xf32>
    %cst_233 = arith.constant dense<0.000000e+00> : vector<8x128xf32>
    %502 = tpu.matmul %499, %501, %cst_233 {dimension_numbers = #tpu.dot_dimension_numbers<[1], [0], [0], [1], [0, 0, 1, 1], [], []>} : vector<8x32xf32>, vector<32x128xf32>, vector<8x128xf32> -> vector<8x128xf32>
    %c2_234 = arith.constant 2 : index
    %c0_235 = arith.constant 0 : index
    %c0_236 = arith.constant 0 : index
    %503 = vector.load %arg14[%c2_234, %c0_235, %c0_236] : memref<3x1x128xf32, #tpu.memory_space<vmem>>, vector<1x1x128xf32>
    %504 = vector.shape_cast %503 : vector<1x1x128xf32> to vector<1x128xf32>
    %505 = vector.broadcast %504 : vector<1x128xf32> to vector<8x128xf32>
    %506 = arith.addf %502, %505 : vector<8x128xf32>
    %cst_237 = arith.constant 1.702000e+00 : f32
    %507 = vector.broadcast %cst_237 : f32 to vector<8x128xf32>
    %508 = arith.mulf %507, %506 : vector<8x128xf32>
    %509 = arith.negf %508 : vector<8x128xf32>
    %510 = math.exp %509 : vector<8x128xf32>
    %cst_238 = arith.constant 1.000000e+00 : f32
    %511 = vector.broadcast %cst_238 : f32 to vector<8x128xf32>
    %512 = arith.addf %511, %510 : vector<8x128xf32>
    %513 = arith.divf %511, %512 : vector<8x128xf32>
    %514 = arith.mulf %506, %513 : vector<8x128xf32>
    %c2_239 = arith.constant 2 : index
    %c0_240 = arith.constant 0 : index
    %c0_241 = arith.constant 0 : index
    %515 = vector.load %arg15[%c2_239, %c0_240, %c0_241] : memref<3x128x32xf32, #tpu.memory_space<vmem>>, vector<1x128x32xf32>
    %516 = vector.shape_cast %515 : vector<1x128x32xf32> to vector<128x32xf32>
    %cst_242 = arith.constant dense<0.000000e+00> : vector<8x32xf32>
    %517 = tpu.matmul %514, %516, %cst_242 {dimension_numbers = #tpu.dot_dimension_numbers<[1], [0], [0], [1], [0, 0, 1, 1], [], []>} : vector<8x128xf32>, vector<128x32xf32>, vector<8x32xf32> -> vector<8x32xf32>
    %518 = arith.addf %473, %517 : vector<8x32xf32>
    %c2_243 = arith.constant 2 : index
    %c0_244 = arith.constant 0 : index
    %c0_245 = arith.constant 0 : index
    %519 = vector.load %arg16[%c2_243, %c0_244, %c0_245] : memref<3x1x32xf32, #tpu.memory_space<vmem>>, vector<1x1x32xf32>
    %520 = vector.shape_cast %519 : vector<1x1x32xf32> to vector<1x32xf32>
    %521 = vector.broadcast %520 : vector<1x32xf32> to vector<8x32xf32>
    %522 = arith.addf %518, %521 : vector<8x32xf32>
    %c0_246 = arith.constant 0 : index
    %c0_247 = arith.constant 0 : index
    %523 = vector.load %arg22[%c0_246, %c0_247] : memref<8x32xf32, #tpu.memory_space<vmem>>, vector<8x32xf32>
    tpu.vector_store %arg22[%c0_246, %c0_247], %522 {strides = array<i32>} : memref<8x32xf32, #tpu.memory_space<vmem>>, vector<8x32xf32>,
    %524 = arith.index_cast %arg0 : i32 to index
    %525 = memref.load %arg1[%524] : memref<2xi32, #tpu.memory_space<smem>>
    %526 = arith.index_cast %525 : i32 to index
    %c0_248 = arith.constant 0 : index
    %527 = vector.load %arg22[%526, %c0_248] : memref<8x32xf32, #tpu.memory_space<vmem>>, vector<1x32xf32>
    %c0_249 = arith.constant 0 : index
    %c0_250 = arith.constant 0 : index
    %c0_251 = arith.constant 0 : index
    %528 = vector.load %arg21[%c0_249, %c0_250, %c0_251] : memref<1x1x32xf32, #tpu.memory_space<vmem>>, vector<1x1x32xf32>
    %529 = vector.shape_cast %528 : vector<1x1x32xf32> to vector<1x32xf32>
    %530 = vector.shape_cast %527 : vector<1x32xf32> to vector<1x1x32xf32>
    tpu.vector_store %arg21[%c0_249, %c0_250, %c0_251], %530 {strides = array<i32>} : memref<1x1x32xf32, #tpu.memory_space<vmem>>, vector<1x1x32xf32>,
    %c0_252 = arith.constant 0 : index
    %c0_253 = arith.constant 0 : index
    %531 = vector.load %arg17[%c0_252, %c0_253] : memref<1x32xf32, #tpu.memory_space<vmem>>, vector<1x32xf32>
    %c0_254 = arith.constant 0 : index
    %c0_255 = arith.constant 0 : index
    %532 = vector.load %arg18[%c0_254, %c0_255] : memref<1x32xf32, #tpu.memory_space<vmem>>, vector<1x32xf32>
    %cst_256 = arith.constant dense<0.000000e+00> : vector<1xf32>
    %533 = vector.multi_reduction <add>, %527, %cst_256 [1] : vector<1x32xf32> to vector<1xf32>
    %534 = vector.shape_cast %533 : vector<1xf32> to vector<1x1xf32>
    %cst_257 = arith.constant 3.200000e+01 : f32
    %535 = vector.broadcast %cst_257 : f32 to vector<1x1xf32>
    %536 = arith.divf %534, %535 : vector<1x1xf32>
    %537 = vector.broadcast %536 : vector<1x1xf32> to vector<1x32xf32>
    %538 = arith.subf %527, %537 : vector<1x32xf32>
    %539 = arith.mulf %538, %538 : vector<1x32xf32>
    %cst_258 = arith.constant dense<0.000000e+00> : vector<1xf32>
    %540 = vector.multi_reduction <add>, %539, %cst_258 [1] : vector<1x32xf32> to vector<1xf32>
    %541 = vector.shape_cast %540 : vector<1xf32> to vector<1x1xf32>
    %cst_259 = arith.constant 3.200000e+01 : f32
    %542 = vector.broadcast %cst_259 : f32 to vector<1x1xf32>
    %543 = arith.divf %541, %542 : vector<1x1xf32>
    %544 = vector.broadcast %536 : vector<1x1xf32> to vector<1x32xf32>
    %545 = arith.subf %527, %544 : vector<1x32xf32>
    %cst_260 = arith.constant 9.99999974E-6 : f32
    %546 = vector.broadcast %cst_260 : f32 to vector<1x1xf32>
    %547 = arith.addf %543, %546 : vector<1x1xf32>
    %548 = math.rsqrt %547 : vector<1x1xf32>
    %549 = vector.broadcast %548 : vector<1x1xf32> to vector<1x32xf32>
    %550 = arith.mulf %545, %549 : vector<1x32xf32>
    %551 = arith.mulf %550, %531 : vector<1x32xf32>
    %552 = arith.addf %551, %532 : vector<1x32xf32>
    %c0_261 = arith.constant 0 : index
    %c0_262 = arith.constant 0 : index
    %553 = vector.load %arg19[%c0_261, %c0_262] : memref<32x16xf32, #tpu.memory_space<vmem>>, vector<32x16xf32>
    %cst_263 = arith.constant dense<0.000000e+00> : vector<1x16xf32>
    %554 = tpu.matmul %552, %553, %cst_263 {dimension_numbers = #tpu.dot_dimension_numbers<[1], [0], [0], [1], [0, 0, 1, 1], [], []>} : vector<1x32xf32>, vector<32x16xf32>, vector<1x16xf32> -> vector<1x16xf32>
    %c0_264 = arith.constant 0 : index
    %c0_265 = arith.constant 0 : index
    %c0_266 = arith.constant 0 : index
    %555 = vector.load %arg20[%c0_264, %c0_265, %c0_266] : memref<1x1x16xf32, #tpu.memory_space<vmem>>, vector<1x1x16xf32>
    %556 = vector.shape_cast %555 : vector<1x1x16xf32> to vector<1x16xf32>
    %557 = vector.shape_cast %554 : vector<1x16xf32> to vector<1x1x16xf32>
    tpu.vector_store %arg20[%c0_264, %c0_265, %c0_266], %557 {strides = array<i32>} : memref<1x1x16xf32, #tpu.memory_space<vmem>>, vector<1x1x16xf32>,
    return
  }
  func.func @transform_0(%arg0: i32, %arg1: memref<2xi32, #tpu.memory_space<smem>>) -> (i32, i32, i32) {
    %c0_i32 = arith.constant 0 : i32
    %c0_i32_0 = arith.constant 0 : i32
    %c0_i32_1 = arith.constant 0 : i32
    return %arg0, %c0_i32, %c0_i32_0 : i32, i32, i32
  }
  func.func @transform_1(%arg0: i32, %arg1: memref<2xi32, #tpu.memory_space<smem>>) -> (i32, i32) {
    %c0_i32 = arith.constant 0 : i32
    %c0_i32_0 = arith.constant 0 : i32
    %c0_i32_1 = arith.constant 0 : i32
    return %c0_i32, %c0_i32_0 : i32, i32
  }
  func.func @transform_2(%arg0: i32, %arg1: memref<2xi32, #tpu.memory_space<smem>>) -> (i32, i32, i32) {
    %c0_i32 = arith.constant 0 : i32
    %c0_i32_0 = arith.constant 0 : i32
    %c0_i32_1 = arith.constant 0 : i32
    %c0_i32_2 = arith.constant 0 : i32
    return %c0_i32, %c0_i32_0, %c0_i32_1 : i32, i32, i32
  }
  func.func @transform_3(%arg0: i32, %arg1: memref<2xi32, #tpu.memory_space<smem>>) -> (i32, i32, i32) {
    %c0_i32 = arith.constant 0 : i32
    %c0_i32_0 = arith.constant 0 : i32
    %c0_i32_1 = arith.constant 0 : i32
    %c0_i32_2 = arith.constant 0 : i32
    return %c0_i32, %c0_i32_0, %c0_i32_1 : i32, i32, i32
  }
  func.func @transform_4(%arg0: i32, %arg1: memref<2xi32, #tpu.memory_space<smem>>) -> (i32, i32, i32) {
    %c0_i32 = arith.constant 0 : i32
    %c0_i32_0 = arith.constant 0 : i32
    %c0_i32_1 = arith.constant 0 : i32
    %c0_i32_2 = arith.constant 0 : i32
    return %c0_i32, %c0_i32_0, %c0_i32_1 : i32, i32, i32
  }
  func.func @transform_5(%arg0: i32, %arg1: memref<2xi32, #tpu.memory_space<smem>>) -> (i32, i32, i32) {
    %c0_i32 = arith.constant 0 : i32
    %c0_i32_0 = arith.constant 0 : i32
    %c0_i32_1 = arith.constant 0 : i32
    %c0_i32_2 = arith.constant 0 : i32
    return %c0_i32, %c0_i32_0, %c0_i32_1 : i32, i32, i32
  }
  func.func @transform_6(%arg0: i32, %arg1: memref<2xi32, #tpu.memory_space<smem>>) -> (i32, i32, i32) {
    %c0_i32 = arith.constant 0 : i32
    %c0_i32_0 = arith.constant 0 : i32
    %c0_i32_1 = arith.constant 0 : i32
    %c0_i32_2 = arith.constant 0 : i32
    return %c0_i32, %c0_i32_0, %c0_i32_1 : i32, i32, i32
  }
  func.func @transform_7(%arg0: i32, %arg1: memref<2xi32, #tpu.memory_space<smem>>) -> (i32, i32, i32) {
    %c0_i32 = arith.constant 0 : i32
    %c0_i32_0 = arith.constant 0 : i32
    %c0_i32_1 = arith.constant 0 : i32
    %c0_i32_2 = arith.constant 0 : i32
    return %c0_i32, %c0_i32_0, %c0_i32_1 : i32, i32, i32
  }
  func.func @transform_8(%arg0: i32, %arg1: memref<2xi32, #tpu.memory_space<smem>>) -> (i32, i32, i32) {
    %c0_i32 = arith.constant 0 : i32
    %c0_i32_0 = arith.constant 0 : i32
    %c0_i32_1 = arith.constant 0 : i32
    %c0_i32_2 = arith.constant 0 : i32
    return %c0_i32, %c0_i32_0, %c0_i32_1 : i32, i32, i32
  }
  func.func @transform_9(%arg0: i32, %arg1: memref<2xi32, #tpu.memory_space<smem>>) -> (i32, i32, i32) {
    %c0_i32 = arith.constant 0 : i32
    %c0_i32_0 = arith.constant 0 : i32
    %c0_i32_1 = arith.constant 0 : i32
    %c0_i32_2 = arith.constant 0 : i32
    return %c0_i32, %c0_i32_0, %c0_i32_1 : i32, i32, i32
  }
  func.func @transform_10(%arg0: i32, %arg1: memref<2xi32, #tpu.memory_space<smem>>) -> (i32, i32, i32) {
    %c0_i32 = arith.constant 0 : i32
    %c0_i32_0 = arith.constant 0 : i32
    %c0_i32_1 = arith.constant 0 : i32
    %c0_i32_2 = arith.constant 0 : i32
    return %c0_i32, %c0_i32_0, %c0_i32_1 : i32, i32, i32
  }
  func.func @transform_11(%arg0: i32, %arg1: memref<2xi32, #tpu.memory_space<smem>>) -> (i32, i32, i32) {
    %c0_i32 = arith.constant 0 : i32
    %c0_i32_0 = arith.constant 0 : i32
    %c0_i32_1 = arith.constant 0 : i32
    %c0_i32_2 = arith.constant 0 : i32
    return %c0_i32, %c0_i32_0, %c0_i32_1 : i32, i32, i32
  }
  func.func @transform_12(%arg0: i32, %arg1: memref<2xi32, #tpu.memory_space<smem>>) -> (i32, i32, i32) {
    %c0_i32 = arith.constant 0 : i32
    %c0_i32_0 = arith.constant 0 : i32
    %c0_i32_1 = arith.constant 0 : i32
    %c0_i32_2 = arith.constant 0 : i32
    return %c0_i32, %c0_i32_0, %c0_i32_1 : i32, i32, i32
  }
  func.func @transform_13(%arg0: i32, %arg1: memref<2xi32, #tpu.memory_space<smem>>) -> (i32, i32, i32) {
    %c0_i32 = arith.constant 0 : i32
    %c0_i32_0 = arith.constant 0 : i32
    %c0_i32_1 = arith.constant 0 : i32
    %c0_i32_2 = arith.constant 0 : i32
    return %c0_i32, %c0_i32_0, %c0_i32_1 : i32, i32, i32
  }
  func.func @transform_14(%arg0: i32, %arg1: memref<2xi32, #tpu.memory_space<smem>>) -> (i32, i32, i32) {
    %c0_i32 = arith.constant 0 : i32
    %c0_i32_0 = arith.constant 0 : i32
    %c0_i32_1 = arith.constant 0 : i32
    %c0_i32_2 = arith.constant 0 : i32
    return %c0_i32, %c0_i32_0, %c0_i32_1 : i32, i32, i32
  }
  func.func @transform_15(%arg0: i32, %arg1: memref<2xi32, #tpu.memory_space<smem>>) -> (i32, i32) {
    %c0_i32 = arith.constant 0 : i32
    %c0_i32_0 = arith.constant 0 : i32
    %c0_i32_1 = arith.constant 0 : i32
    return %c0_i32, %c0_i32_0 : i32, i32
  }
  func.func @transform_16(%arg0: i32, %arg1: memref<2xi32, #tpu.memory_space<smem>>) -> (i32, i32) {
    %c0_i32 = arith.constant 0 : i32
    %c0_i32_0 = arith.constant 0 : i32
    %c0_i32_1 = arith.constant 0 : i32
    return %c0_i32, %c0_i32_0 : i32, i32
  }
  func.func @transform_17(%arg0: i32, %arg1: memref<2xi32, #tpu.memory_space<smem>>) -> (i32, i32) {
    %c0_i32 = arith.constant 0 : i32
    %c0_i32_0 = arith.constant 0 : i32
    %c0_i32_1 = arith.constant 0 : i32
    return %c0_i32, %c0_i32_0 : i32, i32
  }
  func.func @transform_18(%arg0: i32, %arg1: memref<2xi32, #tpu.memory_space<smem>>) -> (i32, i32, i32) {
    %c0_i32 = arith.constant 0 : i32
    %c0_i32_0 = arith.constant 0 : i32
    %c0_i32_1 = arith.constant 0 : i32
    return %arg0, %c0_i32, %c0_i32_0 : i32, i32, i32
  }
  func.func @transform_19(%arg0: i32, %arg1: memref<2xi32, #tpu.memory_space<smem>>) -> (i32, i32, i32) {
    %c0_i32 = arith.constant 0 : i32
    %c0_i32_0 = arith.constant 0 : i32
    %c0_i32_1 = arith.constant 0 : i32
    return %arg0, %c0_i32, %c0_i32_0 : i32, i32, i32
  }
}

</mosaic_0001>

<bundles_post_ra>
// kernel: text_encoder_forward.1
= control target key start
LH: loop header
LB: loop body
LE: loop exit
PB: predicated region body
PF: predicated region fallthrough
CT: control target
= control target key end

     0   :  { %s2805_s24 = smov [#allocation4]   ;;  %s3648_s0 = inlined_call_operand.vmem [shape: s32[2], index: 0, kind: input, shape index: {}]   ;;  %s3649_s1 = inlined_call_operand.vmem [shape: f32[2,8,32], index: 1, kind: input, shape index: {}]   ;;  %s3650_s2 = inlined_call_operand.vmem [shape: f32[8,32], index: 2, kind: input, shape index: {}]   ;;  %s3651_s3 = inlined_call_operand.vmem [shape: f32[2,2,32], index: 3, kind: input, shape index: {}]   ;;  %s3652_s4 = inlined_call_operand.vmem [shape: f32[3,1,32], index: 4, kind: input, shape index: {}]   ;;  %s3653_s5 = inlined_call_operand.vmem [shape: f32[3,1,32], index: 5, kind: input, shape index: {}]   ;;  %s3654_s6 = inlined_call_operand.vmem [shape: f32[3,32,96], index: 6, kind: input, shape index: {}]   ;;  %s3655_s7 = inlined_call_operand.vmem [shape: f32[3,1,96], index: 7, kind: input, shape index: {}]   ;;  %s3656_s8 = inlined_call_operand.vmem [shape: f32[3,32,32], index: 8, kind: input, shape index: {}]   ;;  %s3657_s9 = inlined_call_operand.vmem [shape: f32[3,1,32], index: 9, kind: input, shape index: {}]   ;;  %s3658_s10 = inlined_call_operand.vmem [shape: f32[3,1,32], index: 10, kind: input, shape index: {}]   ;;  %s3659_s11 = inlined_call_operand.vmem [shape: f32[3,1,32], index: 11, kind: input, shape index: {}]   ;;  %s3660_s12 = inlined_call_operand.vmem [shape: f32[3,32,128], index: 12, kind: input, shape index: {}]   ;;  %s3661_s13 = inlined_call_operand.vmem [shape: f32[3,1,128], index: 13, kind: input, shape index: {}]   ;;  %s3662_s14 = inlined_call_operand.vmem [shape: f32[3,128,32], index: 14, kind: input, shape index: {}]   ;;  %s3663_s15 = inlined_call_operand.vmem [shape: f32[3,1,32], index: 15, kind: input, shape index: {}]   ;;  %s3664_s16 = inlined_call_operand.vmem [shape: f32[1,32], index: 16, kind: input, shape index: {}]   ;;  %s3665_s17 = inlined_call_operand.vmem [shape: f32[1,32], index: 17, kind: input, shape index: {}]   ;;  %s3666_s18 = inlined_call_operand.vmem [shape: f32[32,16], index: 18, kind: input, shape index: {}]   ;;  %s3667_s19 = inlined_call_operand.hbm [shape: f32[2,1,16], index: 19, kind: output, shape index: {0}]   ;;  %s3668_s20 = inlined_call_operand.hbm [shape: f32[2,1,32], index: 20, kind: output, shape index: {1}]  }
   0x1   :  { %3714 = sst [smem:[#allocation21_spill]] %s3648_s0 }
   0x2   :  { %3715 = sst [smem:[#allocation22_spill]] %s3649_s1 }
   0x3   :  { %3716 = sst [smem:[#allocation23_spill]] %s3650_s2 }
   0x4   :  { %3717 = sst [smem:[#allocation24_spill]] %s3651_s3 }
   0x5   :  { %3718 = sst [smem:[#allocation25_spill]] %s3652_s4 }
   0x6   :  { %3719 = sst [smem:[#allocation26_spill]] %s3658_s10 }
   0x7   :  { %3720 = sst [smem:[#allocation27_spill]] %s3659_s11 }
   0x8   :  { %3721 = sst [smem:[#allocation28_spill]] %s3661_s13 }
   0x9   :  { %3722 = sst [smem:[#allocation29_spill]] %s3664_s16 }
   0xa   :  { %3723 = sst [smem:[#allocation30_spill]] %s3665_s17 }
   0xb   :  { %3724 = sst [smem:[#allocation31_spill]] %s3666_s18 }
   0xc   :  { %3725 = sst [smem:[#allocation32_spill]] %s3667_s19 }
   0xd   :  { %3726 = sst [smem:[#allocation33_spill]] %s3668_s20 }
   0xe   :  { %s3727_s23 = sld [smem:[#allocation21_spill]] }
  0x14   :  { %s27_s13 = sshll.u32 %s3727_s23, 4  ;;  %s28_s13 = int_to_ptr.vmem [resolvable:$true] %s27_s13 }
  0x15   :  { %30 = dma.vmem_to_smem %s28_s13, 16, %s2805_s24, [#allocation3] }
  0x16   :  { %2779 = dma.done.wait [#allocation3], 16 }
  0x17   :  { %2780 = vsyncadd [#allocation3], 4294967280 }
  0x18   :  { %33 = sfence }
  0x19   :  { %34 = vsyncpa [#allocation6], 0 }
  0x1a   :  { %36 = vsyncpa [#allocation6 + $0x1], 0 }
  0x1b   :  { %37 = vsyncpa [#allocation8], 0 }
  0x1c   :  { %39 = vsyncpa [#allocation8 + $0x1], 0  ;;  %s2931_s2 = smov 0   ;;  %s2933_s25 = smov 0  }
  0x1d   :  { %s2935_s3 = smov 0   ;;  %s2937_s26 = smov 0  }
  0x1e LB: > { %3728 = sst [smem:[#allocation12_spill]] %s2791_s2  ;;  %s2952_s13 = sadd.s32 4294967295, %s2803_s26   ;;  %s2803_s26 = sphi %s2937_s26, %s3779_s26   ;;  %s2799_s3 = sphi %s2935_s3, %s3782_s3   ;;  %s2795_s25 = sphi %s2933_s25, %s3781_s25   ;;  %s2791_s2 = sphi %s2931_s2, %s3780_s2  }
  0x1f   : > { %3729 = sst [smem:[#allocation13_spill]] %s2795_s25  ;;  %s2399_s27 = sadd.s32 4294967294, %s2803_s26  }
  0x20   : > { %3730 = sst [smem:[#allocation14_spill]] %s2799_s3  ;;  %s2956_s28 = sadd.s32 1, %s2803_s26  }
  0x21   : > { %3731 = sst [smem:[#allocation15_spill]] %s2803_s26  ;;  %s435_s4 = sadd.s32 1, %s2799_s3 }
  0x22   : > { %3732 = sst [smem:[#allocation16_spill]] %s2952_s13  ;;  %s432_s29 = ssub.s32 %s2803_s26, %s2956_s28 }
  0x23   : > { %3733 = sst [smem:[#allocation17_spill]] %s2956_s28  ;;  %p445_p0 = scmp.ne.s32.totalorder %s2799_s3, %s2795_s25 }
  0x24   : > { %p433_p1 = scmp.eq.s32.totalorder %s432_s29, 0  ;;  %p446_p2 = scmp.eq.s32.totalorder %s2952_s13, 1 }
  0x25   : > { %p451_p3 = scmp.ne.s32.totalorder %s2795_s25, %s2791_s2  ;;  %p452_p4 = scmp.eq.s32.totalorder %s2399_s27, 1 }
  0x26   : > { %s2967_s30 = scalar_select %p433_p1, %s2799_s3, %s435_s4  }
  0x27   : > { %p2969_p5 = por %p446_p2, %p445_p0  ;;  %p2973_p6 = por %p452_p4, %p451_p3 }
  0x28   : > { %3734 = sst [smem:[#allocation18_spill]] %s2967_s30  ;;  %p2402_p7 = scmp.ge.s32.totalorder %s2803_s26, 1 }
  0x29   : > { %s3735_s0 = scalar_select %p2969_p5, 1, 0 }
  0x2a   : > { %s3737_s21 = scalar_select %p2973_p6, 1, 0 }
  0x2b   : > { %3736 = sst [smem:[#allocation19_spill]] %s3735_s0  ;;  %p554_p8 = scmp.lt.s32.totalorder %s2803_s26, 3 }
  0x2c   : > { %3738 = sst [smem:[#allocation20_spill]] %s3737_s21 }
  0x2d   : > { %p555_p9 = pnand %p2402_p7, %p554_p8 }
  0x2e   : > { %p612_p10 = scmp.lt.s32.totalorder (!%p555_p9), %s2952_s13, 1  ;;  %s3739_s27 = sld [smem:[#allocation23_spill]] (!%p555_p9) }
  0x2f   : > { %558 = sbr.rel (%p555_p9) target bundleno = 7237 (0x1c45), region = 92  ;;  %s3740_s30 = sld [smem:[#allocation22_spill]] (!%p555_p9) }
  0x30   : > { %s3695_s4 = smov (!%p555_p9), 96   ;;  %s3679_s29 = smov (!%p555_p9), 112  }
  0x31   : > { %s3685_s23 = smov (!%p555_p9), 104   ;;  %s3675_s24 = smov (!%p555_p9), 72  }
  0x32   : > { %s3742_s10 = sld [smem:[#allocation26_spill]] (!%p555_p9)  ;;  %s3749_s28 = smov (!%p555_p9), 96  }
  0x33   : > { %s3743_s11 = sld [smem:[#allocation27_spill]] (!%p555_p9)  ;;  %s3751_s21 = smov (!%p555_p9), 64  }
  0x34   : > { %s613_s1 = scalar_select %p612_p10, %s2952_s13, 1  ;;  %v617_v0 = vld [vmem:[%s3739_s27] sm:$0xff]  ;;  %vm634_vm0 = vcmask 261120   ;;  %v2806_v4 = vmov 32.0   ;;  %v675_v16 = vld [vmem:[%s3654_s6 + $0x18] sm:$0xff]  ;;  %v674_v17 = vld [vmem:[%s3654_s6 + $0x10] sm:$0xff]  ;;  %v619_v45 = vlaneseq }
  0x35   : > { %2619 = vrcp.f32 %v2806_v4  ;;  %695 = vmatpush.msra.mxu1 %v675_v16  ;;  %v673_v18 = vld [vmem:[%s3654_s6 + $0x8] sm:$0xff]  ;;  %v672_v19 = vld [vmem:[%s3654_s6] sm:$0xff]  ;;  %s3697_s27 = smov 88   ;;  %vm707_vm5 = vcmask 64512   ;;  %v2814_v49 = vmov -1e+09  }
  0x36   : > { %s2403_s22 = sshll.u32 %s613_s1, 3  ;;  %v2596_v32 = vld [vmem:[%s3653_s5] ss:$0 sm:$0xff]  ;;  %s3691_s1 = smov 120   ;;  %v3039_v47 = vshrl.u32 %v619_v45, 7  ;;  %v3041_v48 = vand.u32 127, %v619_v45 }
  0x37   : > { %s615_s3 = scalar_lea.vmem %s3740_s30, %s2403_s22  ;;  %696 = vmatpush.msra.mxu1 %v674_v17  ;;  %s3741_s30 = sld [smem:[#allocation25_spill]]  ;;  %v2597_v35 = vld [vmem:[%s3655_s7] ss:$0 sm:$0xff]  ;;  %vm840_vm7 = vcmask 130112   ;;  %vm911_vm8 = vcmask 195712   ;;  %v986_v45 = vld [vmem:[%s3656_s8 + $0x8] sm:$0xff] }
  0x38   : > { %v616_v1 = vld [vmem:[%s615_s3] sm:$0xff]  ;;  %s3677_s3 = smov 80   ;;  %s3673_s22 = smov 48   ;;  %vm623_vm6 = vcmp.le.s32.totalorder %v3041_v48, %v3039_v47  ;;  %vm982_vm9 = vcmask 261312   ;;  %vm1149_vm13 = vcmask 1041408   ;;  %vm1145_vm14 = vcmask 15360  }
  0x39   : > { %v2987_v2 = vadd.f32 %v617_v0, %v616_v1  ;;  %697 = vmatpush.msra.mxu1 %v673_v18  ;;  %v3045_v50 = vsel %vm623_vm6, 0.0, %v2814_v49  ;;  %vm625_vm6 = vcmp.ge.s32.totalorder %v3039_v47, 1  ;;  %s3752_s2 = smov 56   ;;  %s3753_s26 = smov 104  }
  0x3a   : > { %s3758_s19 = smov 8   ;;  %s3759_s20 = smov 48  }
  0x3b   : > { %v635_v3 = vsel %vm634_vm0, %v2987_v2, 0.0  ;;  %v2620_v5 = vpop.eup %2619  ;;  %698 = vmatpush.msra.mxu1 %v672_v19  ;;  %s3760_s17 = smov 24   ;;  %s3761_s0 = smov 16  }
  0x3c   : > { %636 = vadd.xlane.f32.xlu0 %v635_v3  ;;  %v639_v6 = vmul.f32 32.0, %v2620_v5  ;;  %vm643_vm1 = vweird.f32 %v2620_v5 }
  0x3d   : > { %v2595_v29 = vld [vmem:[%s3741_s30] ss:$0 sm:$0xff] }
  0x3e   : > { %v640_v7 = vsub.f32 1.0, %v639_v6 }
  0x40   : > { %v641_v8 = vmul.f32 %v2620_v5, %v640_v7 }
  0x42   : > { %v642_v9 = vadd.f32 %v2620_v5, %v641_v8 }
  0x44   : > { %v2991_v10 = vsel %vm643_vm1, %v2620_v5, %v642_v9 }
  0xaf   : > { %v637_v11 = vpop.xlane.xlu0 %636 }
  0xb0   : > { %v645_v12 = vmul.f32 %v2991_v10, %v637_v11 }
  0xb2   : > { %v646_v13 = vsub.f32 %v2987_v2, %v645_v12 }
  0xb4   : > { %v647_v14 = vmul.f32 %v646_v13, %v646_v13 }
  0xb6   : > { %v648_v15 = vsel %vm634_vm0, %v647_v14, 0.0 }
  0xb7   : > { %649 = vadd.xlane.f32.xlu0 %v648_v15 }
 0x12a   : > { %v650_v20 = vpop.xlane.xlu0 %649 }
 0x12b   : > { %v651_v21 = vmul.f32 %v650_v20, %v2991_v10 }
 0x12d   : > { %v652_v22 = vadd.f32 1e-05, %v651_v21 }
 0x12f   : > { %2621 = vrsqrt.f32 %v652_v22  ;;  %vm659_vm3 = vweird.f32 %v652_v22 }
 0x135   : > { %v2622_v23 = vpop.eup %2621 }
 0x136   : > { %v654_v24 = vmul.f32 %v2622_v23, %v652_v22  ;;  %vm660_vm2 = vweird.f32 %v2622_v23 }
 0x137   : > { %vm661_vm4 = vmor %vm659_vm3, %vm660_vm2 }
 0x138   : > { %v655_v25 = vmul.f32 %v2622_v23, %v654_v24 }
 0x13a   : > { %v656_v26 = vmul.f32 0.5, %v655_v25 }
 0x13c   : > { %v657_v27 = vsub.f32 1.5, %v656_v26 }
 0x13e   : > { %v658_v28 = vmul.f32 %v2622_v23, %v657_v27 }
 0x140   : > { %v662_v30 = vsel %vm661_vm4, %v2622_v23, %v658_v28 }
 0x141   : > { %v663_v31 = vmul.f32 %v662_v30, %v646_v13 }
 0x143   : > { %v667_v33 = vmul.f32 %v2595_v29, %v663_v31 }
 0x145   : > { %v671_v34 = vadd.f32 %v2596_v32, %v667_v33 }
 0x147   : > { %2405 = vmatmul.msk.f32.vlgmr.msra.gmra.mxu1 %vm634_vm0, %v671_v34 }
 0x1c4   : > { %v700_v36 = vpop.f32.mrf.mxu1 }
 0x1c5   : > { %v3019_v37 = vadd.f32 %v2597_v35, %v700_v36 }
 0x1c7   : > { %773 = vrot.lane.b32.xlu0 %v3019_v37, %s3697_s27  ;;  %705 = vrot.lane.b32.xlu1 %v3019_v37, %s3695_s4  ;;  %v703_v38 = vmul.f32 0.35355338, %v3019_v37  ;;  %s3750_s27 = smov 120   ;;  %s3755_s4 = smov 80  }
 0x1c9   : > { %842 = vrot.lane.b32.xlu2 %v703_v38, %s3679_s29  ;;  %s3683_s29 = smov 40  }
 0x1cf   : > { %844 = vrot.lane.b32.xlu1 %v3019_v37, %s3677_s3  ;;  %771 = vrot.lane.b32.xlu0 %v703_v38, %s3691_s1  ;;  %s3681_s3 = smov 16   ;;  %s3748_s1 = smov 88  }
 0x1d7   : > { %881 = vrot.lane.b32.xlu0 %v3019_v37, %s3673_s22  ;;  %s3689_s22 = smov 64  }
 0x1df   : > { %913 = vrot.lane.b32.xlu0 %v703_v38, %s3685_s23  ;;  %s3744_s23 = sld [smem:[#allocation24_spill]] }
 0x223   : > { %v843_v43 = vpop.permute.xlu2 %842 }
 0x239   : > { %v774_v39 = vpop.permute.xlu0 %773  ;;  %v706_v40 = vpop.permute.xlu1 %705 }
 0x23a   : > { %2406 = vmatpush.xpose.msk.msrb.mxu1 %vm707_vm5, %v706_v40  ;;  %2409 = vmatpush.xpose.msk.msra.mxu3 %vm707_vm5, %v774_v39 }
 0x23d   : > { %2407 = vmatmul.msk.f32.vlgmr.msrb.gmra.mxu1 %vm707_vm5, %v703_v38 }
 0x241   : > { %v845_v41 = vpop.permute.xlu1 %844  ;;  %v772_v42 = vpop.permute.xlu0 %771 }
 0x242   : > { %2410 = vmatmul.msk.f32.vlgmr.msra.gmra.mxu3 %vm707_vm5, %v772_v42  ;;  %2412 = vmatpush.xpose.msk.msra.mxu1 %vm707_vm5, %v845_v41 }
 0x245   : > { %2413 = vmatmul.msk.f32.vlgmr.msra.gmra.mxu1 %vm707_vm5, %v843_v43  ;;  %v988_v43 = vld [vmem:[%s3656_s8 + $0x18] sm:$0xff] }
 0x246   : > { %1004 = vmatpush.msrb.mxu1 %v988_v43 }
 0x249   : > { %v882_v44 = vpop.permute.xlu0 %881 }
 0x24a   : > { %902 = vmatpush.msrb.mxu3 %v882_v44  ;;  %v987_v44 = vld [vmem:[%s3656_s8 + $0x10] sm:$0xff] }
 0x24b   : > { %1005 = vmatpush.msrb.mxu1 %v987_v44 }
 0x24d   : > { %1006 = vmatpush.msrb.mxu1 %v986_v45 }
 0x251   : > { %v914_v8 = vpop.permute.xlu0 %913 }
 0x2ba   : > { %v730_v46 = vpop.f32.mrf.mxu1 }
 0x2bb   : > { %v731_v63 = vadd.f32 %v730_v46, %v3045_v50  ;;  %v985_v46 = vld [vmem:[%s3656_s8] sm:$0xff] }
 0x2bc   : > { %1007 = vmatpush.msrb.mxu1 %v985_v46 }
 0x2bd   : > { %v733_v0 = vsel %vm707_vm5, %v731_v63, -inf }
 0x2c2   : > { %v867_v51 = vpop.f32.mrf.mxu1 }
 0x2c3   : > { %v868_v52 = vadd.f32 %v867_v51, %v3045_v50 }
 0x2c5   : > { %v796_v53 = vpop.f32.mrf.mxu3  ;;  %v870_v54 = vsel %vm707_vm5, %v868_v52, -inf }
 0x2c6   : > { %v797_v55 = vadd.f32 %v796_v53, %v3045_v50  ;;  %871 = vmax.xlane.f32.xlu2 %v870_v54 }
 0x2c8   : > { %v799_v56 = vsel %vm707_vm5, %v797_v55, -inf }
 0x2c9   : > { %800 = vmax.xlane.f32.xlu0 %v799_v56 }
 0x2de   : > { %915 = vrot.lane.b32.xlu2 %v3019_v37, %s3675_s24  ;;  %s3687_s24 = smov 56  }
 0x339   : > { %v872_v57 = vpop.xlane.xlu2 %871 }
 0x33a   : > { %v873_v58 = vsub.f32 %v868_v52, %v872_v57  ;;  %v2598_v52 = vld [vmem:[%s3657_s9] ss:$0 sm:$0xff] }
 0x33c   : > { %v874_v59 = vmul.f32 1.442695, %v873_v58  ;;  %v801_v12 = vpop.xlane.xlu0 %800 }
 0x33d   : > { %v802_v14 = vsub.f32 %v797_v55, %v801_v12  ;;  %v2599_v12 = vld [vmem:[%s3742_s10] ss:$0 sm:$0xff] }
 0x33e   : > { %2623 = vpow2.f32 %v874_v59 }
 0x33f   : > { %v803_v15 = vmul.f32 1.442695, %v802_v14 }
 0x341   : > { %v916_v60 = vpop.permute.xlu2 %915 }
 0x342   : > { %2415 = vmatpush.xpose.msk.msra.mxu3 %vm707_vm5, %v916_v60 }
 0x344   : > { %v2624_v61 = vpop.eup %2623 }
 0x345   : > { %v876_v62 = vsel %vm707_vm5, %v2624_v61, 0.0 }
 0x346   : > { %877 = vadd.xlane.f32.xlu1 %v876_v62  ;;  %v1053_v62 = vld [vmem:[%s3660_s12 + $0x18] sm:$0xff] }
 0x34e   : > { %734 = vmax.xlane.f32.xlu1 %v733_v0  ;;  %v1050_v0 = vld [vmem:[%s3660_s12] sm:$0xff] }
 0x3b9   : > { %v878_v1 = vpop.xlane.xlu1 %877 }
 0x3ba   : > { %2625 = vrcp.f32 %v878_v1 }
 0x3c0   : > { %v2626_v3 = vpop.eup %2625 }
 0x3c1   : > { %v735_v4 = vpop.xlane.xlu1 %734  ;;  %v880_v5 = vmul.f32 %v2626_v3, %v2624_v61 }
 0x3c2   : > { %v736_v6 = vsub.f32 %v731_v63, %v735_v4  ;;  %v1051_v63 = vld [vmem:[%s3660_s12 + $0x8] sm:$0xff] }
 0x3c3   : > { %2414 = vmatmul.msk.f32.vlgmr.msrb.gmra.mxu3 %vm707_vm5, %v880_v5 }
 0x3c4   : > { %v737_v7 = vmul.f32 1.442695, %v736_v6  ;;  %1073 = vmatpush.msrb.mxu3 %v1053_v62  ;;  %v2482_v62 = vld [vmem:[%s3654_s6 + $0x50] sm:$0xff] }
 0x3c6   : > { %2627 = vpow2.f32 %v737_v7 }
 0x3c7   : > { %2629 = vpow2.f32 %v803_v15  ;;  %v2600_v15 = vld [vmem:[%s3743_s11] ss:$0 sm:$0xff] }
 0x3cb   : > { %2416 = vmatmul.msk.f32.vlgmr.msra.gmra.mxu3 %vm707_vm5, %v914_v8 }
 0x3cc   : > { %v2628_v9 = vpop.eup %2627 }
 0x3cd   : > { %v739_v11 = vsel %vm707_vm5, %v2628_v9, 0.0  ;;  %v2630_v19 = vpop.eup %2629 }
 0x3ce   : > { %740 = vadd.xlane.f32.xlu2 %v739_v11  ;;  %v805_v20 = vsel %vm707_vm5, %v2630_v19, 0.0 }
 0x441   : > { %v741_v26 = vpop.xlane.xlu2 %740 }
 0x446   : > { %v904_v13 = vpop.f32.mrf.mxu3 }
 0x44e   : > { %v938_v16 = vpop.f32.mrf.mxu3 }
 0x44f   : > { %v939_v17 = vadd.f32 %v938_v16, %v3045_v50 }
 0x451   : > { %v941_v18 = vsel %vm707_vm5, %v939_v17, -inf }
 0x452   : > { %942 = vmax.xlane.f32.xlu1 %v941_v18  ;;  %v1117_v18 = vld [vmem:[%s3662_s14 + $0x78] sm:$0xff] }
 0x453   : > { %1118 = vmatpush.msra.mxu0 %v1117_v18 }
 0x45a   : > { %806 = vadd.xlane.f32.xlu1 %v805_v20  ;;  %v1115_v20 = vld [vmem:[%s3662_s14 + $0x68] sm:$0xff] }
 0x473   : > { %744 = vrot.lane.b32.xlu1 %v3019_v37, %s3689_s22  ;;  %s3745_s22 = sld [smem:[#allocation28_spill]] }
 0x47b   : > { %810 = vrot.lane.b32.xlu1 %v3019_v37, %s3687_s24  ;;  %s3757_s24 = smov 40  }
 0x483   : > { %908 = vrot.lane.b32.xlu1 %v904_v13, %s3681_s3  ;;  %s3693_s3 = smov 8  }
 0x4c5   : > { %v943_v21 = vpop.xlane.xlu1 %942 }
 0x4c6   : > { %v944_v22 = vsub.f32 %v939_v17, %v943_v21  ;;  %v1114_v21 = vld [vmem:[%s3662_s14 + $0x60] sm:$0xff] }
 0x4c8   : > { %v945_v23 = vmul.f32 1.442695, %v944_v22  ;;  %v1113_v22 = vld [vmem:[%s3662_s14 + $0x58] sm:$0xff] }
 0x4ca   : > { %2631 = vpow2.f32 %v945_v23  ;;  %v1112_v23 = vld [vmem:[%s3662_s14 + $0x50] sm:$0xff] }
 0x4cb   : > { %2633 = vrcp.f32 %v741_v26  ;;  %v628_v26 = vadd.s32 1, %v3041_v48 }
 0x4cd   : > { %v807_v27 = vpop.xlane.xlu1 %806  ;;  %vm629_vm15 = vcmp.eq.s32.totalorder %v3039_v47, %v628_v26  ;;  %v2605_v26 = vld [vmem:[%s3655_s7 + $0x1] ss:$0 sm:$0xff] }
 0x4ce   : > { %2635 = vrcp.f32 %v807_v27  ;;  %v1109_v27 = vld [vmem:[%s3662_s14 + $0x38] sm:$0xff] }
 0x4d0   : > { %v2632_v24 = vpop.eup %2631 }
 0x4d1   : > { %v947_v25 = vsel %vm707_vm5, %v2632_v24, 0.0  ;;  %v2634_v28 = vpop.eup %2633 }
 0x4d2   : > { %948 = vadd.xlane.f32.xlu0 %v947_v25  ;;  %v743_v30 = vmul.f32 %v2634_v28, %v2628_v9  ;;  %v1110_v25 = vld [vmem:[%s3662_s14 + $0x40] sm:$0xff] }
 0x4d3   : > { %v1144_v28 = vld [vmem:[%s3744_s23] sm:$0x3] }
 0x4d4   : > { %v2636_v31 = vpop.eup %2635 }
 0x4d5   : > { %v809_v33 = vmul.f32 %v2636_v31, %v2630_v19  ;;  %v1116_v19 = vld [vmem:[%s3662_s14 + $0x70] sm:$0xff]  ;;  %v1107_v31 = vld [vmem:[%s3662_s14 + $0x28] sm:$0xff] }
 0x4d6   : > { %1119 = vmatpush.msra.mxu0 %v1116_v19 }
 0x4d8   : > { %1120 = vmatpush.msra.mxu0 %v1115_v20  ;;  %v2603_v20 = vld [vmem:[%s3741_s30 + $0x1] ss:$0 sm:$0xff] }
 0x4da   : > { %1121 = vmatpush.msra.mxu0 %v1114_v21 }
 0x4dc   : > { %1122 = vmatpush.msra.mxu0 %v1113_v22 }
 0x4de   : > { %1123 = vmatpush.msra.mxu0 %v1112_v23  ;;  %v2604_v23 = vld [vmem:[%s3653_s5 + $0x1] ss:$0 sm:$0xff] }
 0x4e5   : > { %v745_v29 = vpop.permute.xlu1 %744 }
 0x4e6   : > { %952 = vrot.lane.b32.xlu0 %v3019_v37, %s3683_s29  ;;  %765 = vmatpush.msra.mxu2 %v745_v29  ;;  %s3701_s29 = smov 24   ;;  %v1108_v29 = vld [vmem:[%s3662_s14 + $0x30] sm:$0xff] }
 0x4e7   : > { %2408 = vmatmul.msk.f32.vlgmr.msra.gmra.mxu2 %vm707_vm5, %v743_v30  ;;  %v2822_v30 = vmov 0.0  }
 0x4e8   : > { %v3160_v48 = vsel %vm629_vm15, 1.0, %v2822_v30 }
 0x4ed   : > { %v811_v32 = vpop.permute.xlu1 %810 }
 0x4ee   : > { %831 = vmatpush.msrb.mxu2 %v811_v32  ;;  %v1106_v32 = vld [vmem:[%s3662_s14 + $0x20] sm:$0xff] }
 0x4ef   : > { %2411 = vmatmul.msk.f32.vlgmr.msrb.gmra.mxu2 %vm707_vm5, %v809_v33  ;;  %v1105_v33 = vld [vmem:[%s3662_s14 + $0x18] sm:$0xff] }
 0x4f5   : > { %v909_v41 = vpop.permute.xlu1 %908 }
 0x545   : > { %v949_v34 = vpop.xlane.xlu0 %948 }
 0x546   : > { %2637 = vrcp.f32 %v949_v34  ;;  %v1104_v34 = vld [vmem:[%s3662_s14 + $0x10] sm:$0xff] }
 0x54c   : > { %v2638_v35 = vpop.eup %2637 }
 0x54d   : > { %v951_v36 = vmul.f32 %v2638_v35, %v2632_v24  ;;  %v1111_v24 = vld [vmem:[%s3662_s14 + $0x48] sm:$0xff]  ;;  %v2601_v35 = vld [vmem:[%s3745_s22] ss:$0 sm:$0xff] }
 0x54e   : > { %1124 = vmatpush.msra.mxu0 %v1111_v24 }
 0x550   : > { %1125 = vmatpush.msra.mxu0 %v1110_v25 }
 0x552   : > { %1126 = vmatpush.msra.mxu0 %v1109_v27 }
 0x554   : > { %1127 = vmatpush.msra.mxu0 %v1108_v29 }
 0x556   : > { %1128 = vmatpush.msra.mxu0 %v1107_v31 }
 0x558   : > { %v953_v38 = vpop.permute.xlu0 %952  ;;  %1129 = vmatpush.msra.mxu0 %v1106_v32 }
 0x559   : > { %973 = vmatpush.msra.mxu2 %v953_v38  ;;  %v1102_v38 = vld [vmem:[%s3662_s14] sm:$0xff] }
 0x55a   : > { %2417 = vmatmul.msk.f32.vlgmr.msra.gmra.mxu2 %vm707_vm5, %v951_v36  ;;  %1130 = vmatpush.msra.mxu0 %v1105_v33  ;;  %v1103_v36 = vld [vmem:[%s3662_s14 + $0x8] sm:$0xff] }
 0x55b   : > { %2421 = vmatpush.msk.msrb.mxu2 %vm1149_vm13, %v1144_v28 }
 0x55c   : > { %1131 = vmatpush.msra.mxu0 %v1104_v34 }
 0x55e   : > { %1132 = vmatpush.msra.mxu0 %v1103_v36 }
 0x560   : > { %1133 = vmatpush.msra.mxu0 %v1102_v38 }
 0x562   : > { %2422 = vmatmul.msk.f32.vlgmr.msrb.gmra.mxu2 %vm1145_vm14, %v3160_v48 }
 0x56a   : > { %v767_v39 = vpop.f32.mrf.mxu2 }
 0x56b   : > { %770 = vst.msk [vmem:[#allocation2] sm:$0xff] %vm707_vm5, %v767_v39 }
 0x572   : > { %v833_v37 = vpop.f32.mrf.mxu2 }
 0x573   : > { %837 = vrot.lane.b32.xlu2 %v833_v37, %s3693_s3  ;;  %s3756_s3 = smov 72  }
 0x5cd   : > { %v838_v40 = vpop.permute.xlu2 %837 }
 0x5ce   : > { %841 = vst.msk [vmem:[#allocation2] sm:$0xff] %vm840_vm7, %v838_v40 }
 0x5cf   : > { %912 = vst.msk [vmem:[#allocation2] sm:$0xff] %vm911_vm8, %v909_v41 }
 0x5dd   : > { %v975_v42 = vpop.f32.mrf.mxu2 }
 0x5de   : > { %979 = vrot.lane.b32.xlu1 %v975_v42, %s3701_s29  ;;  %s3754_s29 = smov 112  }
 0x650   : > { %v980_v49 = vpop.permute.xlu1 %979 }
 0x651   : > { %983 = vst.msk [vmem:[#allocation2] sm:$0xff] %vm982_vm9, %v980_v49 }
 0x658   : > { %v984_v51 = vld [vmem:[#allocation2] sm:$0xff] }
 0x659   : > { %2418 = vmatmul.msk.f32.vlgmr.msrb.gmra.mxu1 %vm634_vm0, %v984_v51 }
 0x6d6   : > { %v1009_v53 = vpop.f32.mrf.mxu1 }
 0x6d7   : > { %v1012_v54 = vadd.f32 %v1009_v53, %v2987_v2  ;;  %v1052_v2 = vld [vmem:[%s3660_s12 + $0x10] sm:$0xff] }
 0x6d8   : > { %1074 = vmatpush.msrb.mxu3 %v1052_v2  ;;  %v1170_v2 = vpop.f32.mrf.mxu2 }
 0x6d9   : > { %v3097_v55 = vadd.f32 %v2598_v52, %v1012_v54 }
 0x6da   : > { %1075 = vmatpush.msrb.mxu3 %v1051_v63 }
 0x6db   : > { %v1020_v56 = vsel %vm634_vm0, %v3097_v55, 0.0 }
 0x6dc   : > { %1021 = vadd.xlane.f32.xlu0 %v1020_v56  ;;  %1076 = vmatpush.msrb.mxu3 %v1050_v0 }
 0x74f   : > { %v1022_v57 = vpop.xlane.xlu0 %1021 }
 0x750   : > { %v1023_v58 = vmul.f32 %v1022_v57, %v2991_v10 }
 0x752   : > { %v1024_v59 = vsub.f32 %v3097_v55, %v1023_v58 }
 0x754   : > { %v1025_v60 = vmul.f32 %v1024_v59, %v1024_v59 }
 0x756   : > { %v1026_v61 = vsel %vm634_vm0, %v1025_v60, 0.0 }
 0x757   : > { %1027 = vadd.xlane.f32.xlu1 %v1026_v61 }
 0x7ca   : > { %v1028_v1 = vpop.xlane.xlu1 %1027 }
 0x7cb   : > { %v1029_v3 = vmul.f32 %v1028_v1, %v2991_v10 }
 0x7cd   : > { %v1030_v4 = vadd.f32 1e-05, %v1029_v3 }
 0x7cf   : > { %2639 = vrsqrt.f32 %v1030_v4  ;;  %vm1037_vm11 = vweird.f32 %v1030_v4 }
 0x7d5   : > { %v2640_v5 = vpop.eup %2639 }
 0x7d6   : > { %v1032_v6 = vmul.f32 %v2640_v5, %v1030_v4  ;;  %vm1038_vm10 = vweird.f32 %v2640_v5 }
 0x7d7   : > { %vm1039_vm12 = vmor %vm1037_vm11, %vm1038_vm10  ;;  %vm626_vm10 = vcmp.lt.s32.totalorder %v3039_v47, 3 }
 0x7d8   : > { %v1033_v7 = vmul.f32 %v2640_v5, %v1032_v6  ;;  %vm3191_vm11 = vmand %vm625_vm6, %vm626_vm10  ;;  %v2428_v6 = vld [vmem:[%s3654_s6 + $0x38] sm:$0xff] }
 0x7d9   : > { %1233 = vmatpush.msra.mxu1 %v2428_v6 }
 0x7da   : > { %v1034_v8 = vmul.f32 0.5, %v1033_v7  ;;  %v2427_v7 = vld [vmem:[%s3654_s6 + $0x30] sm:$0xff] }
 0x7db   : > { %1234 = vmatpush.msra.mxu1 %v2427_v7 }
 0x7dc   : > { %v1035_v9 = vsub.f32 1.5, %v1034_v8  ;;  %v2426_v8 = vld [vmem:[%s3654_s6 + $0x28] sm:$0xff] }
 0x7dd   : > { %1235 = vmatpush.msra.mxu1 %v2426_v8 }
 0x7de   : > { %v1036_v11 = vmul.f32 %v2640_v5, %v1035_v9  ;;  %v2425_v9 = vld [vmem:[%s3654_s6 + $0x20] sm:$0xff] }
 0x7df   : > { %1236 = vmatpush.msra.mxu1 %v2425_v9 }
 0x7e0   : > { %v1040_v13 = vsel %vm1039_vm12, %v2640_v5, %v1036_v11 }
 0x7e1   : > { %v1041_v14 = vmul.f32 %v1040_v13, %v1024_v59  ;;  %v2602_v59 = vld [vmem:[%s3663_s15] ss:$0 sm:$0xff] }
 0x7e3   : > { %v1045_v16 = vmul.f32 %v2599_v12, %v1041_v14 }
 0x7e5   : > { %v1049_v17 = vadd.f32 %v2600_v15, %v1045_v16 }
 0x7e7   : > { %2419 = vmatmul.msk.f32.vlgmr.msrb.gmra.mxu3 %vm634_vm0, %v1049_v17 }
 0x86a   : > { %v1078_v39 = vpop.f32.mrf.mxu3 }
 0x86b   : > { %v1079_v37 = vadd.f32 %v2601_v35, %v1078_v39 }
 0x86d   : > { %v2420_v40 = vmul.f32 -1.702, %v1079_v37 }
 0x86f   : > { %v1083_v41 = vmul.f32 1.442695, %v2420_v40 }
 0x871   : > { %2641 = vpow2.f32 %v1083_v41 }
 0x877   : > { %v2642_v42 = vpop.eup %2641 }
 0x878   : > { %v1085_v43 = vadd.f32 1.0, %v2642_v42 }
 0x87a   : > { %2643 = vrcp.f32 %v1085_v43  ;;  %v1097_v49 = vand.u32 2147483648, %v1085_v43  ;;  %v1095_v52 = vand.u32 2147483647, %v1085_v43  ;;  %vm1091_vm2 = vweird.f32 %v1085_v43 }
 0x87c   : > { %v1098_v54 = vor.u32 1.1754944e-38, %v1097_v49  ;;  %vm1096_vm4 = vcmp.eq.f32.partialorder %v1095_v52, 8.507059e+37 }
 0x880   : > { %v2644_v44 = vpop.eup %2643 }
 0x881   : > { %v1087_v45 = vmul.f32 %v2644_v44, %v1085_v43  ;;  %vm1092_vm1 = vweird.f32 %v2644_v44 }
 0x882   : > { %vm1093_vm3 = vmor %vm1091_vm2, %vm1092_vm1 }
 0x883   : > { %v1088_v46 = vsub.f32 1.0, %v1087_v45 }
 0x885   : > { %v1089_v51 = vmul.f32 %v2644_v44, %v1088_v46 }
 0x887   : > { %v1090_v53 = vadd.f32 %v2644_v44, %v1089_v51 }
 0x889   : > { %v1094_v56 = vsel %vm1093_vm3, %v2644_v44, %v1090_v53 }
 0x88a   : > { %v1099_v57 = vsel %vm1096_vm4, %v1098_v54, %v1094_v56 }
 0x88b   : > { %v1101_v58 = vmul.f32 %v1099_v57, %v1079_v37 }
 0x88d   : > { %1134 = vmatmul.f32.vlgmr.msra.gmra.mxu0 %v1101_v58 }
 0x90a   : > { %v1135_v60 = vpop.f32.mrf.mxu0 }
 0x90b   : > { %v1138_v61 = vadd.f32 %v1135_v60, %v3097_v55 }
 0x90d   : > { %v1143_v63 = vadd.f32 %v2602_v59, %v1138_v61 }
 0x90f   : > { %v3197_v0 = vsel %vm3191_vm11, %v1170_v2, %v1143_v63 }
 0x910   : > { %v1178_v1 = vsel %vm634_vm0, %v3197_v0, 0.0 }
 0x911   : > { %1179 = vadd.xlane.f32.xlu2 %v1178_v1 }
 0x984   : > { %v1180_v3 = vpop.xlane.xlu2 %1179 }
 0x985   : > { %v1181_v47 = vmul.f32 %v1180_v3, %v2991_v10 }
 0x987   : > { %v1182_v4 = vsub.f32 %v3197_v0, %v1181_v47 }
 0x989   : > { %v1183_v55 = vmul.f32 %v1182_v4, %v1182_v4 }
 0x98b   : > { %v1184_v5 = vsel %vm634_vm0, %v1183_v55, 0.0 }
 0x98c   : > { %1185 = vadd.xlane.f32.xlu0 %v1184_v5 }
 0x9ff   : > { %v1186_v11 = vpop.xlane.xlu0 %1185 }
 0xa00   : > { %v1187_v12 = vmul.f32 %v1186_v11, %v2991_v10 }
 0xa02   : > { %v1188_v13 = vadd.f32 1e-05, %v1187_v12 }
 0xa04   : > { %2645 = vrsqrt.f32 %v1188_v13  ;;  %vm1195_vm15 = vweird.f32 %v1188_v13 }
 0xa0a   : > { %v2646_v14 = vpop.eup %2645 }
 0xa0b   : > { %v1190_v15 = vmul.f32 %v2646_v14, %v1188_v13  ;;  %vm1196_vm12 = vweird.f32 %v2646_v14 }
 0xa0c   : > { %vm1197_vm1 = vmor %vm1195_vm15, %vm1196_vm12 }
 0xa0d   : > { %v1191_v16 = vmul.f32 %v2646_v14, %v1190_v15 }
 0xa0f   : > { %v1192_v17 = vmul.f32 0.5, %v1191_v16 }
 0xa11   : > { %v1193_v18 = vsub.f32 1.5, %v1192_v17 }
 0xa13   : > { %v1194_v19 = vmul.f32 %v2646_v14, %v1193_v18 }
 0xa15   : > { %v1198_v21 = vsel %vm1197_vm1, %v2646_v14, %v1194_v19 }
 0xa16   : > { %v1199_v22 = vmul.f32 %v1198_v21, %v1182_v4 }
 0xa18   : > { %v1203_v24 = vmul.f32 %v2603_v20, %v1199_v22 }
 0xa1a   : > { %v1207_v25 = vadd.f32 %v2604_v23, %v1203_v24 }
 0xa1c   : > { %2430 = vmatmul.msk.f32.vlgmr.msra.gmra.mxu1 %vm634_vm0, %v1207_v25 }
 0xa99   : > { %v1238_v27 = vpop.f32.mrf.mxu1 }
 0xa9a   : > { %v3227_v28 = vadd.f32 %v2605_v26, %v1238_v27 }
 0xa9c   : > { %1310 = vrot.lane.b32.xlu2 %v3227_v28, %s3748_s1  ;;  %1243 = vrot.lane.b32.xlu1 %v3227_v28, %s3749_s28  ;;  %v1241_v29 = vmul.f32 0.35355338, %v3227_v28 }
 0xa9e   : > { %1308 = vrot.lane.b32.xlu0 %v1241_v29, %s3750_s27 }
 0xaa4   : > { %1281 = vrot.lane.b32.xlu2 %v3227_v28, %s3751_s21 }
 0xaf6   : > { %v1311_v30 = vpop.permute.xlu2 %1310 }
 0xaf7   : > { %2434 = vmatpush.xpose.msk.msrb.mxu1 %vm707_vm5, %v1311_v30 }
 0xafe   : > { %v1282_v31 = vpop.permute.xlu2 %1281 }
 0xaff   : > { %1302 = vmatpush.msra.mxu2 %v1282_v31  ;;  %v2446_v31 = vld [vmem:[%s3656_s8 + $0x38] sm:$0xff] }
 0xb0e   : > { %v1244_v32 = vpop.permute.xlu1 %1243 }
 0xb0f   : > { %2431 = vmatpush.xpose.msk.msra.mxu3 %vm707_vm5, %v1244_v32  ;;  %v2445_v32 = vld [vmem:[%s3656_s8 + $0x30] sm:$0xff] }
 0xb10   : > { %v1309_v33 = vpop.permute.xlu0 %1308 }
 0xb11   : > { %2435 = vmatmul.msk.f32.vlgmr.msrb.gmra.mxu1 %vm707_vm5, %v1309_v33  ;;  %v2444_v33 = vld [vmem:[%s3656_s8 + $0x28] sm:$0xff] }
 0xb12   : > { %2432 = vmatmul.msk.f32.vlgmr.msra.gmra.mxu3 %vm707_vm5, %v1241_v29 }
 0xb8e   : > { %v1333_v34 = vpop.f32.mrf.mxu1 }
 0xb8f   : > { %v1334_v35 = vadd.f32 %v1333_v34, %v3045_v50  ;;  %v2443_v34 = vld [vmem:[%s3656_s8 + $0x20] sm:$0xff] }
 0xb91   : > { %v1336_v36 = vsel %vm707_vm5, %v1334_v35, -inf }
 0xb92   : > { %1337 = vmax.xlane.f32.xlu1 %v1336_v36 }
 0xb95   : > { %v1267_v38 = vpop.f32.mrf.mxu3 }
 0xb96   : > { %v1268_v39 = vadd.f32 %v1267_v38, %v3045_v50 }
 0xb98   : > { %v1270_v37 = vsel %vm707_vm5, %v1268_v39, -inf }
 0xb99   : > { %1271 = vmax.xlane.f32.xlu0 %v1270_v37 }
 0xbad   : > { %1347 = vrot.lane.b32.xlu0 %v3227_v28, %s3752_s2 }
 0xbb5   : > { %1448 = vrot.lane.b32.xlu0 %v1241_v29, %s3753_s26 }
 0xbbd   : > { %1378 = vrot.lane.b32.xlu0 %v1241_v29, %s3754_s29 }
 0xc05   : > { %v1338_v40 = vpop.xlane.xlu1 %1337 }
 0xc06   : > { %v1339_v41 = vsub.f32 %v1334_v35, %v1338_v40 }
 0xc08   : > { %v1340_v42 = vmul.f32 1.442695, %v1339_v41 }
 0xc0a   : > { %2647 = vpow2.f32 %v1340_v42 }
 0xc0c   : > { %v1272_v43 = vpop.xlane.xlu0 %1271 }
 0xc0d   : > { %v1273_v44 = vsub.f32 %v1268_v39, %v1272_v43  ;;  %v2606_v39 = vld [vmem:[%s3657_s9 + $0x1] ss:$0 sm:$0xff] }
 0xc0f   : > { %v1274_v45 = vmul.f32 1.442695, %v1273_v44 }
 0xc10   : > { %v2648_v46 = vpop.eup %2647 }
 0xc11   : > { %2649 = vpow2.f32 %v1274_v45  ;;  %v1342_v49 = vsel %vm707_vm5, %v2648_v46, 0.0 }
 0xc12   : > { %1343 = vadd.xlane.f32.xlu2 %v1342_v49 }
 0xc17   : > { %v2650_v51 = vpop.eup %2649 }
 0xc18   : > { %v1276_v52 = vsel %vm707_vm5, %v2650_v51, 0.0 }
 0xc19   : > { %1277 = vadd.xlane.f32.xlu1 %v1276_v52  ;;  %v2452_v52 = vld [vmem:[%s3660_s12 + $0x28] sm:$0xff] }
 0xc1f   : > { %v1348_v53 = vpop.permute.xlu0 %1347 }
 0xc20   : > { %1368 = vmatpush.msrb.mxu3 %v1348_v53  ;;  %v2451_v53 = vld [vmem:[%s3660_s12 + $0x20] sm:$0xff] }
 0xc27   : > { %v1449_v61 = vpop.permute.xlu0 %1448 }
 0xc2a   : > { %1380 = vrot.lane.b32.xlu2 %v3227_v28, %s3755_s4 }
 0xc2f   : > { %v1379_v63 = vpop.permute.xlu0 %1378 }
 0xc32   : > { %1450 = vrot.lane.b32.xlu1 %v3227_v28, %s3756_s3 }
 0xc85   : > { %v1344_v54 = vpop.xlane.xlu2 %1343 }
 0xc86   : > { %2651 = vrcp.f32 %v1344_v54 }
 0xc8c   : > { %v2652_v56 = vpop.eup %2651  ;;  %v1278_v57 = vpop.xlane.xlu1 %1277 }
 0xc8d   : > { %v1346_v58 = vmul.f32 %v2652_v56, %v2648_v46  ;;  %2653 = vrcp.f32 %v1278_v57  ;;  %v1381_v59 = vpop.permute.xlu2 %1380 }
 0xc8e   : > { %2437 = vmatpush.xpose.msk.msrb.mxu2 %vm707_vm5, %v1381_v59 }
 0xc8f   : > { %2436 = vmatmul.msk.f32.vlgmr.msrb.gmra.mxu3 %vm707_vm5, %v1346_v58 }
 0xc93   : > { %v2654_v60 = vpop.eup %2653 }
 0xc94   : > { %v1280_v2 = vmul.f32 %v2654_v60, %v2650_v51  ;;  %v2454_v51 = vld [vmem:[%s3660_s12 + $0x38] sm:$0xff] }
 0xc96   : > { %2433 = vmatmul.msk.f32.vlgmr.msra.gmra.mxu2 %vm707_vm5, %v1280_v2 }
 0xc9e   : > { %2438 = vmatmul.msk.f32.vlgmr.msrb.gmra.mxu2 %vm707_vm5, %v1379_v63 }
 0xca4   : > { %v1451_v1 = vpop.permute.xlu1 %1450 }
 0xca5   : > { %2440 = vmatpush.xpose.msk.msra.mxu3 %vm707_vm5, %v1451_v1  ;;  %v2607_v1 = vld [vmem:[%s3742_s10 + $0x1] ss:$0 sm:$0xff] }
 0xca8   : > { %2441 = vmatmul.msk.f32.vlgmr.msra.gmra.mxu3 %vm707_vm5, %v1449_v61 }
 0xca9   : > { %1613 = vmatpush.msrb.mxu3 %v2454_v51 }
 0xd12   : > { %v1370_v55 = vpop.f32.mrf.mxu3 }
 0xd19   : > { %v1304_v3 = vpop.f32.mrf.mxu2 }
 0xd1a   : > { %1307 = vst.msk [vmem:[#allocation2] sm:$0xff] %vm707_vm5, %v1304_v3 }
 0xd21   : > { %v1403_v47 = vpop.f32.mrf.mxu2 }
 0xd22   : > { %v1404_v4 = vadd.f32 %v1403_v47, %v3045_v50 }
 0xd24   : > { %v1406_v5 = vsel %vm707_vm5, %v1404_v4, -inf }
 0xd25   : > { %1407 = vmax.xlane.f32.xlu2 %v1406_v5 }
 0xd2b   : > { %v1473_v6 = vpop.f32.mrf.mxu3 }
 0xd2c   : > { %v1474_v7 = vadd.f32 %v1473_v6, %v3045_v50  ;;  %v2473_v6 = vld [vmem:[%s3662_s14 + $0xf8] sm:$0xff] }
 0xd2d   : > { %1659 = vmatpush.msrb.mxu0 %v2473_v6 }
 0xd2e   : > { %v1476_v8 = vsel %vm707_vm5, %v1474_v7, -inf }
 0xd2f   : > { %1477 = vmax.xlane.f32.xlu1 %v1476_v8  ;;  %v2471_v8 = vld [vmem:[%s3662_s14 + $0xe8] sm:$0xff] }
 0xd3d   : > { %1487 = vrot.lane.b32.xlu2 %v3227_v28, %s3757_s24 }
 0xd98   : > { %v1408_v9 = vpop.xlane.xlu2 %1407 }
 0xd99   : > { %v1409_v11 = vsub.f32 %v1404_v4, %v1408_v9  ;;  %v2608_v4 = vld [vmem:[%s3743_s11 + $0x1] ss:$0 sm:$0xff] }
 0xd9a   : > { %v2470_v9 = vld [vmem:[%s3662_s14 + $0xe0] sm:$0xff] }
 0xd9b   : > { %v1410_v12 = vmul.f32 1.442695, %v1409_v11  ;;  %v2469_v11 = vld [vmem:[%s3662_s14 + $0xd8] sm:$0xff] }
 0xd9d   : > { %2655 = vpow2.f32 %v1410_v12  ;;  %v2468_v12 = vld [vmem:[%s3662_s14 + $0xd0] sm:$0xff] }
 0xda0   : > { %v1488_v13 = vpop.permute.xlu2 %1487 }
 0xda1   : > { %1508 = vmatpush.msra.mxu2 %v1488_v13  ;;  %v2467_v13 = vld [vmem:[%s3662_s14 + $0xc8] sm:$0xff] }
 0xda2   : > { %v1478_v14 = vpop.xlane.xlu1 %1477 }
 0xda3   : > { %v2656_v15 = vpop.eup %2655  ;;  %v1479_v16 = vsub.f32 %v1474_v7, %v1478_v14  ;;  %v2472_v7 = vld [vmem:[%s3662_s14 + $0xf0] sm:$0xff]  ;;  %v2466_v14 = vld [vmem:[%s3662_s14 + $0xc0] sm:$0xff] }
 0xda4   : > { %v1412_v17 = vsel %vm707_vm5, %v2656_v15, 0.0  ;;  %1660 = vmatpush.msrb.mxu0 %v2472_v7  ;;  %v2612_v7 = vld [vmem:[%s3653_s5 + $0x2] ss:$0 sm:$0xff] }
 0xda5   : > { %v1480_v18 = vmul.f32 1.442695, %v1479_v16  ;;  %1413 = vadd.xlane.f32.xlu1 %v1412_v17  ;;  %v2464_v16 = vld [vmem:[%s3662_s14 + $0xb0] sm:$0xff]  ;;  %v2463_v17 = vld [vmem:[%s3662_s14 + $0xa8] sm:$0xff] }
 0xda6   : > { %1661 = vmatpush.msrb.mxu0 %v2471_v8 }
 0xda7   : > { %2657 = vpow2.f32 %v1480_v18  ;;  %v2462_v18 = vld [vmem:[%s3662_s14 + $0xa0] sm:$0xff] }
 0xda8   : > { %1662 = vmatpush.msrb.mxu0 %v2470_v9 }
 0xdaa   : > { %1663 = vmatpush.msrb.mxu0 %v2469_v11  ;;  %v2613_v11 = vld [vmem:[%s3655_s7 + $0x2] ss:$0 sm:$0xff] }
 0xdac   : > { %1664 = vmatpush.msrb.mxu0 %v2468_v12 }
 0xdad   : > { %v2658_v19 = vpop.eup %2657 }
 0xdae   : > { %v1482_v20 = vsel %vm707_vm5, %v2658_v19, 0.0  ;;  %1665 = vmatpush.msrb.mxu0 %v2467_v13 }
 0xdaf   : > { %1483 = vadd.xlane.f32.xlu0 %v1482_v20  ;;  %v2609_v20 = vld [vmem:[%s3745_s22 + $0x1] ss:$0 sm:$0xff] }
 0xdb0   : > { %1666 = vmatpush.msrb.mxu0 %v2466_v14 }
 0xdbe   : > { %1374 = vrot.lane.b32.xlu1 %v1370_v55, %s3758_s19 }
 0xdc3   : > { %1417 = vrot.lane.b32.xlu0 %v3227_v28, %s3759_s20  ;;  %s3774_s20 = sld [smem:[#allocation33_spill]] }
 0xe18   : > { %v1414_v22 = vpop.xlane.xlu1 %1413 }
 0xe22   : > { %v1484_v21 = vpop.xlane.xlu0 %1483 }
 0xe23   : > { %2659 = vrcp.f32 %v1484_v21  ;;  %v2460_v21 = vld [vmem:[%s3662_s14 + $0x90] sm:$0xff] }
 0xe24   : > { %2661 = vrcp.f32 %v1414_v22  ;;  %v2459_v22 = vld [vmem:[%s3662_s14 + $0x88] sm:$0xff] }
 0xe29   : > { %v2660_v23 = vpop.eup %2659 }
 0xe2a   : > { %v1486_v24 = vmul.f32 %v2660_v23, %v2658_v19  ;;  %v2662_v26 = vpop.eup %2661  ;;  %v2461_v19 = vld [vmem:[%s3662_s14 + $0x98] sm:$0xff]  ;;  %v2475_v23 = vld [vmem:[%s3744_s23 + $0x2] sm:$0x3] }
 0xe2b   : > { %v1416_v27 = vmul.f32 %v2662_v26, %v2656_v15  ;;  %v2465_v15 = vld [vmem:[%s3662_s14 + $0xb8] sm:$0xff]  ;;  %2476 = vmatpush.msk.msrb.mxu2 %vm1149_vm13, %v2475_v23  ;;  %v2458_v26 = vld [vmem:[%s3662_s14 + $0x80] sm:$0xff] }
 0xe2c   : > { %2442 = vmatmul.msk.f32.vlgmr.msra.gmra.mxu2 %vm707_vm5, %v1486_v24  ;;  %1667 = vmatpush.msrb.mxu0 %v2465_v15 }
 0xe2e   : > { %1668 = vmatpush.msrb.mxu0 %v2464_v16 }
 0xe30   : > { %v1375_v25 = vpop.permute.xlu1 %1374  ;;  %1669 = vmatpush.msrb.mxu0 %v2463_v17 }
 0xe31   : > { %1377 = vst.msk [vmem:[#allocation2] sm:$0xff] %vm840_vm7, %v1375_v25 }
 0xe32   : > { %1670 = vmatpush.msrb.mxu0 %v2462_v18 }
 0xe34   : > { %1671 = vmatpush.msrb.mxu0 %v2461_v19  ;;  %2477 = vmatmul.msk.f32.vlgmr.msrb.gmra.mxu2 %vm1145_vm14, %v3160_v48 }
 0xe35   : > { %v1418_v29 = vpop.permute.xlu0 %1417 }
 0xe36   : > { %1438 = vmatpush.msra.mxu1 %v1418_v29  ;;  %1672 = vmatpush.msrb.mxu0 %v2460_v21 }
 0xe37   : > { %2439 = vmatmul.msk.f32.vlgmr.msra.gmra.mxu1 %vm707_vm5, %v1416_v27 }
 0xe38   : > { %1539 = vmatpush.msrb.mxu1 %v2446_v31  ;;  %1673 = vmatpush.msrb.mxu0 %v2459_v22 }
 0xe3a   : > { %1540 = vmatpush.msrb.mxu1 %v2445_v32  ;;  %1674 = vmatpush.msrb.mxu0 %v2458_v26 }
 0xe3c   : > { %1541 = vmatpush.msrb.mxu1 %v2444_v33 }
 0xe3e   : > { %1542 = vmatpush.msrb.mxu1 %v2443_v34 }
 0xeaf   : > { %v1510_v30 = vpop.f32.mrf.mxu2 }
 0xeb0   : > { %1514 = vrot.lane.b32.xlu2 %v1510_v30, %s3760_s17 }
 0xeb4   : > { %v1440_v28 = vpop.f32.mrf.mxu1 }
 0xeb5   : > { %1444 = vrot.lane.b32.xlu0 %v1440_v28, %s3761_s0 }
 0xf0a   : > { %v1515_v36 = vpop.permute.xlu2 %1514 }
 0xf27   : > { %v1445_v35 = vpop.permute.xlu0 %1444 }
 0xf28   : > { %1447 = vst.msk [vmem:[#allocation2] sm:$0xff] %vm911_vm8, %v1445_v35 }
 0xf29   : > { %1517 = vst.msk [vmem:[#allocation2] sm:$0xff] %vm982_vm9, %v1515_v36 }
 0xf30   : > { %v1518_v38 = vld [vmem:[#allocation2] sm:$0xff] }
 0xf31   : > { %2447 = vmatmul.msk.f32.vlgmr.msrb.gmra.mxu1 %vm634_vm0, %v1518_v38 }
 0xfae   : > { %v1544_v37 = vpop.f32.mrf.mxu1 }
 0xfaf   : > { %v1547_v40 = vadd.f32 %v1544_v37, %v3197_v0  ;;  %v2453_v0 = vld [vmem:[%s3660_s12 + $0x30] sm:$0xff] }
 0xfb0   : > { %1614 = vmatpush.msrb.mxu3 %v2453_v0 }
 0xfb1   : > { %v3297_v41 = vadd.f32 %v2606_v39, %v1547_v40 }
 0xfb2   : > { %1615 = vmatpush.msrb.mxu3 %v2452_v52 }
 0xfb3   : > { %v1558_v42 = vsel %vm634_vm0, %v3297_v41, 0.0 }
 0xfb4   : > { %1559 = vadd.xlane.f32.xlu0 %v1558_v42  ;;  %1616 = vmatpush.msrb.mxu3 %v2451_v53  ;;  %v2610_v42 = vld [vmem:[%s3663_s15 + $0x1] ss:$0 sm:$0xff] }
0x1027   : > { %v1560_v43 = vpop.xlane.xlu0 %1559 }
0x1028   : > { %v1561_v44 = vmul.f32 %v1560_v43, %v2991_v10 }
0x102a   : > { %v1562_v45 = vsub.f32 %v3297_v41, %v1561_v44 }
0x102c   : > { %v1563_v46 = vmul.f32 %v1562_v45, %v1562_v45 }
0x102e   : > { %v1564_v49 = vsel %vm634_vm0, %v1563_v46, 0.0 }
0x102f   : > { %1565 = vadd.xlane.f32.xlu1 %v1564_v49 }
0x10a2   : > { %v1566_v54 = vpop.xlane.xlu1 %1565 }
0x10a3   : > { %v1567_v56 = vmul.f32 %v1566_v54, %v2991_v10 }
0x10a5   : > { %v1568_v57 = vadd.f32 1e-05, %v1567_v56 }
0x10a7   : > { %2663 = vrsqrt.f32 %v1568_v57  ;;  %vm1575_vm3 = vweird.f32 %v1568_v57 }
0x10ad   : > { %v2664_v58 = vpop.eup %2663 }
0x10ae   : > { %v1570_v59 = vmul.f32 %v2664_v58, %v1568_v57  ;;  %vm1576_vm2 = vweird.f32 %v2664_v58  ;;  %v2481_v57 = vld [vmem:[%s3654_s6 + $0x48] sm:$0xff] }
0x10af   : > { %vm1577_vm4 = vmor %vm1575_vm3, %vm1576_vm2 }
0x10b0   : > { %v1571_v60 = vmul.f32 %v2664_v58, %v1570_v59 }
0x10b2   : > { %v1572_v61 = vmul.f32 0.5, %v1571_v60 }
0x10b4   : > { %v1573_v2 = vsub.f32 1.5, %v1572_v61 }
0x10b6   : > { %v1574_v63 = vmul.f32 %v2664_v58, %v1573_v2 }
0x10b8   : > { %v1578_v3 = vsel %vm1577_vm4, %v2664_v58, %v1574_v63  ;;  %v2480_v58 = vld [vmem:[%s3654_s6 + $0x40] sm:$0xff]  ;;  %vm2228_vm4 = vcmask 253952  }
0x10b9   : > { %v1579_v47 = vmul.f32 %v1578_v3, %v1562_v45  ;;  %v1708_v45 = vpop.f32.mrf.mxu2 }
0x10bb   : > { %v1583_v55 = vmul.f32 %v2607_v1, %v1579_v47 }
0x10bd   : > { %v1587_v5 = vadd.f32 %v2608_v4, %v1583_v55  ;;  %v2611_v55 = vld [vmem:[%s3741_s30 + $0x2] ss:$0 sm:$0xff] }
0x10bf   : > { %2456 = vmatmul.msk.f32.vlgmr.msrb.gmra.mxu3 %vm634_vm0, %v1587_v5 }
0x1142   : > { %v1618_v24 = vpop.f32.mrf.mxu3 }
0x1143   : > { %v1619_v25 = vadd.f32 %v2609_v20, %v1618_v24 }
0x1145   : > { %v2457_v27 = vmul.f32 -1.702, %v1619_v25 }
0x1147   : > { %v1623_v29 = vmul.f32 1.442695, %v2457_v27 }
0x1149   : > { %2665 = vpow2.f32 %v1623_v29 }
0x114f   : > { %v2666_v30 = vpop.eup %2665 }
0x1150   : > { %v1625_v28 = vadd.f32 1.0, %v2666_v30 }
0x1152   : > { %2667 = vrcp.f32 %v1625_v28  ;;  %v1637_v34 = vand.u32 2147483648, %v1625_v28  ;;  %v1635_v36 = vand.u32 2147483647, %v1625_v28  ;;  %vm1631_vm14 = vweird.f32 %v1625_v28 }
0x1154   : > { %v1638_v48 = vor.u32 1.1754944e-38, %v1637_v34  ;;  %vm1636_vm10 = vcmp.eq.f32.partialorder %v1635_v36, 8.507059e+37 }
0x1158   : > { %v2668_v31 = vpop.eup %2667 }
0x1159   : > { %v1627_v32 = vmul.f32 %v2668_v31, %v1625_v28  ;;  %vm1632_vm13 = vweird.f32 %v2668_v31 }
0x115a   : > { %vm1633_vm6 = vmor %vm1631_vm14, %vm1632_vm13 }
0x115b   : > { %v1628_v33 = vsub.f32 1.0, %v1627_v32 }
0x115d   : > { %v1629_v35 = vmul.f32 %v2668_v31, %v1628_v33 }
0x115f   : > { %v1630_v38 = vadd.f32 %v2668_v31, %v1629_v35 }
0x1161   : > { %v1634_v39 = vsel %vm1633_vm6, %v2668_v31, %v1630_v38 }
0x1162   : > { %v1639_v37 = vsel %vm1636_vm10, %v1638_v48, %v1634_v39 }
0x1163   : > { %v1641_v40 = vmul.f32 %v1639_v37, %v1619_v25 }
0x1165   : > { %1675 = vmatmul.f32.vlgmr.msrb.gmra.mxu0 %v1641_v40 }
0x11e2   : > { %v1676_v43 = vpop.f32.mrf.mxu0 }
0x11e3   : > { %v1679_v44 = vadd.f32 %v1676_v43, %v3297_v41  ;;  %v2483_v41 = vld [vmem:[%s3654_s6 + $0x58] sm:$0xff] }
0x11e4   : > { %1771 = vmatpush.msra.mxu1 %v2483_v41 }
0x11e5   : > { %v1685_v46 = vadd.f32 %v2610_v42, %v1679_v44 }
0x11e6   : > { %1772 = vmatpush.msra.mxu1 %v2482_v62 }
0x11e7   : > { %v3387_v49 = vsel %vm3191_vm11, %v1708_v45, %v1685_v46 }
0x11e8   : > { %v1716_v51 = vsel %vm634_vm0, %v3387_v49, 0.0  ;;  %1773 = vmatpush.msra.mxu1 %v2481_v57 }
0x11e9   : > { %1717 = vadd.xlane.f32.xlu2 %v1716_v51 }
0x11ea   : > { %1774 = vmatpush.msra.mxu1 %v2480_v58 }
0x125c   : > { %v1718_v0 = vpop.xlane.xlu2 %1717 }
0x125d   : > { %v1719_v52 = vmul.f32 %v1718_v0, %v2991_v10 }
0x125f   : > { %v1720_v53 = vsub.f32 %v3387_v49, %v1719_v52 }
0x1261   : > { %v1721_v54 = vmul.f32 %v1720_v53, %v1720_v53 }
0x1263   : > { %v1722_v56 = vsel %vm634_vm0, %v1721_v54, 0.0 }
0x1264   : > { %1723 = vadd.xlane.f32.xlu0 %v1722_v56 }
0x12d7   : > { %v1724_v59 = vpop.xlane.xlu0 %1723 }
0x12d8   : > { %v1725_v60 = vmul.f32 %v1724_v59, %v2991_v10 }
0x12da   : > { %v1726_v61 = vadd.f32 1e-05, %v1725_v60 }
0x12dc   : > { %2669 = vrsqrt.f32 %v1726_v61  ;;  %vm1733_vm12 = vweird.f32 %v1726_v61 }
0x12e2   : > { %v2670_v2 = vpop.eup %2669 }
0x12e3   : > { %v1728_v63 = vmul.f32 %v2670_v2, %v1726_v61  ;;  %vm1734_vm11 = vweird.f32 %v2670_v2 }
0x12e4   : > { %vm1735_vm15 = vmor %vm1733_vm12, %vm1734_vm11 }
0x12e5   : > { %v1729_v1 = vmul.f32 %v2670_v2, %v1728_v63 }
0x12e7   : > { %v1730_v3 = vmul.f32 0.5, %v1729_v1 }
0x12e9   : > { %v1731_v47 = vsub.f32 1.5, %v1730_v3 }
0x12eb   : > { %v1732_v4 = vmul.f32 %v2670_v2, %v1731_v47 }
0x12ed   : > { %v1736_v5 = vsel %vm1735_vm15, %v2670_v2, %v1732_v4 }
0x12ee   : > { %v1737_v6 = vmul.f32 %v1736_v5, %v1720_v53 }
0x12f0   : > { %v1741_v8 = vmul.f32 %v2611_v55, %v1737_v6 }
0x12f2   : > { %v1745_v9 = vadd.f32 %v2612_v7, %v1741_v8 }
0x12f4   : > { %2485 = vmatmul.msk.f32.vlgmr.msra.gmra.mxu1 %vm634_vm0, %v1745_v9 }
0x1371   : > { %v1776_v12 = vpop.f32.mrf.mxu1 }
0x1372   : > { %v3417_v13 = vadd.f32 %v2613_v11, %v1776_v12 }
0x1374   : > { %1848 = vrot.lane.b32.xlu2 %v3417_v13, %s3748_s1  ;;  %1781 = vrot.lane.b32.xlu1 %v3417_v13, %s3749_s28  ;;  %v1779_v14 = vmul.f32 0.35355338, %v3417_v13  ;;  %s3762_s1 = smov 112   ;;  %s3763_s28 = smov 40  }
0x1376   : > { %1846 = vrot.lane.b32.xlu0 %v1779_v14, %s3750_s27  ;;  %s3764_s27 = smov 48  }
0x137e   : > { %1819 = vrot.lane.b32.xlu0 %v3417_v13, %s3751_s21  ;;  %s3765_s21 = smov 8  }
0x13ce   : > { %v1849_v15 = vpop.permute.xlu2 %1848 }
0x13cf   : > { %2489 = vmatpush.xpose.msk.msrb.mxu1 %vm707_vm5, %v1849_v15  ;;  %v2499_v15 = vld [vmem:[%s3656_s8 + $0x48] sm:$0xff] }
0x13e6   : > { %v1782_v16 = vpop.permute.xlu1 %1781 }
0x13e7   : > { %2486 = vmatpush.xpose.msk.msra.mxu3 %vm707_vm5, %v1782_v16  ;;  %v2498_v16 = vld [vmem:[%s3656_s8 + $0x40] sm:$0xff] }
0x13e8   : > { %v1847_v17 = vpop.permute.xlu0 %1846 }
0x13e9   : > { %2490 = vmatmul.msk.f32.vlgmr.msrb.gmra.mxu1 %vm707_vm5, %v1847_v17 }
0x13ea   : > { %2487 = vmatmul.msk.f32.vlgmr.msra.gmra.mxu3 %vm707_vm5, %v1779_v14 }
0x13f0   : > { %v1820_v18 = vpop.permute.xlu0 %1819 }
0x13f1   : > { %1840 = vmatpush.msra.mxu2 %v1820_v18 }
0x1466   : > { %v1871_v19 = vpop.f32.mrf.mxu1 }
0x1467   : > { %v1872_v20 = vadd.f32 %v1871_v19, %v3045_v50 }
0x1469   : > { %v1874_v21 = vsel %vm707_vm5, %v1872_v20, -inf }
0x146a   : > { %1875 = vmax.xlane.f32.xlu2 %v1874_v21 }
0x146d   : > { %v1805_v22 = vpop.f32.mrf.mxu3 }
0x146e   : > { %v1806_v23 = vadd.f32 %v1805_v22, %v3045_v50 }
0x1470   : > { %v1808_v24 = vsel %vm707_vm5, %v1806_v23, -inf }
0x1471   : > { %1809 = vmax.xlane.f32.xlu1 %v1808_v24 }
0x1482   : > { %1988 = vrot.lane.b32.xlu2 %v3417_v13, %s3756_s3  ;;  %s3767_s3 = sld [smem:[#allocation27_spill]] }
0x148a   : > { %1885 = vrot.lane.b32.xlu1 %v3417_v13, %s3752_s2  ;;  %s3766_s2 = sld [smem:[#allocation26_spill]] }
0x1492   : > { %1918 = vrot.lane.b32.xlu1 %v3417_v13, %s3755_s4 }
0x14dd   : > { %v1876_v25 = vpop.xlane.xlu2 %1875 }
0x14de   : > { %v1877_v26 = vsub.f32 %v1872_v20, %v1876_v25  ;;  %v2614_v20 = vld [vmem:[%s3657_s9 + $0x2] ss:$0 sm:$0xff] }
0x14e0   : > { %v1878_v27 = vmul.f32 1.442695, %v1877_v26 }
0x14e2   : > { %2671 = vpow2.f32 %v1878_v27 }
0x14e4   : > { %v1810_v29 = vpop.xlane.xlu1 %1809 }
0x14e5   : > { %v1811_v30 = vsub.f32 %v1806_v23, %v1810_v29  ;;  %v1989_v36 = vpop.permute.xlu2 %1988 }
0x14e7   : > { %v1812_v28 = vmul.f32 1.442695, %v1811_v30 }
0x14e8   : > { %v2672_v31 = vpop.eup %2671 }
0x14e9   : > { %2673 = vpow2.f32 %v1812_v28  ;;  %v1880_v32 = vsel %vm707_vm5, %v2672_v31, 0.0  ;;  %v2509_v28 = vld [vmem:[%s3660_s12 + $0x58] sm:$0xff] }
0x14ea   : > { %1881 = vadd.xlane.f32.xlu0 %v1880_v32  ;;  %v2506_v32 = vld [vmem:[%s3660_s12 + $0x40] sm:$0xff] }
0x14ef   : > { %v2674_v33 = vpop.eup %2673 }
0x14f0   : > { %v1814_v34 = vsel %vm707_vm5, %v2674_v33, 0.0 }
0x14f1   : > { %1815 = vadd.xlane.f32.xlu2 %v1814_v34 }
0x14fc   : > { %v1886_v35 = vpop.permute.xlu1 %1885 }
0x14fd   : > { %1906 = vmatpush.msrb.mxu3 %v1886_v35 }
0x14fe   : > { %1986 = vrot.lane.b32.xlu0 %v1779_v14, %s3753_s26 }
0x14ff   : > { %2495 = vmatpush.xpose.msk.msra.mxu3 %vm707_vm5, %v1989_v36 }
0x1504   : > { %v1919_v38 = vpop.permute.xlu1 %1918 }
0x1505   : > { %2492 = vmatpush.xpose.msk.msrb.mxu2 %vm707_vm5, %v1919_v38 }
0x1509   : > { %1916 = vrot.lane.b32.xlu2 %v1779_v14, %s3762_s1  ;;  %v2500_v14 = vld [vmem:[%s3656_s8 + $0x50] sm:$0xff] }
0x155d   : > { %v1882_v48 = vpop.xlane.xlu0 %1881 }
0x155e   : > { %2675 = vrcp.f32 %v1882_v48 }
0x1564   : > { %v2676_v39 = vpop.eup %2675  ;;  %v1816_v37 = vpop.xlane.xlu2 %1815 }
0x1565   : > { %v1884_v40 = vmul.f32 %v2676_v39, %v2672_v31  ;;  %2677 = vrcp.f32 %v1816_v37  ;;  %v2507_v31 = vld [vmem:[%s3660_s12 + $0x48] sm:$0xff] }
0x1567   : > { %2491 = vmatmul.msk.f32.vlgmr.msrb.gmra.mxu3 %vm707_vm5, %v1884_v40 }
0x1568   : > { %2151 = vmatpush.msrb.mxu3 %v2509_v28 }
0x156b   : > { %v2678_v42 = vpop.eup %2677 }
0x156c   : > { %v1818_v43 = vmul.f32 %v2678_v42, %v2674_v33  ;;  %v1917_v45 = vpop.permute.xlu2 %1916  ;;  %v2615_v42 = vld [vmem:[%s3766_s2 + $0x2] ss:$0 sm:$0xff] }
0x156e   : > { %2488 = vmatmul.msk.f32.vlgmr.msra.gmra.mxu2 %vm707_vm5, %v1818_v43 }
0x1570   : > { %v1987_v44 = vpop.permute.xlu0 %1986 }
0x1571   : > { %2496 = vmatmul.msk.f32.vlgmr.msra.gmra.mxu3 %vm707_vm5, %v1987_v44 }
0x1576   : > { %2493 = vmatmul.msk.f32.vlgmr.msrb.gmra.mxu2 %vm707_vm5, %v1917_v45  ;;  %v2616_v45 = vld [vmem:[%s3767_s3 + $0x2] ss:$0 sm:$0xff] }
0x15ea   : > { %v1908_v46 = vpop.f32.mrf.mxu3 }
0x15f1   : > { %v1842_v51 = vpop.f32.mrf.mxu2 }
0x15f2   : > { %1845 = vst.msk [vmem:[#allocation2] sm:$0xff] %vm707_vm5, %v1842_v51 }
0x15f4   : > { %v2011_v0 = vpop.f32.mrf.mxu3 }
0x15f5   : > { %v2012_v52 = vadd.f32 %v2011_v0, %v3045_v50  ;;  %v2528_v0 = vld [vmem:[%s3662_s14 + $0x178] sm:$0xff] }
0x15f6   : > { %2197 = vmatpush.msra.mxu0 %v2528_v0 }
0x15f7   : > { %v2014_v53 = vsel %vm707_vm5, %v2012_v52, -inf }
0x15f8   : > { %2015 = vmax.xlane.f32.xlu0 %v2014_v53  ;;  %v2526_v53 = vld [vmem:[%s3662_s14 + $0x168] sm:$0xff] }
0x15f9   : > { %v1941_v54 = vpop.f32.mrf.mxu2 }
0x15fa   : > { %v1942_v56 = vadd.f32 %v1941_v54, %v3045_v50  ;;  %v2525_v54 = vld [vmem:[%s3662_s14 + $0x160] sm:$0xff] }
0x15fc   : > { %v1944_v41 = vsel %vm707_vm5, %v1942_v56, -inf }
0x15fd   : > { %1945 = vmax.xlane.f32.xlu1 %v1944_v41  ;;  %v2523_v41 = vld [vmem:[%s3662_s14 + $0x150] sm:$0xff] }
0x1616   : > { %2025 = vrot.lane.b32.xlu1 %v3417_v13, %s3763_s28  ;;  %s3771_s28 = sld [smem:[#allocation29_spill]] }
0x166b   : > { %v2016_v62 = vpop.xlane.xlu0 %2015 }
0x166c   : > { %v2017_v57 = vsub.f32 %v2012_v52, %v2016_v62  ;;  %v2527_v52 = vld [vmem:[%s3662_s14 + $0x170] sm:$0xff]  ;;  %v2522_v62 = vld [vmem:[%s3662_s14 + $0x148] sm:$0xff] }
0x166d   : > { %2198 = vmatpush.msra.mxu0 %v2527_v52 }
0x166e   : > { %v2018_v58 = vmul.f32 1.442695, %v2017_v57  ;;  %v2521_v57 = vld [vmem:[%s3662_s14 + $0x140] sm:$0xff] }
0x166f   : > { %2199 = vmatpush.msra.mxu0 %v2526_v53 }
0x1670   : > { %2679 = vpow2.f32 %v2018_v58  ;;  %v1946_v59 = vpop.xlane.xlu1 %1945  ;;  %v2520_v58 = vld [vmem:[%s3662_s14 + $0x138] sm:$0xff] }
0x1671   : > { %v1947_v60 = vsub.f32 %v1942_v56, %v1946_v59  ;;  %2200 = vmatpush.msra.mxu0 %v2525_v54  ;;  %v2524_v56 = vld [vmem:[%s3662_s14 + $0x158] sm:$0xff]  ;;  %v2519_v59 = vld [vmem:[%s3662_s14 + $0x130] sm:$0xff] }
0x1673   : > { %v1948_v61 = vmul.f32 1.442695, %v1947_v60  ;;  %2201 = vmatpush.msra.mxu0 %v2524_v56  ;;  %v2518_v60 = vld [vmem:[%s3662_s14 + $0x128] sm:$0xff] }
0x1675   : > { %2681 = vpow2.f32 %v1948_v61  ;;  %2202 = vmatpush.msra.mxu0 %v2523_v41  ;;  %v2517_v61 = vld [vmem:[%s3662_s14 + $0x120] sm:$0xff] }
0x1676   : > { %v2680_v2 = vpop.eup %2679 }
0x1677   : > { %v2020_v63 = vsel %vm707_vm5, %v2680_v2, 0.0  ;;  %2203 = vmatpush.msra.mxu0 %v2522_v62 }
0x1678   : > { %2021 = vadd.xlane.f32.xlu2 %v2020_v63  ;;  %v2617_v63 = vld [vmem:[%s3745_s22 + $0x2] ss:$0 sm:$0xff] }
0x1679   : > { %2204 = vmatpush.msra.mxu0 %v2521_v57 }
0x167b   : > { %v2682_v1 = vpop.eup %2681  ;;  %2205 = vmatpush.msra.mxu0 %v2520_v58 }
0x167c   : > { %v1950_v50 = vsel %vm707_vm5, %v2682_v1, 0.0 }
0x167d   : > { %1951 = vadd.xlane.f32.xlu0 %v1950_v50  ;;  %2206 = vmatpush.msra.mxu0 %v2519_v59  ;;  %v2514_v50 = vld [vmem:[%s3662_s14 + $0x108] sm:$0xff] }
0x167f   : > { %2207 = vmatpush.msra.mxu0 %v2518_v60 }
0x1681   : > { %2208 = vmatpush.msra.mxu0 %v2517_v61 }
0x1688   : > { %v2026_v3 = vpop.permute.xlu1 %2025 }
0x1689   : > { %2046 = vmatpush.msra.mxu2 %v2026_v3 }
0x1690   : > { %1955 = vrot.lane.b32.xlu2 %v3417_v13, %s3764_s27  ;;  %v2501_v13 = vld [vmem:[%s3656_s8 + $0x58] sm:$0xff]  ;;  %s3768_s27 = sld [smem:[#allocation16_spill]] }
0x1691   : > { %1912 = vrot.lane.b32.xlu0 %v1908_v46, %s3765_s21  ;;  %s3769_s21 = sld [smem:[#allocation13_spill]] }
0x1696   : > { %s2225_s4 = sld [smem:[#allocation4 + %s3768_s27]] }
0x1697   : > { %s3572_s3 = sand.u32 1, %s3769_s21  }
0x1698   : > { %s611_s18 = scalar_lea.vmem [#allocation7], %s3572_s3  ;;  %s2290_s10 = scalar_lea.sflag [#allocation8], %s3572_s3 }
0x1699   : > { %s2313_s25 = sshll.u32 %s611_s18, 4  ;;  %s2314_s25 = int_to_ptr.vmem [resolvable:$true] %s2313_s25 }
0x169c   : > { %s2226_s16 = scalar_lea.vmem [#allocation2], %s2225_s4  ;;  %s3773_s4 = sld [smem:[#allocation30_spill]] }
0x16eb   : > { %v2022_v47 = vpop.xlane.xlu2 %2021 }
0x16ec   : > { %2683 = vrcp.f32 %v2022_v47 }
0x16f0   : > { %v1952_v4 = vpop.xlane.xlu0 %1951 }
0x16f1   : > { %2685 = vrcp.f32 %v1952_v4  ;;  %v2513_v4 = vld [vmem:[%s3662_s14 + $0x100] sm:$0xff] }
0x16f2   : > { %v2684_v55 = vpop.eup %2683 }
0x16f3   : > { %v2024_v5 = vmul.f32 %v2684_v55, %v2680_v2  ;;  %v1956_v6 = vpop.permute.xlu2 %1955  ;;  %v2516_v2 = vld [vmem:[%s3662_s14 + $0x118] sm:$0xff] }
0x16f4   : > { %1976 = vmatpush.msra.mxu1 %v1956_v6  ;;  %2209 = vmatpush.msra.mxu0 %v2516_v2 }
0x16f5   : > { %2497 = vmatmul.msk.f32.vlgmr.msra.gmra.mxu2 %vm707_vm5, %v2024_v5 }
0x16f6   : > { %2077 = vmatpush.msrb.mxu1 %v2501_v13 }
0x16f7   : > { %v2686_v7 = vpop.eup %2685 }
0x16f8   : > { %v1954_v8 = vmul.f32 %v2686_v7, %v2682_v1  ;;  %2078 = vmatpush.msrb.mxu1 %v2500_v14  ;;  %v2515_v1 = vld [vmem:[%s3662_s14 + $0x110] sm:$0xff] }
0x16f9   : > { %2210 = vmatpush.msra.mxu0 %v2515_v1 }
0x16fa   : > { %2494 = vmatmul.msk.f32.vlgmr.msra.gmra.mxu1 %vm707_vm5, %v1954_v8 }
0x16fb   : > { %2079 = vmatpush.msrb.mxu1 %v2499_v15  ;;  %2211 = vmatpush.msra.mxu0 %v2514_v50 }
0x16fd   : > { %2080 = vmatpush.msrb.mxu1 %v2498_v16  ;;  %2212 = vmatpush.msra.mxu0 %v2513_v4 }
0x1703   : > { %v1913_v9 = vpop.permute.xlu0 %1912 }
0x1704   : > { %1915 = vst.msk [vmem:[#allocation2] sm:$0xff] %vm840_vm7, %v1913_v9 }
0x1777   : > { %v1978_v11 = vpop.f32.mrf.mxu1 }
0x1778   : > { %1982 = vrot.lane.b32.xlu1 %v1978_v11, %s3761_s0  ;;  %v2048_v12 = vpop.f32.mrf.mxu2  ;;  %s2311_s0 = scalar_lea.hbm %s3774_s20, %s3768_s27 }
0x1779   : > { %2052 = vrot.lane.b32.xlu0 %v2048_v12, %s3760_s17  ;;  %s3770_s17 = sld [smem:[#allocation31_spill]]  ;;  %s2315_s13 = sshll.u32 %s2311_s0, 4  ;;  %s2316_s13 = int_to_ptr.hbm [resolvable:$true] %s2315_s13 }
0x177a   : > { %s2721_s11 = sshra.s32 %s2316_s13, 4  ;;  %s2722_s11 = int_to_ptr.hbm [resolvable:$true] %s2721_s11 }
0x177b   : > { %s2723_s29 = scalar_lea.hbm %s2722_s11, 1  ;;  %p2728_p0 = scmp.lt.s32.totalorder %s2722_s11, %s3774_s20 }
0x177c   : > { %p2724_p11 = scmp.ne.s32.totalorder %s2722_s11, %s2723_s29 }
0x177e   : > { %p2725_p12 = pnand %p2724_p11, %p2969_p5 }
0x1780   : > { %p2726_p13 = pneg %p2725_p12 }
0x17ea   : > { %v1983_v17 = vpop.permute.xlu1 %1982 }
0x17eb   : > { %1985 = vst.msk [vmem:[#allocation2] sm:$0xff] %vm911_vm8, %v1983_v17  ;;  %v2053_v18 = vpop.permute.xlu0 %2052 }
0x17ec   : > { %2055 = vst.msk [vmem:[#allocation2] sm:$0xff] %vm982_vm9, %v2053_v18 }
0x17f3   : > { %v2056_v19 = vld [vmem:[#allocation2] sm:$0xff] }
0x17f4   : > { %2502 = vmatmul.msk.f32.vlgmr.msrb.gmra.mxu1 %vm634_vm0, %v2056_v19 }
0x1871   : > { %v2082_v21 = vpop.f32.mrf.mxu1 }
0x1872   : > { %v2085_v22 = vadd.f32 %v2082_v21, %v3387_v49  ;;  %v2508_v49 = vld [vmem:[%s3660_s12 + $0x50] sm:$0xff] }
0x1873   : > { %2152 = vmatpush.msrb.mxu3 %v2508_v49  ;;  %v2259_v49 = vld [vmem:[%s3770_s17 + $0x18] sm:$0xff] }
0x1874   : > { %v3487_v23 = vadd.f32 %v2614_v20, %v2085_v22  ;;  %v2618_v20 = vld [vmem:[%s3663_s15 + $0x2] ss:$0 sm:$0xff]  ;;  %2275 = vmatpush.msrb.mxu2 %v2259_v49 }
0x1875   : > { %2153 = vmatpush.msrb.mxu3 %v2507_v31  ;;  %v2258_v31 = vld [vmem:[%s3770_s17 + $0x10] sm:$0xff] }
0x1876   : > { %v2096_v24 = vsel %vm634_vm0, %v3487_v23, 0.0  ;;  %2276 = vmatpush.msrb.mxu2 %v2258_v31 }
0x1877   : > { %2097 = vadd.xlane.f32.xlu2 %v2096_v24  ;;  %2154 = vmatpush.msrb.mxu3 %v2506_v32  ;;  %v2257_v32 = vld [vmem:[%s3770_s17 + $0x8] sm:$0xff] }
0x1878   : > { %2277 = vmatpush.msrb.mxu2 %v2257_v32 }
0x18ea   : > { %v2098_v25 = vpop.xlane.xlu2 %2097 }
0x18eb   : > { %v2099_v26 = vmul.f32 %v2098_v25, %v2991_v10 }
0x18ed   : > { %v2100_v27 = vsub.f32 %v3487_v23, %v2099_v26 }
0x18ef   : > { %v2101_v29 = vmul.f32 %v2100_v27, %v2100_v27 }
0x18f1   : > { %v2102_v30 = vsel %vm634_vm0, %v2101_v29, 0.0 }
0x18f2   : > { %2103 = vadd.xlane.f32.xlu1 %v2102_v30 }
0x1965   : > { %v2104_v33 = vpop.xlane.xlu1 %2103 }
0x1966   : > { %v2105_v34 = vmul.f32 %v2104_v33, %v2991_v10  ;;  %v2256_v33 = vld [vmem:[%s3770_s17] sm:$0xff] }
0x1967   : > { %2278 = vmatpush.msrb.mxu2 %v2256_v33 }
0x1968   : > { %v2106_v35 = vadd.f32 1e-05, %v2105_v34 }
0x196a   : > { %2687 = vrsqrt.f32 %v2106_v35  ;;  %vm2113_vm7 = vweird.f32 %v2106_v35 }
0x1970   : > { %v2688_v36 = vpop.eup %2687 }
0x1971   : > { %v2108_v38 = vmul.f32 %v2688_v36, %v2106_v35  ;;  %vm2114_vm5 = vweird.f32 %v2688_v36 }
0x1972   : > { %vm2115_vm8 = vmor %vm2113_vm7, %vm2114_vm5 }
0x1973   : > { %v2109_v48 = vmul.f32 %v2688_v36, %v2108_v38 }
0x1975   : > { %v2110_v39 = vmul.f32 0.5, %v2109_v48 }
0x1977   : > { %v2111_v37 = vsub.f32 1.5, %v2110_v39 }
0x1979   : > { %v2112_v40 = vmul.f32 %v2688_v36, %v2111_v37 }
0x197b   : > { %v2116_v43 = vsel %vm2115_vm8, %v2688_v36, %v2112_v40 }
0x197c   : > { %v2117_v44 = vmul.f32 %v2116_v43, %v2100_v27  ;;  %v2230_v43 = vld [vmem:[%s3771_s28] sm:$0x1]  ;;  %s2727_s28 = scalar_lea.hbm %s3774_s20, 2 }
0x197d   : > { %p2729_p1 = scmp.lt.s32.totalorder %s2727_s28, %s2723_s29 }
0x197e   : > { %v2121_v46 = vmul.f32 %v2615_v42, %v2117_v44 }
0x197f   : > { %p2730_p2 = por %p2729_p1, %p2728_p0 }
0x1980   : > { %v2125_v51 = vadd.f32 %v2616_v45, %v2121_v46  ;;  %v2231_v45 = vld [vmem:[%s3773_s4] sm:$0x1] }
0x1981   : > { %p2731_p3 = pnand %p2730_p2, %p2726_p13 }
0x1982   : > { %2511 = vmatmul.msk.f32.vlgmr.msrb.gmra.mxu3 %vm634_vm0, %v2125_v51 }
0x1a05   : > { %v2156_v3 = vpop.f32.mrf.mxu3 }
0x1a06   : > { %v2157_v47 = vadd.f32 %v2617_v63, %v2156_v3 }
0x1a08   : > { %v2512_v55 = vmul.f32 -1.702, %v2157_v47 }
0x1a0a   : > { %v2161_v5 = vmul.f32 1.442695, %v2512_v55 }
0x1a0c   : > { %2689 = vpow2.f32 %v2161_v5 }
0x1a12   : > { %v2690_v6 = vpop.eup %2689 }
0x1a13   : > { %v2163_v7 = vadd.f32 1.0, %v2690_v6 }
0x1a15   : > { %2691 = vrcp.f32 %v2163_v7  ;;  %v2175_v12 = vand.u32 2147483648, %v2163_v7  ;;  %v2173_v14 = vand.u32 2147483647, %v2163_v7  ;;  %vm2169_vm1 = vweird.f32 %v2163_v7 }
0x1a17   : > { %v2176_v16 = vor.u32 1.1754944e-38, %v2175_v12  ;;  %vm2174_vm3 = vcmp.eq.f32.partialorder %v2173_v14, 8.507059e+37 }
0x1a1b   : > { %v2692_v8 = vpop.eup %2691 }
0x1a1c   : > { %v2165_v9 = vmul.f32 %v2692_v8, %v2163_v7  ;;  %vm2170_vm9 = vweird.f32 %v2692_v8 }
0x1a1d   : > { %vm2171_vm2 = vmor %vm2169_vm1, %vm2170_vm9 }
0x1a1e   : > { %v2166_v11 = vsub.f32 1.0, %v2165_v9 }
0x1a20   : > { %v2167_v13 = vmul.f32 %v2692_v8, %v2166_v11 }
0x1a22   : > { %v2168_v15 = vadd.f32 %v2692_v8, %v2167_v13 }
0x1a24   : > { %v2172_v17 = vsel %vm2171_vm2, %v2692_v8, %v2168_v15 }
0x1a25   : > { %v2177_v18 = vsel %vm2174_vm3, %v2176_v16, %v2172_v17 }
0x1a26   : > { %v2179_v19 = vmul.f32 %v2177_v18, %v2157_v47 }
0x1a28   : > { %2213 = vmatmul.f32.vlgmr.msra.gmra.mxu0 %v2179_v19 }
0x1aa5   : > { %v2214_v21 = vpop.f32.mrf.mxu0 }
0x1aa6   : > { %v2217_v22 = vadd.f32 %v2214_v21, %v3487_v23 }
0x1aa8   : > { %v2223_v24 = vadd.f32 %v2618_v20, %v2217_v22 }
0x1aaa   : > { %2224 = vst.msk [vmem:[#allocation2] sm:$0xff] %vm634_vm0, %v2223_v24 }
0x1ab1   : > { %v2227_v25 = vld [vmem:[%s2226_s16] sm:$0x1] }
0x1ab2   : > { %v2232_v26 = vsel %vm2228_vm4, %v2227_v25, 0.0  ;;  %2229 = vst.msk [vmem:[%s611_s18] sm:$0x1] %vm2228_vm4, %v2227_v25 }
0x1ab3   : > { %2233 = vadd.xlane.f32.xlu0 %v2232_v26 }
0x1b26   : > { %v2234_v27 = vpop.xlane.xlu0 %2233 }
0x1b27   : > { %v2235_v29 = vmul.f32 %v2234_v27, %v2991_v10 }
0x1b29   : > { %v2236_v23 = vsub.f32 %v2227_v25, %v2235_v29 }
0x1b2b   : > { %v2237_v30 = vmul.f32 %v2236_v23, %v2236_v23 }
0x1b2d   : > { %v2238_v28 = vsel %vm2228_vm4, %v2237_v30, 0.0 }
0x1b2e   : > { %2239 = vadd.xlane.f32.xlu2 %v2238_v28 }
0x1ba1   : > { %v2240_v34 = vpop.xlane.xlu2 %2239 }
0x1ba2   : > { %v2241_v35 = vmul.f32 %v2240_v34, %v2991_v10 }
0x1ba4   : > { %v2242_v36 = vadd.f32 1e-05, %v2241_v35 }
0x1ba6   : > { %2693 = vrsqrt.f32 %v2242_v36  ;;  %vm2249_vm14 = vweird.f32 %v2242_v36 }
0x1bac   : > { %v2694_v38 = vpop.eup %2693 }
0x1bad   : > { %v2244_v48 = vmul.f32 %v2694_v38, %v2242_v36  ;;  %vm2250_vm13 = vweird.f32 %v2694_v38 }
0x1bae   : > { %vm2251_vm6 = vmor %vm2249_vm14, %vm2250_vm13 }
0x1baf   : > { %v2245_v39 = vmul.f32 %v2694_v38, %v2244_v48 }
0x1bb1   : > { %v2246_v37 = vmul.f32 0.5, %v2245_v39 }
0x1bb3   : > { %v2247_v40 = vsub.f32 1.5, %v2246_v37 }
0x1bb5   : > { %v2248_v42 = vmul.f32 %v2694_v38, %v2247_v40 }
0x1bb7   : > { %v2252_v44 = vsel %vm2251_vm6, %v2694_v38, %v2248_v42 }
0x1bb8   : > { %v2253_v10 = vmul.f32 %v2252_v44, %v2236_v23 }
0x1bba   : > { %v2254_v46 = vmul.f32 %v2253_v10, %v2230_v43 }
0x1bbc   : > { %v2255_v51 = vadd.f32 %v2254_v46, %v2231_v45 }
0x1bbe   : > { %2530 = vmatmul.msk.f32.vlgmr.msrb.gmra.mxu2 %vm634_vm0, %v2255_v51 }
0x1bbf   : > { %2734 = shalt.err (!%p2731_p3)
}
0x1bc0   : > { %2534 = dma.vmem_to_hbm [thread:$0]  (%p2969_p5), %s2314_s25, 16, %s2316_s13, %s2290_s10   ;;  %vm2283_vm0 = vcmask 122880  }
0x1bc1   : > { %s3775_s16 = sld [smem:[#allocation32_spill]]  ;;  %s605_s0 = scalar_lea.vmem [#allocation5], %s3572_s3 }
0x1bc2   : > { %s2300_s24 = sshll.u32 %s605_s0, 4  ;;  %s2286_s11 = scalar_lea.sflag [#allocation6], %s3572_s3  ;;  %s2301_s24 = int_to_ptr.vmem [resolvable:$true] %s2300_s24 }
0x1bc7   : > { %s2298_s19 = scalar_lea.hbm %s3775_s16, %s3768_s27  ;;  %s2755_s27 = scalar_lea.hbm %s3775_s16, 2 }
0x1bc8   : > { %s2302_s1 = sshll.u32 %s2298_s19, 4  ;;  %s2303_s1 = int_to_ptr.hbm [resolvable:$true] %s2302_s1 }
0x1bc9   : > { %s2749_s29 = sshra.s32 %s2303_s1, 4  ;;  %s2750_s29 = int_to_ptr.hbm [resolvable:$true] %s2749_s29 }
0x1bca   : > { %s2751_s28 = scalar_lea.hbm %s2750_s29, 1  ;;  %p2756_p9 = scmp.lt.s32.totalorder %s2750_s29, %s3775_s16 }
0x1bcb   : > { %p2752_p4 = scmp.ne.s32.totalorder %s2750_s29, %s2751_s28  ;;  %p2757_p10 = scmp.lt.s32.totalorder %s2755_s27, %s2751_s28 }
0x1bcd   : > { %p2753_p7 = pnand %p2752_p4, %p2969_p5  ;;  %p2758_p11 = por %p2757_p10, %p2756_p9 }
0x1bcf   : > { %p2754_p8 = pneg %p2753_p7 }
0x1bd1   : > { %p2759_p12 = pnand %p2758_p11, %p2754_p8 }
0x1c41   : > { %v2280_v0 = vpop.f32.mrf.mxu2 }
0x1c42   : > { %2284 = vst.msk [vmem:[%s605_s0] sm:$0x1] %vm2283_vm0, %v2280_v0 }
0x1c43   : > { %2762 = shalt.err (!%p2759_p12)
}
0x1c44   : > { %2533 = dma.vmem_to_hbm [thread:$0]  (%p2969_p5), %s2301_s24, 16, %s2303_s1, %s2286_s11  }
0x1c45 PF: > { %s3776_s3 = sld [smem:[#allocation15_spill]] }
0x1c46   : > { %s3777_s26 = sld [smem:[#allocation12_spill]] }
0x1c4b   : > { %p2544_p13 = scmp.ge.s32.totalorder %s3776_s3, 2 }
0x1c4c   : > { %s2327_s4 = sand.u32 1, %s3777_s26  }
0x1c4d   : > { %p2538_p0 = pnand %p2544_p13, %p2973_p6  ;;  %s2328_s19 = scalar_lea.sflag [#allocation6], %s2327_s4 }
0x1c4f   : > { %p2539_p1 = pneg %p2538_p0 }
0x1c51   : > { %2782 = dma.done.wait (%p2539_p1), %s2328_s19, 16  }
0x1c52   : > { %2784 = vsyncadd (%p2539_p1), %s2328_s19, 4294967280  ;;  %s2337_s0 = scalar_lea.sflag [#allocation8], %s2327_s4 }
0x1c53   : > { %2786 = dma.done.wait (%p2539_p1), %s2337_s0, 16  }
0x1c54   : > { %2788 = vsyncadd (%p2539_p1), %s2337_s0, 4294967280  ;;  %s3779_s26 = sld [smem:[#allocation17_spill]] }
0x1c55   : > { %s3780_s2 = sld [smem:[#allocation13_spill]] }
0x1c56   : > { %s3781_s25 = sld [smem:[#allocation14_spill]] }
0x1c57   : > { %s3782_s3 = sld [smem:[#allocation18_spill]] }
0x1c5a   : > { %p42_p5 = scmp.ge.s32.totalorder %s3779_s26, 4  }
0x1c5c   :  { %44 = sbr.rel (!%p42_p5) target bundleno = 30 (0x1e), region = 170 }
0x1c61   :  { %2342 = vsyncpa [#allocation6], 1 }
0x1c62   :  { %2344 = vsyncpa [#allocation6 + $0x1], 1 }
0x1c63   :  { %2345 = vsyncpa [#allocation8], 1 }
0x1c64   :  { %2347 = vsyncpa [#allocation8 + $0x1], 1 }

</bundles_post_ra>
